<compile_context>
chip_gen: v7x
topology: tpu7x:2x2x1
jax: 0.10.0
libtpu: 0.0.40
codegen_flags: <defaults>
</compile_context>

<pallas_src>
import functools
import math

import jax
import jax.numpy as jnp
from jax import lax
from jax.experimental import pallas as pl
from jax.experimental.pallas import tpu as pltpu

_TM_TARGET = 256  # lane-dim tile; raise to 512-1024 for production image sizes


# ----------------------------------------------------------------------------
# helpers
# ----------------------------------------------------------------------------
def _choose_tm(M, target=_TM_TARGET):
    """Largest multiple of 128 <= target dividing M; else full M (single block)."""
    if M <= target or M % 128 != 0:
        return M
    tm = target - (target % 128)
    while M % tm != 0:
        tm -= 128
    return tm


def _mish(y):
    # mish(y) = y * tanh(softplus(y)) with a single EUP exp (t = exp(-|y|), no overflow):
    #   y >= 0: tanh(sp) = (2t + 1)   / (2t^2 + 2t + 1)
    #   y <  0: tanh(sp) = (t^2 + 2t) / (t^2 + 2t + 2)
    t = jnp.exp(-jnp.abs(y))
    t2 = t * t
    pos = y >= 0.0
    num = jnp.where(pos, 2.0 * t + 1.0, t2 + 2.0 * t)
    den = jnp.where(pos, 2.0 * t2 + 2.0 * t + 1.0, t2 + 2.0 * t + 2.0)
    return y * num * pl.reciprocal(den, approx=True)


# ----------------------------------------------------------------------------
# Pallas kernels
# ----------------------------------------------------------------------------
def _gemm_bias_act_kernel(w_ref, b_ref, x_ref, o_ref, *, use_mish):
    # w: (1, Cout, K) bf16, x: (1, K, TM) bf16, b: (1, Cout, 1) f32 -> o: (1, Cout, TM)
    y = jnp.dot(w_ref[0], x_ref[0], preferred_element_type=jnp.float32)
    y = y + b_ref[0]
    if use_mish:
        y = _mish(y)
    o_ref[0] = y.astype(o_ref.dtype)


def _gemm_bias_stats_kernel(w_ref, b_ref, x_ref, z_ref, sum_ref, ssq_ref):
    # BN pass 1: z = W @ cols + b (f32, lane-dense), plus per-channel sum/sumsq
    # accumulated across the "arbitrary" M grid axis into resident (Cout, 1) outputs.
    z = jnp.dot(w_ref[...], x_ref[...], preferred_element_type=jnp.float32) + b_ref[...]
    z_ref[...] = z

    @pl.when(pl.program_id(0) == 0)
    def _():
        sum_ref[...] = jnp.zeros_like(sum_ref)
        ssq_ref[...] = jnp.zeros_like(ssq_ref)

    sum_ref[...] += jnp.sum(z, axis=1, keepdims=True)
    ssq_ref[...] += jnp.sum(z * z, axis=1, keepdims=True)


def _bn_mish_kernel(z_ref, a_ref, c_ref, o_ref):
    # BN pass 2: y = mish(z * a + c) with a = gamma*rsqrt(var+eps), c = beta - mean*a.
    o_ref[...] = _mish(z_ref[...] * a_ref[...] + c_ref[...]).astype(o_ref.dtype)


# ----------------------------------------------------------------------------
# pallas_call wrappers
# ----------------------------------------------------------------------------
def grouped_gemm_bias_act(w, b, cols, *, use_mish, out_dtype):
    """o[s] = act(w[s] @ cols[s or 0] + b[s]); grid over (style, M-block), both parallel."""
    S, cout, K = w.shape
    Sc, K2, M = cols.shape
    assert K == K2 and Sc in (1, S)
    TM = _choose_tm(M)
    x_map = (lambda s, m: (0, 0, m)) if Sc == 1 else (lambda s, m: (s, 0, m))
    return pl.pallas_call(
        functools.partial(_gemm_bias_act_kernel, use_mish=use_mish),
        out_shape=jax.ShapeDtypeStruct((S, cout, M), out_dtype),
        grid_spec=pltpu.PrefetchScalarGridSpec(
            num_scalar_prefetch=0,
            grid=(S, M // TM),
            in_specs=[
                pl.BlockSpec((1, cout, K), lambda s, m: (s, 0, 0)),
                pl.BlockSpec((1, cout, 1), lambda s, m: (s, 0, 0)),
                pl.BlockSpec((1, K, TM), x_map),
            ],
            out_specs=pl.BlockSpec((1, cout, TM), lambda s, m: (s, 0, m)),
        ),
        compiler_params=pltpu.CompilerParams(
            dimension_semantics=("parallel", "parallel")),
    )(w, b, cols)


def matmul_bias_stats(w, b, cols):
    """z = W @ cols + b (tiled over M) plus per-channel sum / sumsq outputs."""
    cout, K = w.shape
    M = cols.shape[1]
    TM = _choose_tm(M)
    return pl.pallas_call(
        _gemm_bias_stats_kernel,
        out_shape=(jax.ShapeDtypeStruct((cout, M), jnp.float32),
                   jax.ShapeDtypeStruct((cout, 1), jnp.float32),
                   jax.ShapeDtypeStruct((cout, 1), jnp.float32)),
        grid_spec=pltpu.PrefetchScalarGridSpec(
            num_scalar_prefetch=0,
            grid=(M // TM,),
            in_specs=[pl.BlockSpec((cout, K), lambda m: (0, 0)),
                      pl.BlockSpec((cout, 1), lambda m: (0, 0)),
                      pl.BlockSpec((K, TM), lambda m: (0, m))],
            out_specs=[pl.BlockSpec((cout, TM), lambda m: (0, m)),
                       pl.BlockSpec((cout, 1), lambda m: (0, 0)),
                       pl.BlockSpec((cout, 1), lambda m: (0, 0))],
        ),
        compiler_params=pltpu.CompilerParams(dimension_semantics=("arbitrary",)),
    )(w, b, cols)


def bn_mish(z, a, c, *, out_dtype=jnp.bfloat16):
    cout, M = z.shape
    TM = _choose_tm(M)
    return pl.pallas_call(
        _bn_mish_kernel,
        out_shape=jax.ShapeDtypeStruct((cout, M), out_dtype),
        grid_spec=pltpu.PrefetchScalarGridSpec(
            num_scalar_prefetch=0,
            grid=(M // TM,),
            in_specs=[pl.BlockSpec((cout, TM), lambda m: (0, m)),
                      pl.BlockSpec((cout, 1), lambda m: (0, 0)),
                      pl.BlockSpec((cout, 1), lambda m: (0, 0))],
            out_specs=pl.BlockSpec((cout, TM), lambda m: (0, m)),
        ),
        compiler_params=pltpu.CompilerParams(dimension_semantics=("parallel",)),
    )(z, a, c)


# ----------------------------------------------------------------------------
# conv blocks (im2col glue + Pallas kernels)
# ----------------------------------------------------------------------------
def _conv_out_hw(H, W, stride):
    return (H + 2 - 3) // stride + 1, (W + 2 - 3) // stride + 1


def _im2col_cf(x, stride):
    # x: (C, N, H, W) -> cols (C*9, N*Ho*Wo), column index = c*9 + kh*3 + kw so weights
    # reshape directly as (Cout, Cin*3*3).
    # TODO(synk): the 3x3 gather is still materialized by XLA; fusing it into the Pallas
    #             kernel (halo DMA + in-kernel taps) is the remaining structural change.
    C, N, H, W = x.shape
    Ho, Wo = _conv_out_hw(H, W, stride)
    xp = jnp.pad(x, ((0, 0), (0, 0), (1, 1), (1, 1)))
    taps = []
    for kh in range(3):
        for kw in range(3):
            taps.append(lax.slice(
                xp, (0, 0, kh, kw),
                (C, N, kh + stride * (Ho - 1) + 1, kw + stride * (Wo - 1) + 1),
                (1, 1, stride, stride)))
    cols = jnp.stack(taps, axis=1)                    # (C, 9, N, Ho, Wo)
    return cols.reshape(C * 9, N * Ho * Wo)


def conv_block_bn(x, p, *, stride, eps=1e-5):
    # TODO(synk): ConvBlock source not provided; implemented as conv3x3(pad=1, stride=s,
    #             bias) -> BatchNorm2d (training-mode batch stats) -> mish.
    C, N, H, W = x.shape
    Ho, Wo = _conv_out_hw(H, W, stride)
    cols = _im2col_cf(x, stride)
    cout = p["w"].shape[0]
    M = cols.shape[1]
    z, s, ss = matmul_bias_stats(p["w"], p["b"], cols)
    mean = s[:, 0] / M
    var = jnp.maximum(ss[:, 0] / M - mean * mean, 0.0)
    a = p["gamma"] * lax.rsqrt(var + eps)
    c = p["beta"] - mean * a
    y = bn_mish(z, a.reshape(cout, 1), c.reshape(cout, 1))
    return y.reshape(cout, N, Ho, Wo)


# ----------------------------------------------------------------------------
# parameters (synthetic, PyTorch layout) + one-time prep (layout / bf16 / stacking)
# ----------------------------------------------------------------------------
def log2_diff(a, b):
    return int(round(math.log2(a))) - int(round(math.log2(b)))


def init_conv_block(key, cin, cout, norm):
    kw_, kb_ = jax.random.split(key)
    p = {"w": jax.random.normal(kw_, (cout, cin, 3, 3), jnp.float32) / math.sqrt(cin * 9),
         "b": 0.01 * jax.random.normal(kb_, (cout,), jnp.float32)}
    if norm:
        p["gamma"] = jnp.ones((cout,), jnp.float32)
        p["beta"] = jnp.zeros((cout,), jnp.float32)
    return p


def init_encoder(key, *, imsize, n_styles, smallest_imsize, z_dims, nc_in, nc_base,
                 n_layers_per_res):
    n_down = log2_diff(imsize, smallest_imsize)
    nc = [min(z_dims, nc_base * 2 ** i) for i in range(n_down + 1)]
    assert len(n_layers_per_res) == n_down
    params = {}
    key, k = jax.random.split(key)
    params["deepen"] = init_conv_block(k, nc_in, nc[0], norm=True)

    # TODO(synk): FancyMultiLayerDownBlock source not provided; approximated as one
    #             stride-2 ConvBlock nc[i]->nc[i+1] plus (n_layers-1) stride-1 ConvBlocks.
    blocks = []
    for i in range(n_down):
        layers = []
        key, k = jax.random.split(key)
        layers.append(init_conv_block(k, nc[i], nc[i + 1], norm=True))
        for _ in range(n_layers_per_res[i] - 1):
            key, k = jax.random.split(key)
            layers.append(init_conv_block(k, nc[i + 1], nc[i + 1], norm=True))
        blocks.append(layers)
    params["main"] = blocks

    fmtls = []
    for _ in range(n_styles):
        convs = []
        c = nc[-1]
        for _ in range(log2_diff(smallest_imsize, 1)):
            nxt = min(z_dims, c * 2)
            key, k = jax.random.split(key)
            convs.append(init_conv_block(k, c, nxt, norm=False))
            c = nxt
        key, kw_, kb_ = jax.random.split(key, 3)
        fmtls.append({"convs": convs,
                      "linear": {"w": jax.random.normal(kw_, (z_dims, z_dims), jnp.float32),
                                 "b": 0.01 * jax.random.normal(kb_, (z_dims,), jnp.float32)}})
    params["fmtls"] = fmtls
    return params


def _prep_conv_bn(p):
    cout = p["w"].shape[0]
    return {"w": p["w"].reshape(cout, -1).astype(jnp.bfloat16),
            "b": p["b"].reshape(cout, 1).astype(jnp.float32),
            "gamma": p["gamma"].astype(jnp.float32),
            "beta": p["beta"].astype(jnp.float32)}


def prepare_params(params, z_dims):
    """One-time weight preprocessing: flatten conv weights, cast to bf16, fold the
    FullyConnectedLayer 1/sqrt(in) gain, and stack all n_styles heads per level."""
    prep = {"deepen": _prep_conv_bn(params["deepen"]),
            "main": [[_prep_conv_bn(p) for p in layers] for layers in params["main"]]}
    fmtls = params["fmtls"]
    n_levels = len(fmtls[0]["convs"])
    head_w, head_b = [], []
    for j in range(n_levels):
        cout = fmtls[0]["convs"][j]["w"].shape[0]
        head_w.append(jnp.stack([f["convs"][j]["w"].reshape(cout, -1) for f in fmtls]
                                ).astype(jnp.bfloat16))              # (S, Cout, 9*Cin)
        head_b.append(jnp.stack([f["convs"][j]["b"].reshape(cout, 1) for f in fmtls]
                                ).astype(jnp.float32))               # (S, Cout, 1)
    prep["head_w"] = head_w
    prep["head_b"] = head_b
    # FullyConnectedLayer(activation='linear', lr_multiplier=1):
    #   out = x @ (W / sqrt(in)).T + b  ==  (W / sqrt(in)) @ x_cf + b  (channels-first)
    fc_gain = 1.0 / math.sqrt(z_dims)
    prep["fc_w"] = (jnp.stack([f["linear"]["w"] for f in fmtls]) * fc_gain).astype(jnp.bfloat16)
    prep["fc_b"] = jnp.stack([f["linear"]["b"].reshape(z_dims, 1) for f in fmtls]
                             ).astype(jnp.float32)
    return prep


# ----------------------------------------------------------------------------
# forward pass (mirrors LightE4eEncoder.forward)
# ----------------------------------------------------------------------------
def encoder_forward(prep, x_nchw, progressive_stage=None):
    n_styles, z_dims, _ = prep["fc_w"].shape
    if progressive_stage is None:
        progressive_stage = n_styles

    x = jnp.transpose(x_nchw, (1, 0, 2, 3)).astype(jnp.bfloat16)     # NCHW -> (C, N, H, W)

    x = conv_block_bn(x, prep["deepen"], stride=1)
    for layers in prep["main"]:
        x = conv_block_bn(x, layers[0], stride=2)
        for p in layers[1:]:
            x = conv_block_bn(x, p, stride=1)

    # ---- FeatMapToLatent heads: all n_styles heads batched into shared kernels ----
    C, N, hh, ww = x.shape
    cols = _im2col_cf(x, 2)[None]                     # level-0 input shared -> (1, 9C, M)
    hh, ww = _conv_out_hw(hh, ww, 2)
    n_levels = len(prep["head_w"])
    y = None
    for j in range(n_levels):
        y = grouped_gemm_bias_act(prep["head_w"][j], prep["head_b"][j], cols,
                                  use_mish=True, out_dtype=jnp.bfloat16)  # (S, Cout, N*hh*ww)
        if j + 1 < n_levels:
            cout = prep["head_w"][j].shape[1]
            cols = jax.vmap(functools.partial(_im2col_cf, stride=2))(
                y.reshape(n_styles, cout, N, hh, ww))                     # (S, 9*Cout, M')
            hh, ww = _conv_out_hw(hh, ww, 2)

    # x.view(-1, z_dims) then FullyConnectedLayer (linear), batched over styles.
    latents = grouped_gemm_bias_act(prep["fc_w"], prep["fc_b"], y,
                                    use_mish=False, out_dtype=jnp.float32)  # (S, z, N)
    latents = jnp.transpose(latents, (0, 2, 1))                             # (S, N, z)

    w0 = latents[0]
    limit = min(progressive_stage + 1, n_styles)
    ws = [w0]
    for i in range(1, n_styles):
        ws.append(w0 + latents[i] if i < limit else w0)
    return jnp.stack(ws, axis=1)                                            # (N, n_styles, z)


# ----------------------------------------------------------------------------
if __name__ == "__main__":
    key = jax.random.PRNGKey(0)
    # Small but structurally faithful config: imsize=16 -> smallest=4 (n_down=2)
    cfg = dict(imsize=16, n_styles=4, smallest_imsize=4, z_dims=32,
               nc_in=4, nc_base=8, n_layers_per_res=[1, 2])

    kp, kx = jax.random.split(key)
    params = init_encoder(kp, **cfg)
    prep = prepare_params(params, cfg["z_dims"])

    x = jax.random.normal(kx, (2, cfg["nc_in"], cfg["imsize"], cfg["imsize"]), jnp.float32)

    fwd = jax.jit(encoder_forward, static_argnames=("progressive_stage",))
    out = fwd(prep, x, progressive_stage=cfg["n_styles"])
    out = jax.block_until_ready(out)
    assert out.shape == (2, cfg["n_styles"], cfg["z_dims"]), out.shape
    assert bool(jnp.all(jnp.isfinite(out)))
    print("KERNEL_OK")
</pallas_src>

<mosaic_0001>
module attributes {stable_mosaic.version = 11 : i64} {
  func.func @_gemm_bias_stats_kernel(%arg0: i32, %arg1: memref<8x36xbf16, #tpu.memory_space<vmem>>, %arg2: memref<8x1xf32, #tpu.memory_space<vmem>>, %arg3: memref<36x256xbf16, #tpu.memory_space<vmem>>, %arg4: memref<8x256xf32, #tpu.memory_space<vmem>>, %arg5: memref<8x1xf32, #tpu.memory_space<vmem>>, %arg6: memref<8x1xf32, #tpu.memory_space<vmem>>) attributes {dimension_semantics = [#tpu.dimension_semantics<arbitrary>], iteration_bounds = array<i64: 2>, scalar_prefetch = 0 : i64, scratch_operands = 0 : i64, tpu.core_type = #tpu.core_type<tc>, window_params = [{pipeline_mode = #tpu.pipeline_mode<synchronous>, transform_indices = @transform_0, window_bounds = array<i64: 8, 36>}, {pipeline_mode = #tpu.pipeline_mode<synchronous>, transform_indices = @transform_1, window_bounds = array<i64: 8, 1>}, {transform_indices = @transform_2, window_bounds = array<i64: 36, 256>}, {transform_indices = @transform_3, window_bounds = array<i64: 8, 256>}, {pipeline_mode = #tpu.pipeline_mode<synchronous>, transform_indices = @transform_4, window_bounds = array<i64: 8, 1>}, {pipeline_mode = #tpu.pipeline_mode<synchronous>, transform_indices = @transform_5, window_bounds = array<i64: 8, 1>}]} {
    %c0 = arith.constant 0 : index
    %c0_0 = arith.constant 0 : index
    %0 = vector.load %arg1[%c0, %c0_0] : memref<8x36xbf16, #tpu.memory_space<vmem>>, vector<8x36xbf16>
    %c0_1 = arith.constant 0 : index
    %c0_2 = arith.constant 0 : index
    %1 = vector.load %arg3[%c0_1, %c0_2] : memref<36x256xbf16, #tpu.memory_space<vmem>>, vector<36x256xbf16>
    %cst = arith.constant dense<0.000000e+00> : vector<8x256xf32>
    %2 = tpu.matmul %0, %1, %cst {dimension_numbers = #tpu.dot_dimension_numbers<[1], [0], [0], [1], [0, 0, 1, 1], [], []>} : vector<8x36xbf16>, vector<36x256xbf16>, vector<8x256xf32> -> vector<8x256xf32>
    %c0_3 = arith.constant 0 : index
    %c0_4 = arith.constant 0 : index
    %3 = vector.load %arg2[%c0_3, %c0_4] : memref<8x1xf32, #tpu.memory_space<vmem>>, vector<8x1xf32>
    %4 = vector.broadcast %3 : vector<8x1xf32> to vector<8x256xf32>
    %5 = arith.addf %2, %4 : vector<8x256xf32>
    %c0_5 = arith.constant 0 : index
    %c0_6 = arith.constant 0 : index
    %6 = vector.load %arg4[%c0_5, %c0_6] : memref<8x256xf32, #tpu.memory_space<vmem>>, vector<8x256xf32>
    tpu.vector_store %arg4[%c0_5, %c0_6], %5 {strides = array<i32>} : memref<8x256xf32, #tpu.memory_space<vmem>>, vector<8x256xf32>,
    %c0_i32 = arith.constant 0 : i32
    %7 = arith.cmpi eq, %arg0, %c0_i32 : i32
    %8 = arith.extui %7 : i1 to i32
    %c0_i32_7 = arith.constant 0 : i32
    %9 = arith.cmpi ne, %8, %c0_i32_7 : i32
    scf.if %9 {
      %cst_18 = arith.constant 0.000000e+00 : f32
      %21 = vector.broadcast %cst_18 : f32 to vector<8x1xf32>
      %c0_19 = arith.constant 0 : index
      %c0_20 = arith.constant 0 : index
      %22 = vector.load %arg5[%c0_19, %c0_20] : memref<8x1xf32, #tpu.memory_space<vmem>>, vector<8x1xf32>
      tpu.vector_store %arg5[%c0_19, %c0_20], %21 {strides = array<i32>} : memref<8x1xf32, #tpu.memory_space<vmem>>, vector<8x1xf32>,
      %cst_21 = arith.constant 0.000000e+00 : f32
      %23 = vector.broadcast %cst_21 : f32 to vector<8x1xf32>
      %c0_22 = arith.constant 0 : index
      %c0_23 = arith.constant 0 : index
      %24 = vector.load %arg6[%c0_22, %c0_23] : memref<8x1xf32, #tpu.memory_space<vmem>>, vector<8x1xf32>
      tpu.vector_store %arg6[%c0_22, %c0_23], %23 {strides = array<i32>} : memref<8x1xf32, #tpu.memory_space<vmem>>, vector<8x1xf32>,
    } else {
    }
    %c0_8 = arith.constant 0 : index
    %c0_9 = arith.constant 0 : index
    %10 = vector.load %arg5[%c0_8, %c0_9] : memref<8x1xf32, #tpu.memory_space<vmem>>, vector<8x1xf32>
    %cst_10 = arith.constant dense<0.000000e+00> : vector<8xf32>
    %11 = vector.multi_reduction <add>, %5, %cst_10 [1] : vector<8x256xf32> to vector<8xf32>
    %12 = vector.shape_cast %11 : vector<8xf32> to vector<8x1xf32>
    %13 = arith.addf %10, %12 : vector<8x1xf32>
    %c0_11 = arith.constant 0 : index
    %c0_12 = arith.constant 0 : index
    %14 = vector.load %arg5[%c0_11, %c0_12] : memref<8x1xf32, #tpu.memory_space<vmem>>, vector<8x1xf32>
    tpu.vector_store %arg5[%c0_11, %c0_12], %13 {strides = array<i32>} : memref<8x1xf32, #tpu.memory_space<vmem>>, vector<8x1xf32>,
    %c0_13 = arith.constant 0 : index
    %c0_14 = arith.constant 0 : index
    %15 = vector.load %arg6[%c0_13, %c0_14] : memref<8x1xf32, #tpu.memory_space<vmem>>, vector<8x1xf32>
    %16 = arith.mulf %5, %5 : vector<8x256xf32>
    %cst_15 = arith.constant dense<0.000000e+00> : vector<8xf32>
    %17 = vector.multi_reduction <add>, %16, %cst_15 [1] : vector<8x256xf32> to vector<8xf32>
    %18 = vector.shape_cast %17 : vector<8xf32> to vector<8x1xf32>
    %19 = arith.addf %15, %18 : vector<8x1xf32>
    %c0_16 = arith.constant 0 : index
    %c0_17 = arith.constant 0 : index
    %20 = vector.load %arg6[%c0_16, %c0_17] : memref<8x1xf32, #tpu.memory_space<vmem>>, vector<8x1xf32>
    tpu.vector_store %arg6[%c0_16, %c0_17], %19 {strides = array<i32>} : memref<8x1xf32, #tpu.memory_space<vmem>>, vector<8x1xf32>,
    return
  }
  func.func @transform_0(%arg0: i32) -> (i32, i32) {
    %c0_i32 = arith.constant 0 : i32
    %c0_i32_0 = arith.constant 0 : i32
    %c0_i32_1 = arith.constant 0 : i32
    return %c0_i32, %c0_i32_0 : i32, i32
  }
  func.func @transform_1(%arg0: i32) -> (i32, i32) {
    %c0_i32 = arith.constant 0 : i32
    %c0_i32_0 = arith.constant 0 : i32
    %c0_i32_1 = arith.constant 0 : i32
    return %c0_i32, %c0_i32_0 : i32, i32
  }
  func.func @transform_2(%arg0: i32) -> (i32, i32) {
    %c0_i32 = arith.constant 0 : i32
    %c0_i32_0 = arith.constant 0 : i32
    return %c0_i32, %arg0 : i32, i32
  }
  func.func @transform_3(%arg0: i32) -> (i32, i32) {
    %c0_i32 = arith.constant 0 : i32
    %c0_i32_0 = arith.constant 0 : i32
    return %c0_i32, %arg0 : i32, i32
  }
  func.func @transform_4(%arg0: i32) -> (i32, i32) {
    %c0_i32 = arith.constant 0 : i32
    %c0_i32_0 = arith.constant 0 : i32
    %c0_i32_1 = arith.constant 0 : i32
    return %c0_i32, %c0_i32_0 : i32, i32
  }
  func.func @transform_5(%arg0: i32) -> (i32, i32) {
    %c0_i32 = arith.constant 0 : i32
    %c0_i32_0 = arith.constant 0 : i32
    %c0_i32_1 = arith.constant 0 : i32
    return %c0_i32, %c0_i32_0 : i32, i32
  }
}

module attributes {stable_mosaic.version = 11 : i64} {
  func.func @_bn_mish_kernel(%arg0: i32, %arg1: memref<8x256xf32, #tpu.memory_space<vmem>>, %arg2: memref<8x1xf32, #tpu.memory_space<vmem>>, %arg3: memref<8x1xf32, #tpu.memory_space<vmem>>, %arg4: memref<8x256xbf16, #tpu.memory_space<vmem>>) attributes {dimension_semantics = [#tpu.dimension_semantics<parallel>], iteration_bounds = array<i64: 2>, scalar_prefetch = 0 : i64, scratch_operands = 0 : i64, tpu.core_type = #tpu.core_type<tc>, window_params = [{transform_indices = @transform_0, window_bounds = array<i64: 8, 256>}, {pipeline_mode = #tpu.pipeline_mode<synchronous>, transform_indices = @transform_1, window_bounds = array<i64: 8, 1>}, {pipeline_mode = #tpu.pipeline_mode<synchronous>, transform_indices = @transform_2, window_bounds = array<i64: 8, 1>}, {transform_indices = @transform_3, window_bounds = array<i64: 8, 256>}]} {
    %c0 = arith.constant 0 : index
    %c0_0 = arith.constant 0 : index
    %0 = vector.load %arg1[%c0, %c0_0] : memref<8x256xf32, #tpu.memory_space<vmem>>, vector<8x256xf32>
    %c0_1 = arith.constant 0 : index
    %c0_2 = arith.constant 0 : index
    %1 = vector.load %arg2[%c0_1, %c0_2] : memref<8x1xf32, #tpu.memory_space<vmem>>, vector<8x1xf32>
    %2 = vector.broadcast %1 : vector<8x1xf32> to vector<8x256xf32>
    %3 = arith.mulf %0, %2 : vector<8x256xf32>
    %c0_3 = arith.constant 0 : index
    %c0_4 = arith.constant 0 : index
    %4 = vector.load %arg3[%c0_3, %c0_4] : memref<8x1xf32, #tpu.memory_space<vmem>>, vector<8x1xf32>
    %5 = vector.broadcast %4 : vector<8x1xf32> to vector<8x256xf32>
    %6 = arith.addf %3, %5 : vector<8x256xf32>
    %7 = math.absf %6 : vector<8x256xf32>
    %cst = arith.constant 0.000000e+00 : f32
    %8 = vector.broadcast %cst : f32 to vector<8x256xf32>
    %9 = arith.subf %8, %7 : vector<8x256xf32>
    %10 = math.exp %9 : vector<8x256xf32>
    %11 = arith.mulf %10, %10 : vector<8x256xf32>
    %cst_5 = arith.constant 0.000000e+00 : f32
    %12 = vector.broadcast %cst_5 : f32 to vector<8x256xf32>
    %13 = arith.cmpf oge, %6, %12 : vector<8x256xf32>
    %cst_6 = arith.constant 2.000000e+00 : f32
    %14 = vector.broadcast %cst_6 : f32 to vector<8x256xf32>
    %15 = arith.mulf %14, %10 : vector<8x256xf32>
    %cst_7 = arith.constant 1.000000e+00 : f32
    %16 = vector.broadcast %cst_7 : f32 to vector<8x256xf32>
    %17 = arith.addf %15, %16 : vector<8x256xf32>
    %cst_8 = arith.constant 2.000000e+00 : f32
    %18 = vector.broadcast %cst_8 : f32 to vector<8x256xf32>
    %19 = arith.mulf %18, %10 : vector<8x256xf32>
    %20 = arith.addf %11, %19 : vector<8x256xf32>
    %21 = arith.select %13, %17, %20 : vector<8x256xi1>, vector<8x256xf32>
    %cst_9 = arith.constant 2.000000e+00 : f32
    %22 = vector.broadcast %cst_9 : f32 to vector<8x256xf32>
    %23 = arith.mulf %22, %11 : vector<8x256xf32>
    %cst_10 = arith.constant 2.000000e+00 : f32
    %24 = vector.broadcast %cst_10 : f32 to vector<8x256xf32>
    %25 = arith.mulf %24, %10 : vector<8x256xf32>
    %26 = arith.addf %23, %25 : vector<8x256xf32>
    %cst_11 = arith.constant 1.000000e+00 : f32
    %27 = vector.broadcast %cst_11 : f32 to vector<8x256xf32>
    %28 = arith.addf %26, %27 : vector<8x256xf32>
    %cst_12 = arith.constant 2.000000e+00 : f32
    %29 = vector.broadcast %cst_12 : f32 to vector<8x256xf32>
    %30 = arith.mulf %29, %10 : vector<8x256xf32>
    %31 = arith.addf %11, %30 : vector<8x256xf32>
    %cst_13 = arith.constant 2.000000e+00 : f32
    %32 = vector.broadcast %cst_13 : f32 to vector<8x256xf32>
    %33 = arith.addf %31, %32 : vector<8x256xf32>
    %34 = arith.select %13, %28, %33 : vector<8x256xi1>, vector<8x256xf32>
    %35 = arith.mulf %6, %21 : vector<8x256xf32>
    %36 = tpu.reciprocal %34 {approx = true} : vector<8x256xf32> -> vector<8x256xf32>
    %37 = arith.mulf %35, %36 : vector<8x256xf32>
    %38 = arith.truncf %37 : vector<8x256xf32> to vector<8x256xbf16>
    %c0_14 = arith.constant 0 : index
    %c0_15 = arith.constant 0 : index
    %39 = vector.load %arg4[%c0_14, %c0_15] : memref<8x256xbf16, #tpu.memory_space<vmem>>, vector<8x256xbf16>
    tpu.vector_store %arg4[%c0_14, %c0_15], %38 {strides = array<i32>} : memref<8x256xbf16, #tpu.memory_space<vmem>>, vector<8x256xbf16>,
    return
  }
  func.func @transform_0(%arg0: i32) -> (i32, i32) {
    %c0_i32 = arith.constant 0 : i32
    %c0_i32_0 = arith.constant 0 : i32
    return %c0_i32, %arg0 : i32, i32
  }
  func.func @transform_1(%arg0: i32) -> (i32, i32) {
    %c0_i32 = arith.constant 0 : i32
    %c0_i32_0 = arith.constant 0 : i32
    %c0_i32_1 = arith.constant 0 : i32
    return %c0_i32, %c0_i32_0 : i32, i32
  }
  func.func @transform_2(%arg0: i32) -> (i32, i32) {
    %c0_i32 = arith.constant 0 : i32
    %c0_i32_0 = arith.constant 0 : i32
    %c0_i32_1 = arith.constant 0 : i32
    return %c0_i32, %c0_i32_0 : i32, i32
  }
  func.func @transform_3(%arg0: i32) -> (i32, i32) {
    %c0_i32 = arith.constant 0 : i32
    %c0_i32_0 = arith.constant 0 : i32
    return %c0_i32, %arg0 : i32, i32
  }
}

module attributes {stable_mosaic.version = 11 : i64} {
  func.func @_gemm_bias_stats_kernel(%arg0: i32, %arg1: memref<16x72xbf16, #tpu.memory_space<vmem>>, %arg2: memref<16x1xf32, #tpu.memory_space<vmem>>, %arg3: memref<72x128xbf16, #tpu.memory_space<vmem>>, %arg4: memref<16x128xf32, #tpu.memory_space<vmem>>, %arg5: memref<16x1xf32, #tpu.memory_space<vmem>>, %arg6: memref<16x1xf32, #tpu.memory_space<vmem>>) attributes {dimension_semantics = [#tpu.dimension_semantics<arbitrary>], iteration_bounds = array<i64: 1>, scalar_prefetch = 0 : i64, scratch_operands = 0 : i64, tpu.core_type = #tpu.core_type<tc>, window_params = [{pipeline_mode = #tpu.pipeline_mode<synchronous>, transform_indices = @transform_0, window_bounds = array<i64: 16, 72>}, {pipeline_mode = #tpu.pipeline_mode<synchronous>, transform_indices = @transform_1, window_bounds = array<i64: 16, 1>}, {transform_indices = @transform_2, window_bounds = array<i64: 72, 128>}, {transform_indices = @transform_3, window_bounds = array<i64: 16, 128>}, {pipeline_mode = #tpu.pipeline_mode<synchronous>, transform_indices = @transform_4, window_bounds = array<i64: 16, 1>}, {pipeline_mode = #tpu.pipeline_mode<synchronous>, transform_indices = @transform_5, window_bounds = array<i64: 16, 1>}]} {
    %c0 = arith.constant 0 : index
    %c0_0 = arith.constant 0 : index
    %0 = vector.load %arg1[%c0, %c0_0] : memref<16x72xbf16, #tpu.memory_space<vmem>>, vector<16x72xbf16>
    %c0_1 = arith.constant 0 : index
    %c0_2 = arith.constant 0 : index
    %1 = vector.load %arg3[%c0_1, %c0_2] : memref<72x128xbf16, #tpu.memory_space<vmem>>, vector<72x128xbf16>
    %cst = arith.constant dense<0.000000e+00> : vector<16x128xf32>
    %2 = tpu.matmul %0, %1, %cst {dimension_numbers = #tpu.dot_dimension_numbers<[1], [0], [0], [1], [0, 0, 1, 1], [], []>} : vector<16x72xbf16>, vector<72x128xbf16>, vector<16x128xf32> -> vector<16x128xf32>
    %c0_3 = arith.constant 0 : index
    %c0_4 = arith.constant 0 : index
    %3 = vector.load %arg2[%c0_3, %c0_4] : memref<16x1xf32, #tpu.memory_space<vmem>>, vector<16x1xf32>
    %4 = vector.broadcast %3 : vector<16x1xf32> to vector<16x128xf32>
    %5 = arith.addf %2, %4 : vector<16x128xf32>
    %c0_5 = arith.constant 0 : index
    %c0_6 = arith.constant 0 : index
    %6 = vector.load %arg4[%c0_5, %c0_6] : memref<16x128xf32, #tpu.memory_space<vmem>>, vector<16x128xf32>
    tpu.vector_store %arg4[%c0_5, %c0_6], %5 {strides = array<i32>} : memref<16x128xf32, #tpu.memory_space<vmem>>, vector<16x128xf32>,
    %c0_i32 = arith.constant 0 : i32
    %7 = arith.cmpi eq, %arg0, %c0_i32 : i32
    %8 = arith.extui %7 : i1 to i32
    %c0_i32_7 = arith.constant 0 : i32
    %9 = arith.cmpi ne, %8, %c0_i32_7 : i32
    scf.if %9 {
      %cst_18 = arith.constant 0.000000e+00 : f32
      %21 = vector.broadcast %cst_18 : f32 to vector<16x1xf32>
      %c0_19 = arith.constant 0 : index
      %c0_20 = arith.constant 0 : index
      %22 = vector.load %arg5[%c0_19, %c0_20] : memref<16x1xf32, #tpu.memory_space<vmem>>, vector<16x1xf32>
      tpu.vector_store %arg5[%c0_19, %c0_20], %21 {strides = array<i32>} : memref<16x1xf32, #tpu.memory_space<vmem>>, vector<16x1xf32>,
      %cst_21 = arith.constant 0.000000e+00 : f32
      %23 = vector.broadcast %cst_21 : f32 to vector<16x1xf32>
      %c0_22 = arith.constant 0 : index
      %c0_23 = arith.constant 0 : index
      %24 = vector.load %arg6[%c0_22, %c0_23] : memref<16x1xf32, #tpu.memory_space<vmem>>, vector<16x1xf32>
      tpu.vector_store %arg6[%c0_22, %c0_23], %23 {strides = array<i32>} : memref<16x1xf32, #tpu.memory_space<vmem>>, vector<16x1xf32>,
    } else {
    }
    %c0_8 = arith.constant 0 : index
    %c0_9 = arith.constant 0 : index
    %10 = vector.load %arg5[%c0_8, %c0_9] : memref<16x1xf32, #tpu.memory_space<vmem>>, vector<16x1xf32>
    %cst_10 = arith.constant dense<0.000000e+00> : vector<16xf32>
    %11 = vector.multi_reduction <add>, %5, %cst_10 [1] : vector<16x128xf32> to vector<16xf32>
    %12 = vector.shape_cast %11 : vector<16xf32> to vector<16x1xf32>
    %13 = arith.addf %10, %12 : vector<16x1xf32>
    %c0_11 = arith.constant 0 : index
    %c0_12 = arith.constant 0 : index
    %14 = vector.load %arg5[%c0_11, %c0_12] : memref<16x1xf32, #tpu.memory_space<vmem>>, vector<16x1xf32>
    tpu.vector_store %arg5[%c0_11, %c0_12], %13 {strides = array<i32>} : memref<16x1xf32, #tpu.memory_space<vmem>>, vector<16x1xf32>,
    %c0_13 = arith.constant 0 : index
    %c0_14 = arith.constant 0 : index
    %15 = vector.load %arg6[%c0_13, %c0_14] : memref<16x1xf32, #tpu.memory_space<vmem>>, vector<16x1xf32>
    %16 = arith.mulf %5, %5 : vector<16x128xf32>
    %cst_15 = arith.constant dense<0.000000e+00> : vector<16xf32>
    %17 = vector.multi_reduction <add>, %16, %cst_15 [1] : vector<16x128xf32> to vector<16xf32>
    %18 = vector.shape_cast %17 : vector<16xf32> to vector<16x1xf32>
    %19 = arith.addf %15, %18 : vector<16x1xf32>
    %c0_16 = arith.constant 0 : index
    %c0_17 = arith.constant 0 : index
    %20 = vector.load %arg6[%c0_16, %c0_17] : memref<16x1xf32, #tpu.memory_space<vmem>>, vector<16x1xf32>
    tpu.vector_store %arg6[%c0_16, %c0_17], %19 {strides = array<i32>} : memref<16x1xf32, #tpu.memory_space<vmem>>, vector<16x1xf32>,
    return
  }
  func.func @transform_0(%arg0: i32) -> (i32, i32) {
    %c0_i32 = arith.constant 0 : i32
    %c0_i32_0 = arith.constant 0 : i32
    %c0_i32_1 = arith.constant 0 : i32
    return %c0_i32, %c0_i32_0 : i32, i32
  }
  func.func @transform_1(%arg0: i32) -> (i32, i32) {
    %c0_i32 = arith.constant 0 : i32
    %c0_i32_0 = arith.constant 0 : i32
    %c0_i32_1 = arith.constant 0 : i32
    return %c0_i32, %c0_i32_0 : i32, i32
  }
  func.func @transform_2(%arg0: i32) -> (i32, i32) {
    %c0_i32 = arith.constant 0 : i32
    %c0_i32_0 = arith.constant 0 : i32
    return %c0_i32, %arg0 : i32, i32
  }
  func.func @transform_3(%arg0: i32) -> (i32, i32) {
    %c0_i32 = arith.constant 0 : i32
    %c0_i32_0 = arith.constant 0 : i32
    return %c0_i32, %arg0 : i32, i32
  }
  func.func @transform_4(%arg0: i32) -> (i32, i32) {
    %c0_i32 = arith.constant 0 : i32
    %c0_i32_0 = arith.constant 0 : i32
    %c0_i32_1 = arith.constant 0 : i32
    return %c0_i32, %c0_i32_0 : i32, i32
  }
  func.func @transform_5(%arg0: i32) -> (i32, i32) {
    %c0_i32 = arith.constant 0 : i32
    %c0_i32_0 = arith.constant 0 : i32
    %c0_i32_1 = arith.constant 0 : i32
    return %c0_i32, %c0_i32_0 : i32, i32
  }
}

module attributes {stable_mosaic.version = 11 : i64} {
  func.func @_bn_mish_kernel(%arg0: i32, %arg1: memref<16x128xf32, #tpu.memory_space<vmem>>, %arg2: memref<16x1xf32, #tpu.memory_space<vmem>>, %arg3: memref<16x1xf32, #tpu.memory_space<vmem>>, %arg4: memref<16x128xbf16, #tpu.memory_space<vmem>>) attributes {dimension_semantics = [#tpu.dimension_semantics<parallel>], iteration_bounds = array<i64: 1>, scalar_prefetch = 0 : i64, scratch_operands = 0 : i64, tpu.core_type = #tpu.core_type<tc>, window_params = [{transform_indices = @transform_0, window_bounds = array<i64: 16, 128>}, {pipeline_mode = #tpu.pipeline_mode<synchronous>, transform_indices = @transform_1, window_bounds = array<i64: 16, 1>}, {pipeline_mode = #tpu.pipeline_mode<synchronous>, transform_indices = @transform_2, window_bounds = array<i64: 16, 1>}, {transform_indices = @transform_3, window_bounds = array<i64: 16, 128>}]} {
    %c0 = arith.constant 0 : index
    %c0_0 = arith.constant 0 : index
    %0 = vector.load %arg1[%c0, %c0_0] : memref<16x128xf32, #tpu.memory_space<vmem>>, vector<16x128xf32>
    %c0_1 = arith.constant 0 : index
    %c0_2 = arith.constant 0 : index
    %1 = vector.load %arg2[%c0_1, %c0_2] : memref<16x1xf32, #tpu.memory_space<vmem>>, vector<16x1xf32>
    %2 = vector.broadcast %1 : vector<16x1xf32> to vector<16x128xf32>
    %3 = arith.mulf %0, %2 : vector<16x128xf32>
    %c0_3 = arith.constant 0 : index
    %c0_4 = arith.constant 0 : index
    %4 = vector.load %arg3[%c0_3, %c0_4] : memref<16x1xf32, #tpu.memory_space<vmem>>, vector<16x1xf32>
    %5 = vector.broadcast %4 : vector<16x1xf32> to vector<16x128xf32>
    %6 = arith.addf %3, %5 : vector<16x128xf32>
    %7 = math.absf %6 : vector<16x128xf32>
    %cst = arith.constant 0.000000e+00 : f32
    %8 = vector.broadcast %cst : f32 to vector<16x128xf32>
    %9 = arith.subf %8, %7 : vector<16x128xf32>
    %10 = math.exp %9 : vector<16x128xf32>
    %11 = arith.mulf %10, %10 : vector<16x128xf32>
    %cst_5 = arith.constant 0.000000e+00 : f32
    %12 = vector.broadcast %cst_5 : f32 to vector<16x128xf32>
    %13 = arith.cmpf oge, %6, %12 : vector<16x128xf32>
    %cst_6 = arith.constant 2.000000e+00 : f32
    %14 = vector.broadcast %cst_6 : f32 to vector<16x128xf32>
    %15 = arith.mulf %14, %10 : vector<16x128xf32>
    %cst_7 = arith.constant 1.000000e+00 : f32
    %16 = vector.broadcast %cst_7 : f32 to vector<16x128xf32>
    %17 = arith.addf %15, %16 : vector<16x128xf32>
    %cst_8 = arith.constant 2.000000e+00 : f32
    %18 = vector.broadcast %cst_8 : f32 to vector<16x128xf32>
    %19 = arith.mulf %18, %10 : vector<16x128xf32>
    %20 = arith.addf %11, %19 : vector<16x128xf32>
    %21 = arith.select %13, %17, %20 : vector<16x128xi1>, vector<16x128xf32>
    %cst_9 = arith.constant 2.000000e+00 : f32
    %22 = vector.broadcast %cst_9 : f32 to vector<16x128xf32>
    %23 = arith.mulf %22, %11 : vector<16x128xf32>
    %cst_10 = arith.constant 2.000000e+00 : f32
    %24 = vector.broadcast %cst_10 : f32 to vector<16x128xf32>
    %25 = arith.mulf %24, %10 : vector<16x128xf32>
    %26 = arith.addf %23, %25 : vector<16x128xf32>
    %cst_11 = arith.constant 1.000000e+00 : f32
    %27 = vector.broadcast %cst_11 : f32 to vector<16x128xf32>
    %28 = arith.addf %26, %27 : vector<16x128xf32>
    %cst_12 = arith.constant 2.000000e+00 : f32
    %29 = vector.broadcast %cst_12 : f32 to vector<16x128xf32>
    %30 = arith.mulf %29, %10 : vector<16x128xf32>
    %31 = arith.addf %11, %30 : vector<16x128xf32>
    %cst_13 = arith.constant 2.000000e+00 : f32
    %32 = vector.broadcast %cst_13 : f32 to vector<16x128xf32>
    %33 = arith.addf %31, %32 : vector<16x128xf32>
    %34 = arith.select %13, %28, %33 : vector<16x128xi1>, vector<16x128xf32>
    %35 = arith.mulf %6, %21 : vector<16x128xf32>
    %36 = tpu.reciprocal %34 {approx = true} : vector<16x128xf32> -> vector<16x128xf32>
    %37 = arith.mulf %35, %36 : vector<16x128xf32>
    %38 = arith.truncf %37 : vector<16x128xf32> to vector<16x128xbf16>
    %c0_14 = arith.constant 0 : index
    %c0_15 = arith.constant 0 : index
    %39 = vector.load %arg4[%c0_14, %c0_15] : memref<16x128xbf16, #tpu.memory_space<vmem>>, vector<16x128xbf16>
    tpu.vector_store %arg4[%c0_14, %c0_15], %38 {strides = array<i32>} : memref<16x128xbf16, #tpu.memory_space<vmem>>, vector<16x128xbf16>,
    return
  }
  func.func @transform_0(%arg0: i32) -> (i32, i32) {
    %c0_i32 = arith.constant 0 : i32
    %c0_i32_0 = arith.constant 0 : i32
    return %c0_i32, %arg0 : i32, i32
  }
  func.func @transform_1(%arg0: i32) -> (i32, i32) {
    %c0_i32 = arith.constant 0 : i32
    %c0_i32_0 = arith.constant 0 : i32
    %c0_i32_1 = arith.constant 0 : i32
    return %c0_i32, %c0_i32_0 : i32, i32
  }
  func.func @transform_2(%arg0: i32) -> (i32, i32) {
    %c0_i32 = arith.constant 0 : i32
    %c0_i32_0 = arith.constant 0 : i32
    %c0_i32_1 = arith.constant 0 : i32
    return %c0_i32, %c0_i32_0 : i32, i32
  }
  func.func @transform_3(%arg0: i32) -> (i32, i32) {
    %c0_i32 = arith.constant 0 : i32
    %c0_i32_0 = arith.constant 0 : i32
    return %c0_i32, %arg0 : i32, i32
  }
}

module attributes {stable_mosaic.version = 11 : i64} {
  func.func @_gemm_bias_stats_kernel(%arg0: i32, %arg1: memref<32x144xbf16, #tpu.memory_space<vmem>>, %arg2: memref<32x1xf32, #tpu.memory_space<vmem>>, %arg3: memref<144x32xbf16, #tpu.memory_space<vmem>>, %arg4: memref<32x32xf32, #tpu.memory_space<vmem>>, %arg5: memref<32x1xf32, #tpu.memory_space<vmem>>, %arg6: memref<32x1xf32, #tpu.memory_space<vmem>>) attributes {dimension_semantics = [#tpu.dimension_semantics<arbitrary>], iteration_bounds = array<i64: 1>, scalar_prefetch = 0 : i64, scratch_operands = 0 : i64, tpu.core_type = #tpu.core_type<tc>, window_params = [{pipeline_mode = #tpu.pipeline_mode<synchronous>, transform_indices = @transform_0, window_bounds = array<i64: 32, 144>}, {pipeline_mode = #tpu.pipeline_mode<synchronous>, transform_indices = @transform_1, window_bounds = array<i64: 32, 1>}, {transform_indices = @transform_2, window_bounds = array<i64: 144, 32>}, {transform_indices = @transform_3, window_bounds = array<i64: 32, 32>}, {pipeline_mode = #tpu.pipeline_mode<synchronous>, transform_indices = @transform_4, window_bounds = array<i64: 32, 1>}, {pipeline_mode = #tpu.pipeline_mode<synchronous>, transform_indices = @transform_5, window_bounds = array<i64: 32, 1>}]} {
    %c0 = arith.constant 0 : index
    %c0_0 = arith.constant 0 : index
    %0 = vector.load %arg1[%c0, %c0_0] : memref<32x144xbf16, #tpu.memory_space<vmem>>, vector<32x144xbf16>
    %c0_1 = arith.constant 0 : index
    %c0_2 = arith.constant 0 : index
    %1 = vector.load %arg3[%c0_1, %c0_2] : memref<144x32xbf16, #tpu.memory_space<vmem>>, vector<144x32xbf16>
    %cst = arith.constant dense<0.000000e+00> : vector<32x32xf32>
    %2 = tpu.matmul %0, %1, %cst {dimension_numbers = #tpu.dot_dimension_numbers<[1], [0], [0], [1], [0, 0, 1, 1], [], []>} : vector<32x144xbf16>, vector<144x32xbf16>, vector<32x32xf32> -> vector<32x32xf32>
    %c0_3 = arith.constant 0 : index
    %c0_4 = arith.constant 0 : index
    %3 = vector.load %arg2[%c0_3, %c0_4] : memref<32x1xf32, #tpu.memory_space<vmem>>, vector<32x1xf32>
    %4 = vector.broadcast %3 : vector<32x1xf32> to vector<32x32xf32>
    %5 = arith.addf %2, %4 : vector<32x32xf32>
    %c0_5 = arith.constant 0 : index
    %c0_6 = arith.constant 0 : index
    %6 = vector.load %arg4[%c0_5, %c0_6] : memref<32x32xf32, #tpu.memory_space<vmem>>, vector<32x32xf32>
    tpu.vector_store %arg4[%c0_5, %c0_6], %5 {strides = array<i32>} : memref<32x32xf32, #tpu.memory_space<vmem>>, vector<32x32xf32>,
    %c0_i32 = arith.constant 0 : i32
    %7 = arith.cmpi eq, %arg0, %c0_i32 : i32
    %8 = arith.extui %7 : i1 to i32
    %c0_i32_7 = arith.constant 0 : i32
    %9 = arith.cmpi ne, %8, %c0_i32_7 : i32
    scf.if %9 {
      %cst_18 = arith.constant 0.000000e+00 : f32
      %21 = vector.broadcast %cst_18 : f32 to vector<32x1xf32>
      %c0_19 = arith.constant 0 : index
      %c0_20 = arith.constant 0 : index
      %22 = vector.load %arg5[%c0_19, %c0_20] : memref<32x1xf32, #tpu.memory_space<vmem>>, vector<32x1xf32>
      tpu.vector_store %arg5[%c0_19, %c0_20], %21 {strides = array<i32>} : memref<32x1xf32, #tpu.memory_space<vmem>>, vector<32x1xf32>,
      %cst_21 = arith.constant 0.000000e+00 : f32
      %23 = vector.broadcast %cst_21 : f32 to vector<32x1xf32>
      %c0_22 = arith.constant 0 : index
      %c0_23 = arith.constant 0 : index
      %24 = vector.load %arg6[%c0_22, %c0_23] : memref<32x1xf32, #tpu.memory_space<vmem>>, vector<32x1xf32>
      tpu.vector_store %arg6[%c0_22, %c0_23], %23 {strides = array<i32>} : memref<32x1xf32, #tpu.memory_space<vmem>>, vector<32x1xf32>,
    } else {
    }
    %c0_8 = arith.constant 0 : index
    %c0_9 = arith.constant 0 : index
    %10 = vector.load %arg5[%c0_8, %c0_9] : memref<32x1xf32, #tpu.memory_space<vmem>>, vector<32x1xf32>
    %cst_10 = arith.constant dense<0.000000e+00> : vector<32xf32>
    %11 = vector.multi_reduction <add>, %5, %cst_10 [1] : vector<32x32xf32> to vector<32xf32>
    %12 = vector.shape_cast %11 : vector<32xf32> to vector<32x1xf32>
    %13 = arith.addf %10, %12 : vector<32x1xf32>
    %c0_11 = arith.constant 0 : index
    %c0_12 = arith.constant 0 : index
    %14 = vector.load %arg5[%c0_11, %c0_12] : memref<32x1xf32, #tpu.memory_space<vmem>>, vector<32x1xf32>
    tpu.vector_store %arg5[%c0_11, %c0_12], %13 {strides = array<i32>} : memref<32x1xf32, #tpu.memory_space<vmem>>, vector<32x1xf32>,
    %c0_13 = arith.constant 0 : index
    %c0_14 = arith.constant 0 : index
    %15 = vector.load %arg6[%c0_13, %c0_14] : memref<32x1xf32, #tpu.memory_space<vmem>>, vector<32x1xf32>
    %16 = arith.mulf %5, %5 : vector<32x32xf32>
    %cst_15 = arith.constant dense<0.000000e+00> : vector<32xf32>
    %17 = vector.multi_reduction <add>, %16, %cst_15 [1] : vector<32x32xf32> to vector<32xf32>
    %18 = vector.shape_cast %17 : vector<32xf32> to vector<32x1xf32>
    %19 = arith.addf %15, %18 : vector<32x1xf32>
    %c0_16 = arith.constant 0 : index
    %c0_17 = arith.constant 0 : index
    %20 = vector.load %arg6[%c0_16, %c0_17] : memref<32x1xf32, #tpu.memory_space<vmem>>, vector<32x1xf32>
    tpu.vector_store %arg6[%c0_16, %c0_17], %19 {strides = array<i32>} : memref<32x1xf32, #tpu.memory_space<vmem>>, vector<32x1xf32>,
    return
  }
  func.func @transform_0(%arg0: i32) -> (i32, i32) {
    %c0_i32 = arith.constant 0 : i32
    %c0_i32_0 = arith.constant 0 : i32
    %c0_i32_1 = arith.constant 0 : i32
    return %c0_i32, %c0_i32_0 : i32, i32
  }
  func.func @transform_1(%arg0: i32) -> (i32, i32) {
    %c0_i32 = arith.constant 0 : i32
    %c0_i32_0 = arith.constant 0 : i32
    %c0_i32_1 = arith.constant 0 : i32
    return %c0_i32, %c0_i32_0 : i32, i32
  }
  func.func @transform_2(%arg0: i32) -> (i32, i32) {
    %c0_i32 = arith.constant 0 : i32
    %c0_i32_0 = arith.constant 0 : i32
    return %c0_i32, %arg0 : i32, i32
  }
  func.func @transform_3(%arg0: i32) -> (i32, i32) {
    %c0_i32 = arith.constant 0 : i32
    %c0_i32_0 = arith.constant 0 : i32
    return %c0_i32, %arg0 : i32, i32
  }
  func.func @transform_4(%arg0: i32) -> (i32, i32) {
    %c0_i32 = arith.constant 0 : i32
    %c0_i32_0 = arith.constant 0 : i32
    %c0_i32_1 = arith.constant 0 : i32
    return %c0_i32, %c0_i32_0 : i32, i32
  }
  func.func @transform_5(%arg0: i32) -> (i32, i32) {
    %c0_i32 = arith.constant 0 : i32
    %c0_i32_0 = arith.constant 0 : i32
    %c0_i32_1 = arith.constant 0 : i32
    return %c0_i32, %c0_i32_0 : i32, i32
  }
}

module attributes {stable_mosaic.version = 11 : i64} {
  func.func @_bn_mish_kernel(%arg0: i32, %arg1: memref<32x32xf32, #tpu.memory_space<vmem>>, %arg2: memref<32x1xf32, #tpu.memory_space<vmem>>, %arg3: memref<32x1xf32, #tpu.memory_space<vmem>>, %arg4: memref<32x32xbf16, #tpu.memory_space<vmem>>) attributes {dimension_semantics = [#tpu.dimension_semantics<parallel>], iteration_bounds = array<i64: 1>, scalar_prefetch = 0 : i64, scratch_operands = 0 : i64, tpu.core_type = #tpu.core_type<tc>, window_params = [{transform_indices = @transform_0, window_bounds = array<i64: 32, 32>}, {pipeline_mode = #tpu.pipeline_mode<synchronous>, transform_indices = @transform_1, window_bounds = array<i64: 32, 1>}, {pipeline_mode = #tpu.pipeline_mode<synchronous>, transform_indices = @transform_2, window_bounds = array<i64: 32, 1>}, {transform_indices = @transform_3, window_bounds = array<i64: 32, 32>}]} {
    %c0 = arith.constant 0 : index
    %c0_0 = arith.constant 0 : index
    %0 = vector.load %arg1[%c0, %c0_0] : memref<32x32xf32, #tpu.memory_space<vmem>>, vector<32x32xf32>
    %c0_1 = arith.constant 0 : index
    %c0_2 = arith.constant 0 : index
    %1 = vector.load %arg2[%c0_1, %c0_2] : memref<32x1xf32, #tpu.memory_space<vmem>>, vector<32x1xf32>
    %2 = vector.broadcast %1 : vector<32x1xf32> to vector<32x32xf32>
    %3 = arith.mulf %0, %2 : vector<32x32xf32>
    %c0_3 = arith.constant 0 : index
    %c0_4 = arith.constant 0 : index
    %4 = vector.load %arg3[%c0_3, %c0_4] : memref<32x1xf32, #tpu.memory_space<vmem>>, vector<32x1xf32>
    %5 = vector.broadcast %4 : vector<32x1xf32> to vector<32x32xf32>
    %6 = arith.addf %3, %5 : vector<32x32xf32>
    %7 = math.absf %6 : vector<32x32xf32>
    %cst = arith.constant 0.000000e+00 : f32
    %8 = vector.broadcast %cst : f32 to vector<32x32xf32>
    %9 = arith.subf %8, %7 : vector<32x32xf32>
    %10 = math.exp %9 : vector<32x32xf32>
    %11 = arith.mulf %10, %10 : vector<32x32xf32>
    %cst_5 = arith.constant 0.000000e+00 : f32
    %12 = vector.broadcast %cst_5 : f32 to vector<32x32xf32>
    %13 = arith.cmpf oge, %6, %12 : vector<32x32xf32>
    %cst_6 = arith.constant 2.000000e+00 : f32
    %14 = vector.broadcast %cst_6 : f32 to vector<32x32xf32>
    %15 = arith.mulf %14, %10 : vector<32x32xf32>
    %cst_7 = arith.constant 1.000000e+00 : f32
    %16 = vector.broadcast %cst_7 : f32 to vector<32x32xf32>
    %17 = arith.addf %15, %16 : vector<32x32xf32>
    %cst_8 = arith.constant 2.000000e+00 : f32
    %18 = vector.broadcast %cst_8 : f32 to vector<32x32xf32>
    %19 = arith.mulf %18, %10 : vector<32x32xf32>
    %20 = arith.addf %11, %19 : vector<32x32xf32>
    %21 = arith.select %13, %17, %20 : vector<32x32xi1>, vector<32x32xf32>
    %cst_9 = arith.constant 2.000000e+00 : f32
    %22 = vector.broadcast %cst_9 : f32 to vector<32x32xf32>
    %23 = arith.mulf %22, %11 : vector<32x32xf32>
    %cst_10 = arith.constant 2.000000e+00 : f32
    %24 = vector.broadcast %cst_10 : f32 to vector<32x32xf32>
    %25 = arith.mulf %24, %10 : vector<32x32xf32>
    %26 = arith.addf %23, %25 : vector<32x32xf32>
    %cst_11 = arith.constant 1.000000e+00 : f32
    %27 = vector.broadcast %cst_11 : f32 to vector<32x32xf32>
    %28 = arith.addf %26, %27 : vector<32x32xf32>
    %cst_12 = arith.constant 2.000000e+00 : f32
    %29 = vector.broadcast %cst_12 : f32 to vector<32x32xf32>
    %30 = arith.mulf %29, %10 : vector<32x32xf32>
    %31 = arith.addf %11, %30 : vector<32x32xf32>
    %cst_13 = arith.constant 2.000000e+00 : f32
    %32 = vector.broadcast %cst_13 : f32 to vector<32x32xf32>
    %33 = arith.addf %31, %32 : vector<32x32xf32>
    %34 = arith.select %13, %28, %33 : vector<32x32xi1>, vector<32x32xf32>
    %35 = arith.mulf %6, %21 : vector<32x32xf32>
    %36 = tpu.reciprocal %34 {approx = true} : vector<32x32xf32> -> vector<32x32xf32>
    %37 = arith.mulf %35, %36 : vector<32x32xf32>
    %38 = arith.truncf %37 : vector<32x32xf32> to vector<32x32xbf16>
    %c0_14 = arith.constant 0 : index
    %c0_15 = arith.constant 0 : index
    %39 = vector.load %arg4[%c0_14, %c0_15] : memref<32x32xbf16, #tpu.memory_space<vmem>>, vector<32x32xbf16>
    tpu.vector_store %arg4[%c0_14, %c0_15], %38 {strides = array<i32>} : memref<32x32xbf16, #tpu.memory_space<vmem>>, vector<32x32xbf16>,
    return
  }
  func.func @transform_0(%arg0: i32) -> (i32, i32) {
    %c0_i32 = arith.constant 0 : i32
    %c0_i32_0 = arith.constant 0 : i32
    return %c0_i32, %arg0 : i32, i32
  }
  func.func @transform_1(%arg0: i32) -> (i32, i32) {
    %c0_i32 = arith.constant 0 : i32
    %c0_i32_0 = arith.constant 0 : i32
    %c0_i32_1 = arith.constant 0 : i32
    return %c0_i32, %c0_i32_0 : i32, i32
  }
  func.func @transform_2(%arg0: i32) -> (i32, i32) {
    %c0_i32 = arith.constant 0 : i32
    %c0_i32_0 = arith.constant 0 : i32
    %c0_i32_1 = arith.constant 0 : i32
    return %c0_i32, %c0_i32_0 : i32, i32
  }
  func.func @transform_3(%arg0: i32) -> (i32, i32) {
    %c0_i32 = arith.constant 0 : i32
    %c0_i32_0 = arith.constant 0 : i32
    return %c0_i32, %arg0 : i32, i32
  }
}

module attributes {stable_mosaic.version = 11 : i64} {
  func.func @_gemm_bias_stats_kernel(%arg0: i32, %arg1: memref<32x288xbf16, #tpu.memory_space<vmem>>, %arg2: memref<32x1xf32, #tpu.memory_space<vmem>>, %arg3: memref<288x32xbf16, #tpu.memory_space<vmem>>, %arg4: memref<32x32xf32, #tpu.memory_space<vmem>>, %arg5: memref<32x1xf32, #tpu.memory_space<vmem>>, %arg6: memref<32x1xf32, #tpu.memory_space<vmem>>) attributes {dimension_semantics = [#tpu.dimension_semantics<arbitrary>], iteration_bounds = array<i64: 1>, scalar_prefetch = 0 : i64, scratch_operands = 0 : i64, tpu.core_type = #tpu.core_type<tc>, window_params = [{pipeline_mode = #tpu.pipeline_mode<synchronous>, transform_indices = @transform_0, window_bounds = array<i64: 32, 288>}, {pipeline_mode = #tpu.pipeline_mode<synchronous>, transform_indices = @transform_1, window_bounds = array<i64: 32, 1>}, {transform_indices = @transform_2, window_bounds = array<i64: 288, 32>}, {transform_indices = @transform_3, window_bounds = array<i64: 32, 32>}, {pipeline_mode = #tpu.pipeline_mode<synchronous>, transform_indices = @transform_4, window_bounds = array<i64: 32, 1>}, {pipeline_mode = #tpu.pipeline_mode<synchronous>, transform_indices = @transform_5, window_bounds = array<i64: 32, 1>}]} {
    %c0 = arith.constant 0 : index
    %c0_0 = arith.constant 0 : index
    %0 = vector.load %arg1[%c0, %c0_0] : memref<32x288xbf16, #tpu.memory_space<vmem>>, vector<32x288xbf16>
    %c0_1 = arith.constant 0 : index
    %c0_2 = arith.constant 0 : index
    %1 = vector.load %arg3[%c0_1, %c0_2] : memref<288x32xbf16, #tpu.memory_space<vmem>>, vector<288x32xbf16>
    %cst = arith.constant dense<0.000000e+00> : vector<32x32xf32>
    %2 = tpu.matmul %0, %1, %cst {dimension_numbers = #tpu.dot_dimension_numbers<[1], [0], [0], [1], [0, 0, 1, 1], [], []>} : vector<32x288xbf16>, vector<288x32xbf16>, vector<32x32xf32> -> vector<32x32xf32>
    %c0_3 = arith.constant 0 : index
    %c0_4 = arith.constant 0 : index
    %3 = vector.load %arg2[%c0_3, %c0_4] : memref<32x1xf32, #tpu.memory_space<vmem>>, vector<32x1xf32>
    %4 = vector.broadcast %3 : vector<32x1xf32> to vector<32x32xf32>
    %5 = arith.addf %2, %4 : vector<32x32xf32>
    %c0_5 = arith.constant 0 : index
    %c0_6 = arith.constant 0 : index
    %6 = vector.load %arg4[%c0_5, %c0_6] : memref<32x32xf32, #tpu.memory_space<vmem>>, vector<32x32xf32>
    tpu.vector_store %arg4[%c0_5, %c0_6], %5 {strides = array<i32>} : memref<32x32xf32, #tpu.memory_space<vmem>>, vector<32x32xf32>,
    %c0_i32 = arith.constant 0 : i32
    %7 = arith.cmpi eq, %arg0, %c0_i32 : i32
    %8 = arith.extui %7 : i1 to i32
    %c0_i32_7 = arith.constant 0 : i32
    %9 = arith.cmpi ne, %8, %c0_i32_7 : i32
    scf.if %9 {
      %cst_18 = arith.constant 0.000000e+00 : f32
      %21 = vector.broadcast %cst_18 : f32 to vector<32x1xf32>
      %c0_19 = arith.constant 0 : index
      %c0_20 = arith.constant 0 : index
      %22 = vector.load %arg5[%c0_19, %c0_20] : memref<32x1xf32, #tpu.memory_space<vmem>>, vector<32x1xf32>
      tpu.vector_store %arg5[%c0_19, %c0_20], %21 {strides = array<i32>} : memref<32x1xf32, #tpu.memory_space<vmem>>, vector<32x1xf32>,
      %cst_21 = arith.constant 0.000000e+00 : f32
      %23 = vector.broadcast %cst_21 : f32 to vector<32x1xf32>
      %c0_22 = arith.constant 0 : index
      %c0_23 = arith.constant 0 : index
      %24 = vector.load %arg6[%c0_22, %c0_23] : memref<32x1xf32, #tpu.memory_space<vmem>>, vector<32x1xf32>
      tpu.vector_store %arg6[%c0_22, %c0_23], %23 {strides = array<i32>} : memref<32x1xf32, #tpu.memory_space<vmem>>, vector<32x1xf32>,
    } else {
    }
    %c0_8 = arith.constant 0 : index
    %c0_9 = arith.constant 0 : index
    %10 = vector.load %arg5[%c0_8, %c0_9] : memref<32x1xf32, #tpu.memory_space<vmem>>, vector<32x1xf32>
    %cst_10 = arith.constant dense<0.000000e+00> : vector<32xf32>
    %11 = vector.multi_reduction <add>, %5, %cst_10 [1] : vector<32x32xf32> to vector<32xf32>
    %12 = vector.shape_cast %11 : vector<32xf32> to vector<32x1xf32>
    %13 = arith.addf %10, %12 : vector<32x1xf32>
    %c0_11 = arith.constant 0 : index
    %c0_12 = arith.constant 0 : index
    %14 = vector.load %arg5[%c0_11, %c0_12] : memref<32x1xf32, #tpu.memory_space<vmem>>, vector<32x1xf32>
    tpu.vector_store %arg5[%c0_11, %c0_12], %13 {strides = array<i32>} : memref<32x1xf32, #tpu.memory_space<vmem>>, vector<32x1xf32>,
    %c0_13 = arith.constant 0 : index
    %c0_14 = arith.constant 0 : index
    %15 = vector.load %arg6[%c0_13, %c0_14] : memref<32x1xf32, #tpu.memory_space<vmem>>, vector<32x1xf32>
    %16 = arith.mulf %5, %5 : vector<32x32xf32>
    %cst_15 = arith.constant dense<0.000000e+00> : vector<32xf32>
    %17 = vector.multi_reduction <add>, %16, %cst_15 [1] : vector<32x32xf32> to vector<32xf32>
    %18 = vector.shape_cast %17 : vector<32xf32> to vector<32x1xf32>
    %19 = arith.addf %15, %18 : vector<32x1xf32>
    %c0_16 = arith.constant 0 : index
    %c0_17 = arith.constant 0 : index
    %20 = vector.load %arg6[%c0_16, %c0_17] : memref<32x1xf32, #tpu.memory_space<vmem>>, vector<32x1xf32>
    tpu.vector_store %arg6[%c0_16, %c0_17], %19 {strides = array<i32>} : memref<32x1xf32, #tpu.memory_space<vmem>>, vector<32x1xf32>,
    return
  }
  func.func @transform_0(%arg0: i32) -> (i32, i32) {
    %c0_i32 = arith.constant 0 : i32
    %c0_i32_0 = arith.constant 0 : i32
    %c0_i32_1 = arith.constant 0 : i32
    return %c0_i32, %c0_i32_0 : i32, i32
  }
  func.func @transform_1(%arg0: i32) -> (i32, i32) {
    %c0_i32 = arith.constant 0 : i32
    %c0_i32_0 = arith.constant 0 : i32
    %c0_i32_1 = arith.constant 0 : i32
    return %c0_i32, %c0_i32_0 : i32, i32
  }
  func.func @transform_2(%arg0: i32) -> (i32, i32) {
    %c0_i32 = arith.constant 0 : i32
    %c0_i32_0 = arith.constant 0 : i32
    return %c0_i32, %arg0 : i32, i32
  }
  func.func @transform_3(%arg0: i32) -> (i32, i32) {
    %c0_i32 = arith.constant 0 : i32
    %c0_i32_0 = arith.constant 0 : i32
    return %c0_i32, %arg0 : i32, i32
  }
  func.func @transform_4(%arg0: i32) -> (i32, i32) {
    %c0_i32 = arith.constant 0 : i32
    %c0_i32_0 = arith.constant 0 : i32
    %c0_i32_1 = arith.constant 0 : i32
    return %c0_i32, %c0_i32_0 : i32, i32
  }
  func.func @transform_5(%arg0: i32) -> (i32, i32) {
    %c0_i32 = arith.constant 0 : i32
    %c0_i32_0 = arith.constant 0 : i32
    %c0_i32_1 = arith.constant 0 : i32
    return %c0_i32, %c0_i32_0 : i32, i32
  }
}

module attributes {stable_mosaic.version = 11 : i64} {
  func.func @_gemm_bias_act_kernel(%arg0: i32, %arg1: i32, %arg2: memref<1x32x288xbf16, #tpu.memory_space<vmem>>, %arg3: memref<1x32x1xf32, #tpu.memory_space<vmem>>, %arg4: memref<1x288x8xbf16, #tpu.memory_space<vmem>>, %arg5: memref<1x32x8xbf16, #tpu.memory_space<vmem>>) attributes {dimension_semantics = [#tpu.dimension_semantics<parallel>, #tpu.dimension_semantics<parallel>], iteration_bounds = array<i64: 4, 1>, scalar_prefetch = 0 : i64, scratch_operands = 0 : i64, tpu.core_type = #tpu.core_type<tc>, window_params = [{transform_indices = @transform_0, window_bounds = array<i64: 1, 32, 288>}, {transform_indices = @transform_1, window_bounds = array<i64: 1, 32, 1>}, {transform_indices = @transform_2, window_bounds = array<i64: 1, 288, 8>}, {transform_indices = @transform_3, window_bounds = array<i64: 1, 32, 8>}]} {
    %c0 = arith.constant 0 : index
    %c0_0 = arith.constant 0 : index
    %c0_1 = arith.constant 0 : index
    %0 = vector.load %arg2[%c0, %c0_0, %c0_1] : memref<1x32x288xbf16, #tpu.memory_space<vmem>>, vector<1x32x288xbf16>
    %1 = vector.shape_cast %0 : vector<1x32x288xbf16> to vector<32x288xbf16>
    %c0_2 = arith.constant 0 : index
    %c0_3 = arith.constant 0 : index
    %c0_4 = arith.constant 0 : index
    %2 = vector.load %arg4[%c0_2, %c0_3, %c0_4] : memref<1x288x8xbf16, #tpu.memory_space<vmem>>, vector<1x288x8xbf16>
    %3 = vector.shape_cast %2 : vector<1x288x8xbf16> to vector<288x8xbf16>
    %cst = arith.constant dense<0.000000e+00> : vector<32x8xf32>
    %4 = tpu.matmul %1, %3, %cst {dimension_numbers = #tpu.dot_dimension_numbers<[1], [0], [0], [1], [0, 0, 1, 1], [], []>} : vector<32x288xbf16>, vector<288x8xbf16>, vector<32x8xf32> -> vector<32x8xf32>
    %c0_5 = arith.constant 0 : index
    %c0_6 = arith.constant 0 : index
    %c0_7 = arith.constant 0 : index
    %5 = vector.load %arg3[%c0_5, %c0_6, %c0_7] : memref<1x32x1xf32, #tpu.memory_space<vmem>>, vector<1x32x1xf32>
    %6 = vector.shape_cast %5 : vector<1x32x1xf32> to vector<32x1xf32>
    %7 = vector.broadcast %6 : vector<32x1xf32> to vector<32x8xf32>
    %8 = arith.addf %4, %7 : vector<32x8xf32>
    %9 = math.absf %8 : vector<32x8xf32>
    %cst_8 = arith.constant 0.000000e+00 : f32
    %10 = vector.broadcast %cst_8 : f32 to vector<32x8xf32>
    %11 = arith.subf %10, %9 : vector<32x8xf32>
    %12 = math.exp %11 : vector<32x8xf32>
    %13 = arith.mulf %12, %12 : vector<32x8xf32>
    %cst_9 = arith.constant 0.000000e+00 : f32
    %14 = vector.broadcast %cst_9 : f32 to vector<32x8xf32>
    %15 = arith.cmpf oge, %8, %14 : vector<32x8xf32>
    %cst_10 = arith.constant 2.000000e+00 : f32
    %16 = vector.broadcast %cst_10 : f32 to vector<32x8xf32>
    %17 = arith.mulf %16, %12 : vector<32x8xf32>
    %cst_11 = arith.constant 1.000000e+00 : f32
    %18 = vector.broadcast %cst_11 : f32 to vector<32x8xf32>
    %19 = arith.addf %17, %18 : vector<32x8xf32>
    %cst_12 = arith.constant 2.000000e+00 : f32
    %20 = vector.broadcast %cst_12 : f32 to vector<32x8xf32>
    %21 = arith.mulf %20, %12 : vector<32x8xf32>
    %22 = arith.addf %13, %21 : vector<32x8xf32>
    %23 = arith.select %15, %19, %22 : vector<32x8xi1>, vector<32x8xf32>
    %cst_13 = arith.constant 2.000000e+00 : f32
    %24 = vector.broadcast %cst_13 : f32 to vector<32x8xf32>
    %25 = arith.mulf %24, %13 : vector<32x8xf32>
    %cst_14 = arith.constant 2.000000e+00 : f32
    %26 = vector.broadcast %cst_14 : f32 to vector<32x8xf32>
    %27 = arith.mulf %26, %12 : vector<32x8xf32>
    %28 = arith.addf %25, %27 : vector<32x8xf32>
    %cst_15 = arith.constant 1.000000e+00 : f32
    %29 = vector.broadcast %cst_15 : f32 to vector<32x8xf32>
    %30 = arith.addf %28, %29 : vector<32x8xf32>
    %cst_16 = arith.constant 2.000000e+00 : f32
    %31 = vector.broadcast %cst_16 : f32 to vector<32x8xf32>
    %32 = arith.mulf %31, %12 : vector<32x8xf32>
    %33 = arith.addf %13, %32 : vector<32x8xf32>
    %cst_17 = arith.constant 2.000000e+00 : f32
    %34 = vector.broadcast %cst_17 : f32 to vector<32x8xf32>
    %35 = arith.addf %33, %34 : vector<32x8xf32>
    %36 = arith.select %15, %30, %35 : vector<32x8xi1>, vector<32x8xf32>
    %37 = arith.mulf %8, %23 : vector<32x8xf32>
    %38 = tpu.reciprocal %36 {approx = true} : vector<32x8xf32> -> vector<32x8xf32>
    %39 = arith.mulf %37, %38 : vector<32x8xf32>
    %40 = arith.truncf %39 : vector<32x8xf32> to vector<32x8xbf16>
    %c0_18 = arith.constant 0 : index
    %c0_19 = arith.constant 0 : index
    %c0_20 = arith.constant 0 : index
    %41 = vector.load %arg5[%c0_18, %c0_19, %c0_20] : memref<1x32x8xbf16, #tpu.memory_space<vmem>>, vector<1x32x8xbf16>
    %42 = vector.shape_cast %41 : vector<1x32x8xbf16> to vector<32x8xbf16>
    %43 = vector.shape_cast %40 : vector<32x8xbf16> to vector<1x32x8xbf16>
    tpu.vector_store %arg5[%c0_18, %c0_19, %c0_20], %43 {strides = array<i32>} : memref<1x32x8xbf16, #tpu.memory_space<vmem>>, vector<1x32x8xbf16>,
    return
  }
  func.func @transform_0(%arg0: i32, %arg1: i32) -> (i32, i32, i32) {
    %c0_i32 = arith.constant 0 : i32
    %c0_i32_0 = arith.constant 0 : i32
    %c0_i32_1 = arith.constant 0 : i32
    return %arg0, %c0_i32, %c0_i32_0 : i32, i32, i32
  }
  func.func @transform_1(%arg0: i32, %arg1: i32) -> (i32, i32, i32) {
    %c0_i32 = arith.constant 0 : i32
    %c0_i32_0 = arith.constant 0 : i32
    %c0_i32_1 = arith.constant 0 : i32
    return %arg0, %c0_i32, %c0_i32_0 : i32, i32, i32
  }
  func.func @transform_2(%arg0: i32, %arg1: i32) -> (i32, i32, i32) {
    %c0_i32 = arith.constant 0 : i32
    %c0_i32_0 = arith.constant 0 : i32
    %c0_i32_1 = arith.constant 0 : i32
    return %c0_i32, %c0_i32_0, %arg1 : i32, i32, i32
  }
  func.func @transform_3(%arg0: i32, %arg1: i32) -> (i32, i32, i32) {
    %c0_i32 = arith.constant 0 : i32
    %c0_i32_0 = arith.constant 0 : i32
    return %arg0, %c0_i32, %arg1 : i32, i32, i32
  }
}

module attributes {stable_mosaic.version = 11 : i64} {
  func.func @_gemm_bias_act_kernel(%arg0: i32, %arg1: i32, %arg2: memref<1x32x288xbf16, #tpu.memory_space<vmem>>, %arg3: memref<1x32x1xf32, #tpu.memory_space<vmem>>, %arg4: memref<1x288x2xbf16, #tpu.memory_space<vmem>>, %arg5: memref<1x32x2xbf16, #tpu.memory_space<vmem>>) attributes {dimension_semantics = [#tpu.dimension_semantics<parallel>, #tpu.dimension_semantics<parallel>], iteration_bounds = array<i64: 4, 1>, scalar_prefetch = 0 : i64, scratch_operands = 0 : i64, tpu.core_type = #tpu.core_type<tc>, window_params = [{transform_indices = @transform_0, window_bounds = array<i64: 1, 32, 288>}, {transform_indices = @transform_1, window_bounds = array<i64: 1, 32, 1>}, {transform_indices = @transform_2, window_bounds = array<i64: 1, 288, 2>}, {transform_indices = @transform_3, window_bounds = array<i64: 1, 32, 2>}]} {
    %c0 = arith.constant 0 : index
    %c0_0 = arith.constant 0 : index
    %c0_1 = arith.constant 0 : index
    %0 = vector.load %arg2[%c0, %c0_0, %c0_1] : memref<1x32x288xbf16, #tpu.memory_space<vmem>>, vector<1x32x288xbf16>
    %1 = vector.shape_cast %0 : vector<1x32x288xbf16> to vector<32x288xbf16>
    %c0_2 = arith.constant 0 : index
    %c0_3 = arith.constant 0 : index
    %c0_4 = arith.constant 0 : index
    %2 = vector.load %arg4[%c0_2, %c0_3, %c0_4] : memref<1x288x2xbf16, #tpu.memory_space<vmem>>, vector<1x288x2xbf16>
    %3 = vector.shape_cast %2 : vector<1x288x2xbf16> to vector<288x2xbf16>
    %cst = arith.constant dense<0.000000e+00> : vector<32x2xf32>
    %4 = tpu.matmul %1, %3, %cst {dimension_numbers = #tpu.dot_dimension_numbers<[1], [0], [0], [1], [0, 0, 1, 1], [], []>} : vector<32x288xbf16>, vector<288x2xbf16>, vector<32x2xf32> -> vector<32x2xf32>
    %c0_5 = arith.constant 0 : index
    %c0_6 = arith.constant 0 : index
    %c0_7 = arith.constant 0 : index
    %5 = vector.load %arg3[%c0_5, %c0_6, %c0_7] : memref<1x32x1xf32, #tpu.memory_space<vmem>>, vector<1x32x1xf32>
    %6 = vector.shape_cast %5 : vector<1x32x1xf32> to vector<32x1xf32>
    %7 = vector.broadcast %6 : vector<32x1xf32> to vector<32x2xf32>
    %8 = arith.addf %4, %7 : vector<32x2xf32>
    %9 = math.absf %8 : vector<32x2xf32>
    %cst_8 = arith.constant 0.000000e+00 : f32
    %10 = vector.broadcast %cst_8 : f32 to vector<32x2xf32>
    %11 = arith.subf %10, %9 : vector<32x2xf32>
    %12 = math.exp %11 : vector<32x2xf32>
    %13 = arith.mulf %12, %12 : vector<32x2xf32>
    %cst_9 = arith.constant 0.000000e+00 : f32
    %14 = vector.broadcast %cst_9 : f32 to vector<32x2xf32>
    %15 = arith.cmpf oge, %8, %14 : vector<32x2xf32>
    %cst_10 = arith.constant 2.000000e+00 : f32
    %16 = vector.broadcast %cst_10 : f32 to vector<32x2xf32>
    %17 = arith.mulf %16, %12 : vector<32x2xf32>
    %cst_11 = arith.constant 1.000000e+00 : f32
    %18 = vector.broadcast %cst_11 : f32 to vector<32x2xf32>
    %19 = arith.addf %17, %18 : vector<32x2xf32>
    %cst_12 = arith.constant 2.000000e+00 : f32
    %20 = vector.broadcast %cst_12 : f32 to vector<32x2xf32>
    %21 = arith.mulf %20, %12 : vector<32x2xf32>
    %22 = arith.addf %13, %21 : vector<32x2xf32>
    %23 = arith.select %15, %19, %22 : vector<32x2xi1>, vector<32x2xf32>
    %cst_13 = arith.constant 2.000000e+00 : f32
    %24 = vector.broadcast %cst_13 : f32 to vector<32x2xf32>
    %25 = arith.mulf %24, %13 : vector<32x2xf32>
    %cst_14 = arith.constant 2.000000e+00 : f32
    %26 = vector.broadcast %cst_14 : f32 to vector<32x2xf32>
    %27 = arith.mulf %26, %12 : vector<32x2xf32>
    %28 = arith.addf %25, %27 : vector<32x2xf32>
    %cst_15 = arith.constant 1.000000e+00 : f32
    %29 = vector.broadcast %cst_15 : f32 to vector<32x2xf32>
    %30 = arith.addf %28, %29 : vector<32x2xf32>
    %cst_16 = arith.constant 2.000000e+00 : f32
    %31 = vector.broadcast %cst_16 : f32 to vector<32x2xf32>
    %32 = arith.mulf %31, %12 : vector<32x2xf32>
    %33 = arith.addf %13, %32 : vector<32x2xf32>
    %cst_17 = arith.constant 2.000000e+00 : f32
    %34 = vector.broadcast %cst_17 : f32 to vector<32x2xf32>
    %35 = arith.addf %33, %34 : vector<32x2xf32>
    %36 = arith.select %15, %30, %35 : vector<32x2xi1>, vector<32x2xf32>
    %37 = arith.mulf %8, %23 : vector<32x2xf32>
    %38 = tpu.reciprocal %36 {approx = true} : vector<32x2xf32> -> vector<32x2xf32>
    %39 = arith.mulf %37, %38 : vector<32x2xf32>
    %40 = arith.truncf %39 : vector<32x2xf32> to vector<32x2xbf16>
    %c0_18 = arith.constant 0 : index
    %c0_19 = arith.constant 0 : index
    %c0_20 = arith.constant 0 : index
    %41 = vector.load %arg5[%c0_18, %c0_19, %c0_20] : memref<1x32x2xbf16, #tpu.memory_space<vmem>>, vector<1x32x2xbf16>
    %42 = vector.shape_cast %41 : vector<1x32x2xbf16> to vector<32x2xbf16>
    %43 = vector.shape_cast %40 : vector<32x2xbf16> to vector<1x32x2xbf16>
    tpu.vector_store %arg5[%c0_18, %c0_19, %c0_20], %43 {strides = array<i32>} : memref<1x32x2xbf16, #tpu.memory_space<vmem>>, vector<1x32x2xbf16>,
    return
  }
  func.func @transform_0(%arg0: i32, %arg1: i32) -> (i32, i32, i32) {
    %c0_i32 = arith.constant 0 : i32
    %c0_i32_0 = arith.constant 0 : i32
    %c0_i32_1 = arith.constant 0 : i32
    return %arg0, %c0_i32, %c0_i32_0 : i32, i32, i32
  }
  func.func @transform_1(%arg0: i32, %arg1: i32) -> (i32, i32, i32) {
    %c0_i32 = arith.constant 0 : i32
    %c0_i32_0 = arith.constant 0 : i32
    %c0_i32_1 = arith.constant 0 : i32
    return %arg0, %c0_i32, %c0_i32_0 : i32, i32, i32
  }
  func.func @transform_2(%arg0: i32, %arg1: i32) -> (i32, i32, i32) {
    %c0_i32 = arith.constant 0 : i32
    %c0_i32_0 = arith.constant 0 : i32
    return %arg0, %c0_i32, %arg1 : i32, i32, i32
  }
  func.func @transform_3(%arg0: i32, %arg1: i32) -> (i32, i32, i32) {
    %c0_i32 = arith.constant 0 : i32
    %c0_i32_0 = arith.constant 0 : i32
    return %arg0, %c0_i32, %arg1 : i32, i32, i32
  }
}

module attributes {stable_mosaic.version = 11 : i64} {
  func.func @_gemm_bias_act_kernel(%arg0: i32, %arg1: i32, %arg2: memref<1x32x32xbf16, #tpu.memory_space<vmem>>, %arg3: memref<1x32x1xf32, #tpu.memory_space<vmem>>, %arg4: memref<1x32x2xbf16, #tpu.memory_space<vmem>>, %arg5: memref<1x32x2xf32, #tpu.memory_space<vmem>>) attributes {dimension_semantics = [#tpu.dimension_semantics<parallel>, #tpu.dimension_semantics<parallel>], iteration_bounds = array<i64: 4, 1>, scalar_prefetch = 0 : i64, scratch_operands = 0 : i64, tpu.core_type = #tpu.core_type<tc>, window_params = [{transform_indices = @transform_0, window_bounds = array<i64: 1, 32, 32>}, {transform_indices = @transform_1, window_bounds = array<i64: 1, 32, 1>}, {transform_indices = @transform_2, window_bounds = array<i64: 1, 32, 2>}, {transform_indices = @transform_3, window_bounds = array<i64: 1, 32, 2>}]} {
    %c0 = arith.constant 0 : index
    %c0_0 = arith.constant 0 : index
    %c0_1 = arith.constant 0 : index
    %0 = vector.load %arg2[%c0, %c0_0, %c0_1] : memref<1x32x32xbf16, #tpu.memory_space<vmem>>, vector<1x32x32xbf16>
    %1 = vector.shape_cast %0 : vector<1x32x32xbf16> to vector<32x32xbf16>
    %c0_2 = arith.constant 0 : index
    %c0_3 = arith.constant 0 : index
    %c0_4 = arith.constant 0 : index
    %2 = vector.load %arg4[%c0_2, %c0_3, %c0_4] : memref<1x32x2xbf16, #tpu.memory_space<vmem>>, vector<1x32x2xbf16>
    %3 = vector.shape_cast %2 : vector<1x32x2xbf16> to vector<32x2xbf16>
    %cst = arith.constant dense<0.000000e+00> : vector<32x2xf32>
    %4 = tpu.matmul %1, %3, %cst {dimension_numbers = #tpu.dot_dimension_numbers<[1], [0], [0], [1], [0, 0, 1, 1], [], []>} : vector<32x32xbf16>, vector<32x2xbf16>, vector<32x2xf32> -> vector<32x2xf32>
    %c0_5 = arith.constant 0 : index
    %c0_6 = arith.constant 0 : index
    %c0_7 = arith.constant 0 : index
    %5 = vector.load %arg3[%c0_5, %c0_6, %c0_7] : memref<1x32x1xf32, #tpu.memory_space<vmem>>, vector<1x32x1xf32>
    %6 = vector.shape_cast %5 : vector<1x32x1xf32> to vector<32x1xf32>
    %7 = vector.broadcast %6 : vector<32x1xf32> to vector<32x2xf32>
    %8 = arith.addf %4, %7 : vector<32x2xf32>
    %c0_8 = arith.constant 0 : index
    %c0_9 = arith.constant 0 : index
    %c0_10 = arith.constant 0 : index
    %9 = vector.load %arg5[%c0_8, %c0_9, %c0_10] : memref<1x32x2xf32, #tpu.memory_space<vmem>>, vector<1x32x2xf32>
    %10 = vector.shape_cast %9 : vector<1x32x2xf32> to vector<32x2xf32>
    %11 = vector.shape_cast %8 : vector<32x2xf32> to vector<1x32x2xf32>
    tpu.vector_store %arg5[%c0_8, %c0_9, %c0_10], %11 {strides = array<i32>} : memref<1x32x2xf32, #tpu.memory_space<vmem>>, vector<1x32x2xf32>,
    return
  }
  func.func @transform_0(%arg0: i32, %arg1: i32) -> (i32, i32, i32) {
    %c0_i32 = arith.constant 0 : i32
    %c0_i32_0 = arith.constant 0 : i32
    %c0_i32_1 = arith.constant 0 : i32
    return %arg0, %c0_i32, %c0_i32_0 : i32, i32, i32
  }
  func.func @transform_1(%arg0: i32, %arg1: i32) -> (i32, i32, i32) {
    %c0_i32 = arith.constant 0 : i32
    %c0_i32_0 = arith.constant 0 : i32
    %c0_i32_1 = arith.constant 0 : i32
    return %arg0, %c0_i32, %c0_i32_0 : i32, i32, i32
  }
  func.func @transform_2(%arg0: i32, %arg1: i32) -> (i32, i32, i32) {
    %c0_i32 = arith.constant 0 : i32
    %c0_i32_0 = arith.constant 0 : i32
    return %arg0, %c0_i32, %arg1 : i32, i32, i32
  }
  func.func @transform_3(%arg0: i32, %arg1: i32) -> (i32, i32, i32) {
    %c0_i32 = arith.constant 0 : i32
    %c0_i32_0 = arith.constant 0 : i32
    return %arg0, %c0_i32, %arg1 : i32, i32, i32
  }
}

</mosaic_0001>

<bundles_post_ra>
// kernel: encoder_forward.12
= control target key start
LH: loop header
LB: loop body
LE: loop exit
PB: predicated region body
PF: predicated region fallthrough
CT: control target
= control target key end

     0   :  { %s353_s12 = smov 0   ;;  %s380_s0 = inlined_call_operand.vmem [shape: f32[8,512], index: 0, kind: input, shape index: {}]   ;;  %s381_s1 = inlined_call_operand.vmem [shape: f32[8,1], index: 1, kind: input, shape index: {}]   ;;  %s382_s2 = inlined_call_operand.vmem [shape: f32[8,1], index: 2, kind: input, shape index: {}]   ;;  %s383_s3 = inlined_call_operand.vmem [shape: bf16[8,512], index: 3, kind: output, shape index: {}]  }
   0x1 LB: > { %s293_s13 = sadd.s32 4294967295, %s330_s12   ;;  %p297_p0 = scmp.ge.s32.totalorder %s330_s12, 1  ;;  %s330_s12 = sphi %s353_s12, %s13_s12  }
   0x2   : > { %p138_p1 = scmp.lt.s32.totalorder %s330_s12, 3 }
   0x4   : > { %p139_p2 = pnand %p297_p0, %p138_p1 }
   0x5   : > { %v176_v0 = vld [vmem:[%s381_s1] sm:$0xff] (!%p139_p2)  ;;  %v332_v1 = vmov (!%p139_p2), 0   ;;  %s298_s18 = sshll.u32 (!%p139_p2), %s293_s13, 1 }
   0x6   : > { %142 = sbr.rel (%p139_p2) target bundleno = 184 (0xb8), region = 32  ;;  %315 = vset.pattern.permute.xlu0 (!%p139_p2), %v332_v1  ;;  %v184_v2 = vld [vmem:[%s382_s2] sm:$0xff] (!%p139_p2)  ;;  %p163_p3 = scmp.lt.s32.totalorder (!%p139_p2), %s298_s18, 3 }
   0x7   : > { %179 = vperm.xlu0 (!%p139_p2), %315, %v176_v0  }
   0xb   : > { %187 = vperm.xlu0 (!%p139_p2), %315, %v184_v2  }
   0xd   : > { %s385_s18 = smov (!%p163_p3, %s298_s18), 3 }
   0xe   : > { %s299_s19 = sshll.u32 %s385_s18, 3  ;;  %s301_s23 = sshll.u32 %s385_s18, 2 }
   0xf   : > { %s166_s22 = scalar_lea.vmem %s380_s0, %s299_s19  ;;  %s172_s26 = scalar_lea.vmem %s383_s3, %s301_s23 }
  0x10   : > { %v174_v4 = vld [vmem:[%s166_s22] sm:$0xff]  ;;  %v175_v5 = vld [vmem:[%s166_s22 + $0x8] sm:$0xff] }
  0x86   : > { %v180_v3 = vpop.permute.xlu0 %179 }
  0x87   : > { %v182_v6 = vmul.f32 %v180_v3, %v174_v4  ;;  %v183_v7 = vmul.f32 %v180_v3, %v175_v5 }
  0x8a   : > { %v188_v8 = vpop.permute.xlu0 %187 }
  0x8b   : > { %v190_v9 = vadd.f32 %v188_v8, %v182_v6  ;;  %v191_v10 = vadd.f32 %v188_v8, %v183_v7 }
  0x8d   : > { %v192_v11 = vand.u32 2147483647, %v190_v9  ;;  %v193_v12 = vand.u32 2147483647, %v191_v10  ;;  %vm202_vm0 = vcmp.ge.f32.partialorder %v190_v9, 0.0  ;;  %vm203_vm1 = vcmp.ge.f32.partialorder %v191_v10, 0.0 }
  0x8f   : > { %v194_v13 = vsub.f32 0.0, %v192_v11  ;;  %v195_v14 = vsub.f32 0.0, %v193_v12 }
  0x91   : > { %v196_v15 = vmul.f32 1.442695, %v194_v13  ;;  %v198_v16 = vmul.f32 1.442695, %v195_v14 }
  0x93   : > { %316 = vpow2.f32 %v196_v15 }
  0x94   : > { %318 = vpow2.f32 %v198_v16 }
  0x9d   : > { %v317_v17 = vpop.eup %316 }
  0x9e   : > { %v319_v18 = vpop.eup %318  ;;  %v200_v19 = vmul.f32 %v317_v17, %v317_v17  ;;  %v204_v20 = vmul.f32 2.0, %v317_v17 }
  0x9f   : > { %v201_v21 = vmul.f32 %v319_v18, %v319_v18  ;;  %v205_v22 = vmul.f32 2.0, %v319_v18 }
  0xa0   : > { %v208_v23 = vadd.f32 %v204_v20, %v200_v19  ;;  %v212_v24 = vmul.f32 2.0, %v200_v19  ;;  %v206_v35 = vadd.f32 1.0, %v204_v20 }
  0xa1   : > { %v209_v25 = vadd.f32 %v205_v22, %v201_v21  ;;  %v213_v26 = vmul.f32 2.0, %v201_v21  ;;  %v207_v36 = vadd.f32 1.0, %v205_v22 }
  0xa2   : > { %v214_v27 = vadd.f32 %v212_v24, %v204_v20  ;;  %v218_v30 = vadd.f32 2.0, %v208_v23  ;;  %v210_v37 = vsel %vm202_vm0, %v206_v35, %v208_v23 }
  0xa3   : > { %v215_v28 = vadd.f32 %v213_v26, %v205_v22  ;;  %v219_v32 = vadd.f32 2.0, %v209_v25  ;;  %v211_v38 = vsel %vm203_vm1, %v207_v36, %v209_v25  ;;  %v222_v39 = vmul.f32 %v210_v37, %v190_v9 }
  0xa4   : > { %v216_v29 = vadd.f32 1.0, %v214_v27  ;;  %v223_v41 = vmul.f32 %v211_v38, %v191_v10 }
  0xa5   : > { %v217_v31 = vadd.f32 1.0, %v215_v28 }
  0xa6   : > { %v220_v33 = vsel %vm202_vm0, %v216_v29, %v218_v30 }
  0xa7   : > { %v221_v34 = vsel %vm203_vm1, %v217_v31, %v219_v32  ;;  %320 = vrcp.f32 %v220_v33 }
  0xa8   : > { %322 = vrcp.f32 %v221_v34 }
  0xb1   : > { %v321_v40 = vpop.eup %320 }
  0xb2   : > { %v323_v42 = vpop.eup %322  ;;  %v226_v43 = vmul.f32 %v321_v40, %v222_v39 }
  0xb3   : > { %v227_v44 = vmul.f32 %v323_v42, %v223_v41 }
  0xb5   : > { %v305_v45 = vpack.c.bf16 %v227_v44, %v226_v43 }
  0xb7   : > { %236 = vst [vmem:[%s172_s26] sm:$0xff] %v305_v45 }
  0xb8 PF: > { %s13_s12 = sadd.s32 1, %s330_s12  }
  0xb9   : > { %p10_p4 = scmp.ge.s32.totalorder %s13_s12, 4  }
  0xbb   :  { %12 = sbr.rel (!%p10_p4) target bundleno = 1 (0x1), region = 62 }

// kernel: encoder_forward.11
= control target key start
LH: loop header
LB: loop body
LE: loop exit
PB: predicated region body
PF: predicated region fallthrough
CT: control target
= control target key end

     0   :  { %s575_s18 = smov 0   ;;  %s577_s19 = smov 0   ;;  %s653_s0 = inlined_call_operand.vmem [shape: bf16[8,36], index: 0, kind: input, shape index: {}]   ;;  %s654_s1 = inlined_call_operand.vmem [shape: f32[8,1], index: 1, kind: input, shape index: {}]   ;;  %s655_s2 = inlined_call_operand.vmem [shape: bf16[36,512], index: 2, kind: input, shape index: {}]   ;;  %s656_s3 = inlined_call_operand.vmem [shape: f32[8,512], index: 3, kind: output, shape index: {0}]   ;;  %s657_s4 = inlined_call_operand.vmem [shape: f32[8,1], index: 4, kind: output, shape index: {1}]   ;;  %s658_s5 = inlined_call_operand.vmem [shape: f32[8,1], index: 5, kind: output, shape index: {2}]  }
   0x1   :  { %s579_s20 = smov 0  }
   0x2 LB: > { %s461_s21 = sadd.s32 4294967295, %s541_s20   ;;  %s592_s22 = sadd.s32 1, %s541_s20   ;;  %s541_s20 = sphi %s579_s20, %s661_s20   ;;  %s537_s19 = sphi %s577_s19, %s660_s19   ;;  %s533_s18 = sphi %s575_s18, %s659_s18  }
   0x3   : > { %s62_s23 = ssub.s32 %s541_s20, %s592_s22  ;;  %s65_s24 = sadd.s32 1, %s537_s19 }
   0x4   : > { %p63_p0 = scmp.eq.s32.totalorder %s62_s23, 0  ;;  %p72_p1 = scmp.ne.s32.totalorder %s537_s19, %s533_s18 }
   0x5   : > { %p73_p2 = scmp.eq.s32.totalorder %s541_s20, 0  ;;  %p464_p4 = scmp.ge.s32.totalorder %s541_s20, 2 }
   0x6   : > { %s601_s25 = scalar_select %p63_p0, %s537_s19, %s65_s24  }
   0x7   : > { %p74_p3 = por %p73_p2, %p72_p1  ;;  %172 = sbr.rel (%p464_p4) target bundleno = 21 (0x15), region = 24 }
   0xe   : > { %175 = sbr.rel (!%p74_p3) target bundleno = 21 (0x15), region = 28  ;;  %s177_s26 = sand.u32 (%p74_p3), 1, %s537_s19  }
   0xf   : > { %s481_s27 = sshll.u32 (%p74_p3), %s541_s20, 3  ;;  %s482_s28 = smul.u32 (%p74_p3), 40, %s177_s26 }
  0x10   : > { %s182_s6 = scalar_lea.vmem (%p74_p3), %s655_s2, %s481_s27 }
  0x11   : > { %v218_v0 = vld [vmem:[%s182_s6] sm:$0xff] (%p74_p3)  ;;  %v220_v1 = vld [vmem:[%s182_s6 + $0x10] sm:$0xff] (%p74_p3)  ;;  %s179_s7 = scalar_lea.vmem (%p74_p3), [#allocation2], %s482_s28 }
  0x12   : > { %v222_v2 = vld [vmem:[%s182_s6 + $0x20] sm:$0xff] (%p74_p3)  ;;  %v224_v3 = vld [vmem:[%s182_s6 + $0x30] sm:$0xff] (%p74_p3)  ;;  %219 = vst [vmem:[%s179_s7] sm:$0xff] (%p74_p3), %v218_v0  ;;  %221 = vst [vmem:[%s179_s7 + $0x8] sm:$0xff] (%p74_p3), %v220_v1 }
  0x13   : > { %v226_v4 = vld [vmem:[%s182_s6 + $0x40] sm:$0xff] (%p74_p3)  ;;  %223 = vst [vmem:[%s179_s7 + $0x10] sm:$0xff] (%p74_p3), %v222_v2  ;;  %225 = vst [vmem:[%s179_s7 + $0x18] sm:$0xff] (%p74_p3), %v224_v3 }
  0x14   : > { %227 = vst [vmem:[%s179_s7 + $0x20] sm:$0xff] (%p74_p3), %v226_v4 }
  0x15 PF: > { %p467_p5 = scmp.ge.s32.totalorder %s541_s20, 1  ;;  %p232_p6 = scmp.lt.s32.totalorder %s541_s20, 3 }
  0x17   : > { %p233_p7 = pnand %p467_p5, %p232_p6 }
  0x18   : > { %s239_s8 = sand.u32 (!%p233_p7), 1, %s533_s18   ;;  %v543_v5 = vmov (!%p233_p7), 0   ;;  %v280_v6 = vld [vmem:[%s654_s1] sm:$0xff] (!%p233_p7)  ;;  %vm315_vm0 = vcmask (!%p233_p7), 1041408   ;;  %vm311_vm1 = vcmask (!%p233_p7), 293888   ;;  %s468_s15 = sshll.u32 (!%p233_p7), %s461_s21, 1 }
  0x19   : > { %236 = sbr.rel (%p233_p7) target bundleno = 409 (0x199), region = 66  ;;  %354 = vmatprep.mubr.bf16.mxu0 (!%p233_p7), %v543_v5  ;;  %510 = vset.pattern.permute.xlu0 (!%p233_p7), %v543_v5  ;;  %v274_v15 = vld [vmem:[%s653_s0] sm:$0xf] (!%p233_p7)  ;;  %p268_p8 = scmp.lt.s32.totalorder (!%p233_p7), %s468_s15, 3 }
  0x1a   : > { %s483_s9 = smul.u32 (!%p233_p7), 40, %s239_s8  ;;  %283 = vperm.xlu0 (!%p233_p7), %510, %v280_v6   ;;  %p478_p9 = scmp.ne.s32.totalorder (!%p233_p7), %s461_s21, 0 }
  0x1c   : > { %s241_s12 = scalar_lea.vmem (!%p233_p7), [#allocation2], %s483_s9 }
  0x1d   : > { %v511_v7 = vld [vmem:[%s241_s12 + $0x4] ss:$8 sps:$4 sm:$0xff] (!%p233_p7)   ;;  %v513_v8 = vld [vmem:[%s241_s12] ss:$8 sps:$4 sm:$0xff] (!%p233_p7)   ;;  %v514_v9 = vld [vmem:[%s241_s12 + $0x14] ss:$8 sps:$4 sm:$0xff] (!%p233_p7)  }
  0x1e   : > { %322 = vmatprep.subr.bf16.mxu0 (!%p233_p7), %v511_v7  ;;  %v279_v10 = vld [vmem:[%s241_s12 + $0x20] sm:$0x33] (!%p233_p7)  ;;  %v516_v11 = vld [vmem:[%s241_s12 + $0x10] ss:$8 sps:$4 sm:$0xff] (!%p233_p7)  }
  0x1f   : > { %323 = vmatpush1.bf16.msra.mxu0 (!%p233_p7), %v513_v8  ;;  %v475_v12 = vcombine.high (!%p233_p7), %v279_v10, %v279_v10  ;;  %v474_v13 = vcombine.low (!%p233_p7), %v279_v10, %v279_v10 }
  0x20   : > { %324 = vmatprep.subr.bf16.mxu0 %v514_v9  ;;  %s663_s15 = smov (!%p268_p8, %s468_s15), 3  ;;  %vm369_vm2 = vcmask (!%p478_p9), 7168   ;;  %v544_v23 = vmov (!%p478_p9), 0.0  }
  0x21   : > { %v317_v14 = vsel %vm315_vm0, %v474_v13, 0  ;;  %s469_s16 = sshll.u32 %s663_s15, 3  ;;  %370 = vst.msk [vmem:[%s657_s4] sm:$0xff] (!%p478_p9), %vm369_vm2, %v544_v23  ;;  %371 = vst.msk [vmem:[%s658_s5] sm:$0xff] (!%p478_p9), %vm369_vm2, %v544_v23 }
  0x22   : > { %s271_s23 = scalar_lea.vmem %s656_s3, %s469_s16 }
  0x23   : > { %325 = vmatpush1.bf16.msra.mxu0 %v516_v11 }
  0x24   : > { %476 = vmatprep.subr.msk.bf16.mxu0 %vm315_vm0, %v475_v12 }
  0x27   : > { %327 = vmatpush1.bf16.msra.mxu0 %v317_v14 }
  0x2a   : > { %477 = vmatmul.mubr.msk.bf16.vlgmr.msra.gmra.mrb[0].mxu0 %vm311_vm1, %v274_v15 }
  0x99   : > { %v284_v16 = vpop.permute.xlu0 %283 }
  0xfb   : > { %368 = sbr.rel (%p478_p9) target bundleno = 258 (0x102), region = 74 }
  0xfd   : > { %v356_v17 = vpop.f32.mrb[0].mxu0 }
  0xfe   : > { %v357_v18 = vadd.f32 %v356_v17, %v284_v16  ;;  %v358_v19 = vpop.f32.mrb[1].mxu0 }
  0xff   : > { %v359_v20 = vadd.f32 %v358_v19, %v284_v16  ;;  %v360_v21 = vpop.f32.mrb[2].mxu0 }
 0x100   : > { %363 = vst [vmem:[%s271_s23] sm:$0xff] %v357_v18  ;;  %v361_v22 = vpop.f32.mrb[3].mxu0 }
 0x101   : > { %364 = vst [vmem:[%s271_s23 + $0x8] sm:$0xff] %v359_v20 }
 0x102 PF: > { %v373_v24 = vadd.f32 %v359_v20, %v357_v18  ;;  %v380_v25 = vmul.f32 %v357_v18, %v357_v18  ;;  %v381_v26 = vmul.f32 %v359_v20, %v359_v20  ;;  %v372_v28 = vld [vmem:[%s657_s4] sm:$0xff]  ;;  %vm377_vm3 = vcmask 7168  }
 0x103   : > { %v379_v31 = vld [vmem:[%s658_s5] sm:$0xff] }
 0x104   : > { %374 = vadd.xlane.f32.xlu0 %v373_v24  ;;  %v382_v27 = vadd.f32 %v381_v26, %v380_v25 }
 0x108   : > { %383 = vadd.xlane.f32.xlu0 %v382_v27 }
 0x191   : > { %v375_v29 = vpop.xlane.xlu0 %374 }
 0x192   : > { %v376_v30 = vadd.f32 %v375_v29, %v372_v28 }
 0x194   : > { %378 = vst.msk [vmem:[%s657_s4] sm:$0xff] %vm377_vm3, %v376_v30 }
 0x195   : > { %v384_v32 = vpop.xlane.xlu0 %383 }
 0x196   : > { %v385_v33 = vadd.f32 %v384_v32, %v379_v31 }
 0x198   : > { %386 = vst.msk [vmem:[%s658_s5] sm:$0xff] %vm377_vm3, %v385_v33 }
 0x199 PF: > { %p13_p10 = scmp.ge.s32.totalorder %s592_s22, 4   ;;  %s659_s18 = smov %s537_s19 }
 0x19a   : > { %s660_s19 = smov %s601_s25  ;;  %s661_s20 = smov %s592_s22 }
 0x19b   :  { %15 = sbr.rel (!%p13_p10) target bundleno = 2 (0x2), region = 125 }

// kernel: encoder_forward.13
= control target key start
LH: loop header
LB: loop body
LE: loop exit
PB: predicated region body
PF: predicated region fallthrough
CT: control target
= control target key end

     0   :  { %v205_v0 = vmov 0.0   ;;  %vm206_vm0 = vmmov 0   ;;  %v207_v2 = vmov 0   ;;  %vm77_vm1 = vcmask 1043456   ;;  %s312_s2 = inlined_call_operand.vmem [shape: bf16[72,128], index: 2, kind: input, shape index: {}]   ;;  %s313_s1 = inlined_call_operand.vmem [shape: f32[16,1], index: 1, kind: input, shape index: {}]   ;;  %s314_s0 = inlined_call_operand.vmem [shape: bf16[16,72], index: 0, kind: input, shape index: {}]   ;;  %s315_s4 = inlined_call_operand.vmem [shape: f32[16,1], index: 4, kind: output, shape index: {1}]   ;;  %s316_s3 = inlined_call_operand.vmem [shape: f32[16,128], index: 3, kind: output, shape index: {0}]   ;;  %s317_s5 = inlined_call_operand.vmem [shape: f32[16,1], index: 5, kind: output, shape index: {2}]  }
   0x1   :  { %181 = vmatprep.subr.bf16.mxu0 %v205_v0  ;;  %v199_v1 = vld [vmem:[%s312_s2] sm:$0xff]   ;;  %191 = vmatprep.mubr.msk.bf16.mxu0 %vm206_vm0, %v205_v0  ;;  %v200_v3 = vld [vmem:[%s312_s2 + $0x8] sm:$0xff]   ;;  %v201_v5 = vld [vmem:[%s312_s2 + $0x10] sm:$0xff]   ;;  %vm73_vm2 = vcmask 588800   ;;  %vm128_vm3 = vcmask 7168  }
   0x2   :  { %198 = vset.pattern.permute.xlu0 %v207_v2  ;;  %182 = vmatpush3.bf16.msra.mxu0 %v199_v1  ;;  %v29_v4 = vld [vmem:[%s313_s1] sm:$0xff]  ;;  %v30_v6 = vld [vmem:[%s313_s1 + $0x8] sm:$0xff]  ;;  %v202_v7 = vld [vmem:[%s312_s2 + $0x18] sm:$0xff]   ;;  %129 = vst.msk [vmem:[%s315_s4] sm:$0xff] %vm128_vm3, %v205_v0 }
   0x3   :  { %183 = vmatprep.subr.bf16.mxu0 %v205_v0  ;;  %33 = vperm.xlu0 %198, %v29_v4   ;;  %v203_v8 = vld [vmem:[%s312_s2 + $0x20] ss:$0 sps:$4 sm:$0xff]   ;;  %130 = vst.msk [vmem:[%s315_s4 + $0x8] sm:$0xff] %vm128_vm3, %v205_v0  ;;  %131 = vst.msk [vmem:[%s317_s5] sm:$0xff] %vm128_vm3, %v205_v0 }
   0x4   :  { %v79_v9 = vsel %vm77_vm1, %v203_v8, 0  ;;  %v204_v10 = vld [vmem:[%s314_s0] sm:$0xff]   ;;  %132 = vst.msk [vmem:[%s317_s5 + $0x8] sm:$0xff] %vm128_vm3, %v205_v0 }
   0x6   :  { %184 = vmatpush3.bf16.msra.mxu0 %v200_v3 }
   0x7   :  { %185 = vmatprep.subr.bf16.mxu0 %v205_v0  ;;  %38 = vperm.xlu0 %198, %v30_v6  }
   0x9   :  { %v133_v21 = vld [vmem:[%s315_s4] sm:$0xff] }
   0xa   :  { %186 = vmatpush3.bf16.msra.mxu0 %v201_v5  ;;  %v144_v23 = vld [vmem:[%s317_s5] sm:$0xff]  ;;  %v134_v26 = vld [vmem:[%s315_s4 + $0x8] sm:$0xff] }
   0xb   :  { %187 = vmatprep.subr.bf16.mxu0 %v205_v0  ;;  %v145_v30 = vld [vmem:[%s317_s5 + $0x8] sm:$0xff] }
   0xe   :  { %188 = vmatpush3.bf16.msra.mxu0 %v202_v7 }
   0xf   :  { %189 = vmatprep.subr.bf16.mxu0 %v205_v0 }
  0x12   :  { %190 = vmatpush3.bf16.msra.mxu0 %v79_v9 }
  0x15   :  { %192 = vmatmul.mubr.msk.bf16.vlgmr.msra.gmra.mrb[0].mxu0 %vm73_vm2, %v204_v10 }
  0x82   :  { %v34_v11 = vpop.permute.xlu0 %33 }
  0x86   :  { %v39_v15 = vpop.permute.xlu0 %38 }
  0xe8   :  { %v115_v12 = vpop.f32.mrb[0].mxu0 }
  0xe9   :  { %v116_v13 = vadd.f32 %v115_v12, %v34_v11  ;;  %v193_v14 = vpop.f32.mrb[1].mxu0 }
  0xea   :  { %v118_v16 = vpop.f32.mrb[2].mxu0 }
  0xeb   :  { %122 = vst [vmem:[%s316_s3] sm:$0xff] %v116_v13  ;;  %v119_v17 = vadd.f32 %v118_v16, %v39_v15  ;;  %135 = vadd.xlane.f32.xlu1 %v116_v13  ;;  %v194_v18 = vpop.f32.mrb[3].mxu0  ;;  %v146_v19 = vmul.f32 %v116_v13, %v116_v13 }
  0xed   :  { %123 = vst [vmem:[%s316_s3 + $0x8] sm:$0xff] %v119_v17  ;;  %148 = vadd.xlane.f32.xlu0 %v146_v19  ;;  %v147_v20 = vmul.f32 %v119_v17, %v119_v17 }
  0xef   :  { %137 = vadd.xlane.f32.xlu1 %v119_v17 }
  0xf3   :  { %150 = vadd.xlane.f32.xlu1 %v147_v20 }
 0x178   :  { %v136_v22 = vpop.xlane.xlu1 %135 }
 0x179   :  { %v139_v24 = vadd.f32 %v136_v22, %v133_v21 }
 0x17a   :  { %v149_v25 = vpop.xlane.xlu0 %148 }
 0x17b   :  { %142 = vst.msk [vmem:[%s315_s4] sm:$0xff] %vm128_vm3, %v139_v24  ;;  %v152_v27 = vadd.f32 %v149_v25, %v144_v23 }
 0x17c   :  { %v138_v28 = vpop.xlane.xlu1 %137 }
 0x17d   :  { %154 = vst.msk [vmem:[%s317_s5] sm:$0xff] %vm128_vm3, %v152_v27  ;;  %v140_v29 = vadd.f32 %v138_v28, %v134_v26 }
 0x17f   :  { %143 = vst.msk [vmem:[%s315_s4 + $0x8] sm:$0xff] %vm128_vm3, %v140_v29 }
 0x180   :  { %v151_v31 = vpop.xlane.xlu1 %150 }
 0x181   :  { %v153_v32 = vadd.f32 %v151_v31, %v145_v30 }
 0x183   :  { %155 = vst.msk [vmem:[%s317_s5 + $0x8] sm:$0xff] %vm128_vm3, %v153_v32 }

// kernel: encoder_forward.14
= control target key start
LH: loop header
LB: loop body
LE: loop exit
PB: predicated region body
PF: predicated region fallthrough
CT: control target
= control target key end

     0   :  { %v114_v0 = vmov 0   ;;  %s156_s2 = inlined_call_operand.vmem [shape: f32[16,1], index: 2, kind: input, shape index: {}]   ;;  %s157_s1 = inlined_call_operand.vmem [shape: f32[16,1], index: 1, kind: input, shape index: {}]   ;;  %s158_s0 = inlined_call_operand.vmem [shape: f32[16,128], index: 0, kind: input, shape index: {}]   ;;  %s159_s3 = inlined_call_operand.vmem [shape: bf16[16,128], index: 3, kind: output, shape index: {}]  }
   0x1   :  { %105 = vset.pattern.permute.xlu1 %v114_v0  ;;  %104 = vset.pattern.permute.xlu0 %v114_v0  ;;  %v30_v1 = vld [vmem:[%s156_s2] sm:$0xff]  ;;  %v31_v3 = vld [vmem:[%s156_s2 + $0x8] sm:$0xff] }
   0x2   :  { %v16_v2 = vld [vmem:[%s157_s1] sm:$0xff]  ;;  %34 = vperm.xlu1 %105, %v30_v1   ;;  %v17_v4 = vld [vmem:[%s157_s1 + $0x8] sm:$0xff] }
   0x3   :  { %20 = vperm.xlu0 %104, %v16_v2   ;;  %v14_v5 = vld [vmem:[%s158_s0] sm:$0xff]  ;;  %v15_v9 = vld [vmem:[%s158_s0 + $0x8] sm:$0xff] }
   0x6   :  { %39 = vperm.xlu1 %105, %v31_v3  }
   0x7   :  { %25 = vperm.xlu0 %104, %v17_v4  }
  0x81   :  { %v35_v6 = vpop.permute.xlu1 %34 }
  0x82   :  { %v21_v7 = vpop.permute.xlu0 %20 }
  0x83   :  { %v28_v8 = vmul.f32 %v21_v7, %v14_v5 }
  0x85   :  { %v42_v10 = vadd.f32 %v35_v6, %v28_v8  ;;  %v40_v14 = vpop.permute.xlu1 %39 }
  0x86   :  { %v26_v11 = vpop.permute.xlu0 %25 }
  0x87   :  { %v44_v12 = vand.u32 2147483647, %v42_v10  ;;  %v29_v13 = vmul.f32 %v26_v11, %v15_v9  ;;  %vm54_vm0 = vcmp.ge.f32.partialorder %v42_v10, 0.0 }
  0x89   :  { %v46_v15 = vsub.f32 0.0, %v44_v12  ;;  %v43_v16 = vadd.f32 %v40_v14, %v29_v13 }
  0x8b   :  { %v48_v17 = vmul.f32 1.442695, %v46_v15  ;;  %v45_v18 = vand.u32 2147483647, %v43_v16  ;;  %vm55_vm1 = vcmp.ge.f32.partialorder %v43_v16, 0.0 }
  0x8d   :  { %106 = vpow2.f32 %v48_v17  ;;  %v47_v19 = vsub.f32 0.0, %v45_v18 }
  0x8f   :  { %v50_v20 = vmul.f32 1.442695, %v47_v19 }
  0x91   :  { %108 = vpow2.f32 %v50_v20 }
  0x97   :  { %v107_v21 = vpop.eup %106 }
  0x98   :  { %v52_v22 = vmul.f32 %v107_v21, %v107_v21  ;;  %v56_v23 = vmul.f32 2.0, %v107_v21 }
  0x9a   :  { %v60_v24 = vadd.f32 %v56_v23, %v52_v22  ;;  %v64_v25 = vmul.f32 2.0, %v52_v22  ;;  %v58_v39 = vadd.f32 1.0, %v56_v23 }
  0x9b   :  { %v109_v26 = vpop.eup %108 }
  0x9c   :  { %v66_v27 = vadd.f32 %v64_v25, %v56_v23  ;;  %v53_v28 = vmul.f32 %v109_v26, %v109_v26  ;;  %v57_v29 = vmul.f32 2.0, %v109_v26  ;;  %v70_v31 = vadd.f32 2.0, %v60_v24 }
  0x9d   :  { %v62_v41 = vsel %vm54_vm0, %v58_v39, %v60_v24 }
  0x9e   :  { %v68_v30 = vadd.f32 1.0, %v66_v27  ;;  %v65_v32 = vmul.f32 2.0, %v53_v28  ;;  %v61_v33 = vadd.f32 %v57_v29, %v53_v28  ;;  %v59_v40 = vadd.f32 1.0, %v57_v29 }
  0x9f   :  { %v74_v44 = vmul.f32 %v62_v41, %v42_v10 }
  0xa0   :  { %v72_v34 = vsel %vm54_vm0, %v68_v30, %v70_v31  ;;  %v67_v35 = vadd.f32 %v65_v32, %v57_v29  ;;  %v71_v37 = vadd.f32 2.0, %v61_v33  ;;  %v63_v42 = vsel %vm55_vm1, %v59_v40, %v61_v33 }
  0xa1   :  { %110 = vrcp.f32 %v72_v34  ;;  %v75_v45 = vmul.f32 %v63_v42, %v43_v16 }
  0xa2   :  { %v69_v36 = vadd.f32 1.0, %v67_v35 }
  0xa4   :  { %v73_v38 = vsel %vm55_vm1, %v69_v36, %v71_v37 }
  0xa5   :  { %112 = vrcp.f32 %v73_v38 }
  0xab   :  { %v111_v43 = vpop.eup %110 }
  0xac   :  { %v78_v47 = vmul.f32 %v111_v43, %v74_v44 }
  0xaf   :  { %v113_v46 = vpop.eup %112 }
  0xb0   :  { %v79_v48 = vmul.f32 %v113_v46, %v75_v45 }
  0xb2   :  { %v101_v49 = vpack.c.bf16 %v79_v48, %v78_v47 }
  0xb4   :  { %102 = vst [vmem:[%s159_s3] sm:$0xff] %v101_v49  }

// kernel: encoder_forward.15
= control target key start
LH: loop header
LB: loop body
LE: loop exit
PB: predicated region body
PF: predicated region fallthrough
CT: control target
= control target key end

     0   :  { %v327_v0 = vmov 0   ;;  %vm136_vm0 = vcmask 130048   ;;  %vm201_vm1 = vcmask 7168   ;;  %v328_v18 = vmov 0.0   ;;  %s522_s2 = inlined_call_operand.vmem [shape: bf16[144,32], index: 2, kind: input, shape index: {}]   ;;  %s523_s0 = inlined_call_operand.vmem [shape: bf16[32,144], index: 0, kind: input, shape index: {}]   ;;  %s524_s1 = inlined_call_operand.vmem [shape: f32[32,1], index: 1, kind: input, shape index: {}]   ;;  %s525_s4 = inlined_call_operand.vmem [shape: f32[32,1], index: 4, kind: output, shape index: {1}]   ;;  %s526_s3 = inlined_call_operand.vmem [shape: f32[32,32], index: 3, kind: output, shape index: {0}]   ;;  %s527_s5 = inlined_call_operand.vmem [shape: f32[32,1], index: 5, kind: output, shape index: {2}]  }
   0x1   :  { %143 = vmatprep.subr.bf16.mxu0 %v327_v0  ;;  %290 = vmatprep.subr.bf16.mxu1 %v327_v0  ;;  %v312_v1 = vld [vmem:[%s522_s2] sm:$0xff]   ;;  %v313_v2 = vld [vmem:[%s522_s2 + $0x8] sm:$0xff]   ;;  %v314_v3 = vld [vmem:[%s522_s2 + $0x10] sm:$0xff]   ;;  %202 = vst.msk [vmem:[%s525_s4] sm:$0xff] %vm201_vm1, %v328_v18  ;;  %vm192_vm2 = vcmask 261120  }
   0x2   :  { %310 = vset.pattern.permute.xlu0 %v327_v0  ;;  %311 = vset.pattern.permute.xlu1 %v327_v0  ;;  %v315_v4 = vld [vmem:[%s522_s2 + $0x18] sm:$0xff]   ;;  %v323_v5 = vld [vmem:[%s523_s0 + $0x4] ss:$8 sps:$4 sm:$0xff]   ;;  %v42_v8 = vld [vmem:[%s524_s1 + $0x10] sm:$0xff]  ;;  %203 = vst.msk [vmem:[%s525_s4 + $0x8] sm:$0xff] %vm201_vm1, %v328_v18 }
   0x3   :  { %144 = vmatpush1.bf16.msra.mxu0 %v312_v1  ;;  %299 = vmatpush1.bf16.msra.mxu1 %v312_v1  ;;  %v326_v6 = vld [vmem:[%s523_s0 + $0x14] ss:$8 sps:$4 sm:$0xff]   ;;  %v40_v7 = vld [vmem:[%s524_s1] sm:$0xff]  ;;  %v41_v9 = vld [vmem:[%s524_s1 + $0x8] sm:$0xff]  ;;  %204 = vst.msk [vmem:[%s525_s4 + $0x10] sm:$0xff] %vm201_vm1, %v328_v18 }
   0x4   :  { %145 = vmatprep.subr.bf16.mxu0 %v327_v0  ;;  %291 = vmatprep.subr.bf16.mxu1 %v327_v0  ;;  %v316_v10 = vld [vmem:[%s522_s2 + $0x20] sm:$0xff]   ;;  %v43_v11 = vld [vmem:[%s524_s1 + $0x18] sm:$0xff]  ;;  %v317_v12 = vld [vmem:[%s522_s2 + $0x28] sm:$0xff]   ;;  %205 = vst.msk [vmem:[%s525_s4 + $0x18] sm:$0xff] %vm201_vm1, %v328_v18 }
   0x5   :  { %288 = vmatprep.mubr.msk.bf16.mxu0 %vm136_vm0, %v323_v5  ;;  %46 = vperm.xlu0 %310, %v40_v7   ;;  %v318_v13 = vld [vmem:[%s522_s2 + $0x30] sm:$0xff]   ;;  %v319_v14 = vld [vmem:[%s522_s2 + $0x38] sm:$0xff]   ;;  %v320_v15 = vld [vmem:[%s522_s2 + $0x40] sm:$0xff]   ;;  %206 = vst.msk [vmem:[%s527_s5] sm:$0xff] %vm201_vm1, %v328_v18 }
   0x6   :  { %289 = vmatprep.mubr.msk.bf16.mxu1 %vm136_vm0, %v326_v6  ;;  %56 = vperm.xlu1 %311, %v42_v8   ;;  %v321_v16 = vld [vmem:[%s523_s0] ss:$8 sps:$4 sm:$0xff]   ;;  %v324_v17 = vld [vmem:[%s523_s0 + $0x10] ss:$8 sps:$4 sm:$0xff]   ;;  %207 = vst.msk [vmem:[%s527_s5 + $0x8] sm:$0xff] %vm201_vm1, %v328_v18  ;;  %208 = vst.msk [vmem:[%s527_s5 + $0x10] sm:$0xff] %vm201_vm1, %v328_v18 }
   0x7   :  { %146 = vmatpush1.bf16.msra.mxu0 %v313_v2  ;;  %300 = vmatpush1.bf16.msra.mxu1 %v313_v2  ;;  %209 = vst.msk [vmem:[%s527_s5 + $0x18] sm:$0xff] %vm201_vm1, %v328_v18 }
   0x8   :  { %147 = vmatprep.subr.bf16.mxu0 %v327_v0  ;;  %292 = vmatprep.subr.bf16.mxu1 %v327_v0  ;;  %v210_v47 = vld [vmem:[%s525_s4] sm:$0xff] }
   0x9   :  { %51 = vperm.xlu0 %310, %v41_v9   ;;  %v211_v49 = vld [vmem:[%s525_s4 + $0x8] sm:$0xff] }
   0xa   :  { %61 = vperm.xlu1 %311, %v43_v11   ;;  %v212_v52 = vld [vmem:[%s525_s4 + $0x10] sm:$0xff] }
   0xb   :  { %148 = vmatpush1.bf16.msra.mxu0 %v314_v3  ;;  %301 = vmatpush1.bf16.msra.mxu1 %v314_v3  ;;  %v213_v58 = vld [vmem:[%s525_s4 + $0x18] sm:$0xff] }
   0xc   :  { %149 = vmatprep.subr.bf16.mxu0 %v327_v0  ;;  %293 = vmatprep.subr.bf16.mxu1 %v327_v0  ;;  %v235_v55 = vld [vmem:[%s527_s5] sm:$0xff] }
   0xd   :  { %v237_v61 = vld [vmem:[%s527_s5 + $0x10] sm:$0xff] }
   0xf   :  { %150 = vmatpush1.bf16.msra.mxu0 %v315_v4  ;;  %302 = vmatpush1.bf16.msra.mxu1 %v315_v4  ;;  %v238_v4 = vld [vmem:[%s527_s5 + $0x18] sm:$0xff] }
  0x10   :  { %151 = vmatprep.subr.bf16.mxu0 %v327_v0  ;;  %294 = vmatprep.subr.bf16.mxu1 %v327_v0 }
  0x13   :  { %152 = vmatpush1.bf16.msra.mxu0 %v316_v10  ;;  %303 = vmatpush1.bf16.msra.mxu1 %v316_v10 }
  0x14   :  { %153 = vmatprep.subr.bf16.mxu0 %v327_v0  ;;  %295 = vmatprep.subr.bf16.mxu1 %v327_v0 }
  0x17   :  { %154 = vmatpush1.bf16.msra.mxu0 %v317_v12  ;;  %304 = vmatpush1.bf16.msra.mxu1 %v317_v12 }
  0x18   :  { %155 = vmatprep.subr.bf16.mxu0 %v327_v0  ;;  %296 = vmatprep.subr.bf16.mxu1 %v327_v0 }
  0x1b   :  { %156 = vmatpush1.bf16.msra.mxu0 %v318_v13  ;;  %305 = vmatpush1.bf16.msra.mxu1 %v318_v13 }
  0x1c   :  { %157 = vmatprep.subr.bf16.mxu0 %v327_v0  ;;  %297 = vmatprep.subr.bf16.mxu1 %v327_v0 }
  0x1f   :  { %158 = vmatpush1.bf16.msra.mxu0 %v319_v14  ;;  %306 = vmatpush1.bf16.msra.mxu1 %v319_v14 }
  0x20   :  { %159 = vmatprep.subr.bf16.mxu0 %v327_v0  ;;  %298 = vmatprep.subr.bf16.mxu1 %v327_v0  ;;  %v236_v0 = vld [vmem:[%s527_s5 + $0x8] sm:$0xff] }
  0x23   :  { %160 = vmatpush1.bf16.msra.mxu0 %v320_v15  ;;  %307 = vmatpush1.bf16.msra.mxu1 %v320_v15 }
  0x26   :  { %176 = vmatmul.mubr.bf16.vlgmr.msra.gmra.mrb[0].mxu0 %v321_v16  ;;  %184 = vmatmul.mubr.bf16.vlgmr.msra.gmra.mrb[0].mxu1 %v324_v17 }
  0x84   :  { %v47_v19 = vpop.permute.xlu0 %46 }
  0x85   :  { %v57_v20 = vpop.permute.xlu1 %56 }
  0x88   :  { %v52_v21 = vpop.permute.xlu0 %51 }
  0x89   :  { %v62_v22 = vpop.permute.xlu1 %61 }
  0xf9   :  { %v177_v23 = vpop.f32.mrb[0].mxu0  ;;  %v185_v24 = vpop.f32.mrb[0].mxu1 }
  0xfa   :  { %v178_v25 = vadd.f32 %v177_v23, %v47_v19  ;;  %v179_v26 = vpop.f32.mrb[1].mxu0  ;;  %v186_v27 = vadd.f32 %v185_v24, %v57_v20  ;;  %v187_v28 = vpop.f32.mrb[1].mxu1 }
  0xfb   :  { %v180_v29 = vpop.f32.mrb[2].mxu0  ;;  %v188_v30 = vpop.f32.mrb[2].mxu1 }
  0xfc   :  { %193 = vst.msk [vmem:[%s526_s3] sm:$0xff] %vm192_vm2, %v178_v25  ;;  %195 = vst.msk [vmem:[%s526_s3 + $0x10] sm:$0xff] %vm192_vm2, %v186_v27  ;;  %v181_v31 = vadd.f32 %v180_v29, %v52_v21  ;;  %v182_v32 = vpop.f32.mrb[3].mxu0  ;;  %v189_v33 = vadd.f32 %v188_v30, %v62_v22  ;;  %v190_v34 = vpop.f32.mrb[3].mxu1  ;;  %v214_v35 = vsel %vm192_vm2, %v178_v25, 0.0  ;;  %v220_v37 = vsel %vm192_vm2, %v186_v27, 0.0 }
  0xfd   :  { %215 = vadd.xlane.f32.xlu0 %v214_v35  ;;  %v239_v38 = vmul.f32 %v178_v25, %v178_v25  ;;  %v241_v40 = vmul.f32 %v186_v27, %v186_v27 }
  0xfe   :  { %194 = vst.msk [vmem:[%s526_s3 + $0x8] sm:$0xff] %vm192_vm2, %v181_v31  ;;  %196 = vst.msk [vmem:[%s526_s3 + $0x18] sm:$0xff] %vm192_vm2, %v189_v33  ;;  %v217_v36 = vsel %vm192_vm2, %v181_v31, 0.0  ;;  %v223_v41 = vsel %vm192_vm2, %v189_v33, 0.0  ;;  %v240_v42 = vmul.f32 %v181_v31, %v181_v31  ;;  %v242_v45 = vmul.f32 %v189_v33, %v189_v33 }
  0xff   :  { %218 = vadd.xlane.f32.xlu1 %v217_v36  ;;  %v243_v39 = vsel %vm192_vm2, %v239_v38, 0.0  ;;  %v249_v43 = vsel %vm192_vm2, %v241_v40, 0.0 }
 0x100   :  { %v246_v44 = vsel %vm192_vm2, %v240_v42, 0.0  ;;  %v252_v46 = vsel %vm192_vm2, %v242_v45, 0.0 }
 0x101   :  { %221 = vadd.xlane.f32.xlu0 %v220_v37 }
 0x103   :  { %244 = vadd.xlane.f32.xlu1 %v243_v39 }
 0x105   :  { %224 = vadd.xlane.f32.xlu0 %v223_v41 }
 0x107   :  { %250 = vadd.xlane.f32.xlu1 %v249_v43 }
 0x109   :  { %247 = vadd.xlane.f32.xlu0 %v246_v44 }
 0x10d   :  { %253 = vadd.xlane.f32.xlu0 %v252_v46 }
 0x18a   :  { %v216_v48 = vpop.xlane.xlu0 %215 }
 0x18b   :  { %v226_v50 = vadd.f32 %v216_v48, %v210_v47 }
 0x18c   :  { %v219_v51 = vpop.xlane.xlu1 %218 }
 0x18d   :  { %231 = vst.msk [vmem:[%s525_s4] sm:$0xff] %vm201_vm1, %v226_v50  ;;  %v227_v53 = vadd.f32 %v219_v51, %v211_v49 }
 0x18e   :  { %v222_v54 = vpop.xlane.xlu0 %221 }
 0x18f   :  { %232 = vst.msk [vmem:[%s525_s4 + $0x8] sm:$0xff] %vm201_vm1, %v227_v53  ;;  %v228_v56 = vadd.f32 %v222_v54, %v212_v52 }
 0x190   :  { %v245_v57 = vpop.xlane.xlu1 %244 }
 0x191   :  { %233 = vst.msk [vmem:[%s525_s4 + $0x10] sm:$0xff] %vm201_vm1, %v228_v56  ;;  %v255_v59 = vadd.f32 %v245_v57, %v235_v55 }
 0x192   :  { %v225_v60 = vpop.xlane.xlu0 %224 }
 0x193   :  { %259 = vst.msk [vmem:[%s527_s5] sm:$0xff] %vm201_vm1, %v255_v59  ;;  %v229_v62 = vadd.f32 %v225_v60, %v213_v58 }
 0x194   :  { %v251_v63 = vpop.xlane.xlu1 %250 }
 0x195   :  { %234 = vst.msk [vmem:[%s525_s4 + $0x18] sm:$0xff] %vm201_vm1, %v229_v62  ;;  %v257_v1 = vadd.f32 %v251_v63, %v237_v61 }
 0x196   :  { %v248_v2 = vpop.xlane.xlu0 %247 }
 0x197   :  { %261 = vst.msk [vmem:[%s527_s5 + $0x10] sm:$0xff] %vm201_vm1, %v257_v1  ;;  %v256_v3 = vadd.f32 %v248_v2, %v236_v0 }
 0x199   :  { %260 = vst.msk [vmem:[%s527_s5 + $0x8] sm:$0xff] %vm201_vm1, %v256_v3 }
 0x19a   :  { %v254_v5 = vpop.xlane.xlu0 %253 }
 0x19b   :  { %v258_v6 = vadd.f32 %v254_v5, %v238_v4 }
 0x19d   :  { %262 = vst.msk [vmem:[%s527_s5 + $0x18] sm:$0xff] %vm201_vm1, %v258_v6 }

// kernel: encoder_forward.16
= control target key start
LH: loop header
LB: loop body
LE: loop exit
PB: predicated region body
PF: predicated region fallthrough
CT: control target
= control target key end

     0   :  { %v198_v0 = vmov 0   ;;  %vm162_vm4 = vcmask 257024   ;;  %s307_s1 = inlined_call_operand.vmem [shape: f32[32,1], index: 1, kind: input, shape index: {}]   ;;  %s308_s2 = inlined_call_operand.vmem [shape: f32[32,1], index: 2, kind: input, shape index: {}]   ;;  %s309_s0 = inlined_call_operand.vmem [shape: f32[32,32], index: 0, kind: input, shape index: {}]   ;;  %s310_s3 = inlined_call_operand.vmem [shape: bf16[32,32], index: 3, kind: output, shape index: {}]  }
   0x1   :  { %181 = vset.pattern.permute.xlu1 %v198_v0  ;;  %180 = vset.pattern.permute.xlu0 %v198_v0  ;;  %v20_v1 = vld [vmem:[%s307_s1 + $0x10] sm:$0xff]  ;;  %v18_v2 = vld [vmem:[%s307_s1] sm:$0xff]  ;;  %v21_v3 = vld [vmem:[%s307_s1 + $0x18] sm:$0xff] }
   0x2   :  { %34 = vperm.xlu1 %181, %v20_v1   ;;  %24 = vperm.xlu0 %180, %v18_v2   ;;  %v19_v4 = vld [vmem:[%s307_s1 + $0x8] sm:$0xff]  ;;  %v46_v6 = vld [vmem:[%s308_s2] sm:$0xff]  ;;  %v49_v7 = vld [vmem:[%s308_s2 + $0x18] sm:$0xff] }
   0x3   :  { %v47_v5 = vld [vmem:[%s308_s2 + $0x8] sm:$0xff]  ;;  %v48_v8 = vld [vmem:[%s308_s2 + $0x10] sm:$0xff]  ;;  %v14_v11 = vld [vmem:[%s309_s0] sm:$0xff] }
   0x4   :  { %v15_v14 = vld [vmem:[%s309_s0 + $0x8] sm:$0xff]  ;;  %v16_v17 = vld [vmem:[%s309_s0 + $0x10] sm:$0xff]  ;;  %v17_v18 = vld [vmem:[%s309_s0 + $0x18] sm:$0xff] }
   0x6   :  { %39 = vperm.xlu1 %181, %v21_v3   ;;  %29 = vperm.xlu0 %180, %v19_v4  }
   0xa   :  { %57 = vperm.xlu1 %181, %v47_v5   ;;  %52 = vperm.xlu0 %180, %v46_v6  }
   0xe   :  { %67 = vperm.xlu1 %181, %v49_v7   ;;  %62 = vperm.xlu0 %180, %v48_v8  }
  0x81   :  { %v35_v9 = vpop.permute.xlu1 %34  ;;  %v25_v10 = vpop.permute.xlu0 %24 }
  0x82   :  { %v42_v15 = vmul.f32 %v25_v10, %v14_v11  ;;  %v44_v23 = vmul.f32 %v35_v9, %v16_v17 }
  0x85   :  { %v40_v12 = vpop.permute.xlu1 %39  ;;  %v30_v13 = vpop.permute.xlu0 %29 }
  0x86   :  { %v43_v16 = vmul.f32 %v30_v13, %v15_v14  ;;  %v45_v24 = vmul.f32 %v40_v12, %v17_v18 }
  0x89   :  { %v58_v19 = vpop.permute.xlu1 %57  ;;  %v53_v20 = vpop.permute.xlu0 %52 }
  0x8a   :  { %v255_v21 = vadd.f32 %v58_v19, %v43_v16  ;;  %v257_v22 = vadd.f32 %v53_v20, %v42_v15 }
  0x8c   :  { %v75_v25 = vand.u32 2147483647, %v255_v21  ;;  %v74_v26 = vand.u32 2147483647, %v257_v22  ;;  %vm95_vm0 = vcmp.ge.f32.partialorder %v255_v21, 0.0  ;;  %vm94_vm1 = vcmp.ge.f32.partialorder %v257_v22, 0.0 }
  0x8d   :  { %v68_v27 = vpop.permute.xlu1 %67  ;;  %v63_v28 = vpop.permute.xlu0 %62 }
  0x8e   :  { %v79_v29 = vsub.f32 0.0, %v75_v25  ;;  %v78_v30 = vsub.f32 0.0, %v74_v26  ;;  %v261_v31 = vadd.f32 %v68_v27, %v45_v24  ;;  %v263_v32 = vadd.f32 %v63_v28, %v44_v23 }
  0x90   :  { %v84_v33 = vmul.f32 1.442695, %v79_v29  ;;  %v82_v34 = vmul.f32 1.442695, %v78_v30  ;;  %v77_v35 = vand.u32 2147483647, %v261_v31 }
  0x91   :  { %v76_v36 = vand.u32 2147483647, %v263_v32  ;;  %vm97_vm2 = vcmp.ge.f32.partialorder %v261_v31, 0.0  ;;  %vm96_vm3 = vcmp.ge.f32.partialorder %v263_v32, 0.0 }
  0x92   :  { %182 = vpow2.f32 %v84_v33  ;;  %v81_v37 = vsub.f32 0.0, %v77_v35 }
  0x93   :  { %184 = vpow2.f32 %v82_v34  ;;  %v80_v38 = vsub.f32 0.0, %v76_v36 }
  0x94   :  { %v88_v39 = vmul.f32 1.442695, %v81_v37 }
  0x95   :  { %v86_v40 = vmul.f32 1.442695, %v80_v38 }
  0x96   :  { %186 = vpow2.f32 %v88_v39 }
  0x97   :  { %188 = vpow2.f32 %v86_v40 }
  0x9c   :  { %v183_v41 = vpop.eup %182 }
  0x9d   :  { %v185_v42 = vpop.eup %184  ;;  %v91_v43 = vmul.f32 %v183_v41, %v183_v41  ;;  %v99_v44 = vmul.f32 2.0, %v183_v41 }
  0x9e   :  { %v90_v45 = vmul.f32 %v185_v42, %v185_v42  ;;  %v98_v46 = vmul.f32 2.0, %v185_v42 }
  0x9f   :  { %v107_v47 = vadd.f32 %v99_v44, %v91_v43  ;;  %v115_v48 = vmul.f32 2.0, %v91_v43  ;;  %v103_v6 = vadd.f32 1.0, %v99_v44 }
  0xa0   :  { %v187_v49 = vpop.eup %186  ;;  %v106_v50 = vadd.f32 %v98_v46, %v90_v45  ;;  %v114_v51 = vmul.f32 2.0, %v90_v45  ;;  %v102_v9 = vadd.f32 1.0, %v98_v46 }
  0xa1   :  { %v189_v52 = vpop.eup %188  ;;  %v119_v53 = vadd.f32 %v115_v48, %v99_v44  ;;  %v93_v54 = vmul.f32 %v187_v49, %v187_v49  ;;  %v127_v57 = vadd.f32 2.0, %v107_v47  ;;  %v101_v58 = vmul.f32 2.0, %v187_v49 }
  0xa2   :  { %v118_v55 = vadd.f32 %v114_v51, %v98_v46  ;;  %v126_v61 = vadd.f32 2.0, %v106_v50  ;;  %v92_v62 = vmul.f32 %v189_v52, %v189_v52  ;;  %v100_v63 = vmul.f32 2.0, %v189_v52 }
  0xa3   :  { %v123_v56 = vadd.f32 1.0, %v119_v53  ;;  %v117_v59 = vmul.f32 2.0, %v93_v54  ;;  %v109_v1 = vadd.f32 %v101_v58, %v93_v54  ;;  %v111_v12 = vsel %vm95_vm0, %v103_v6, %v107_v47 }
  0xa4   :  { %v122_v60 = vadd.f32 1.0, %v118_v55  ;;  %v108_v7 = vadd.f32 %v100_v63, %v92_v62  ;;  %v116_v8 = vmul.f32 2.0, %v92_v62  ;;  %v105_v13 = vadd.f32 1.0, %v101_v58 }
  0xa5   :  { %v131_v0 = vsel %vm95_vm0, %v123_v56, %v127_v57  ;;  %v121_v2 = vadd.f32 %v117_v59, %v101_v58  ;;  %v129_v5 = vadd.f32 2.0, %v109_v1  ;;  %v110_v16 = vsel %vm94_vm1, %v102_v9, %v106_v50 }
  0xa6   :  { %190 = vrcp.f32 %v131_v0  ;;  %v130_v3 = vsel %vm94_vm1, %v122_v60, %v126_v61  ;;  %v120_v11 = vadd.f32 %v116_v8, %v100_v63  ;;  %v128_v15 = vadd.f32 2.0, %v108_v7 }
  0xa7   :  { %192 = vrcp.f32 %v130_v3  ;;  %v125_v4 = vadd.f32 1.0, %v121_v2  ;;  %v135_v18 = vmul.f32 %v111_v12, %v255_v21  ;;  %v134_v20 = vmul.f32 %v110_v16, %v257_v22 }
  0xa8   :  { %v124_v14 = vadd.f32 1.0, %v120_v11  ;;  %v113_v23 = vsel %vm97_vm2, %v105_v13, %v109_v1  ;;  %v104_v26 = vadd.f32 1.0, %v100_v63 }
  0xa9   :  { %v133_v10 = vsel %vm97_vm2, %v125_v4, %v129_v5  ;;  %v137_v29 = vmul.f32 %v113_v23, %v261_v31 }
  0xaa   :  { %194 = vrcp.f32 %v133_v10  ;;  %v132_v17 = vsel %vm96_vm3, %v124_v14, %v128_v15  ;;  %v112_v22 = vsel %vm96_vm3, %v104_v26, %v108_v7 }
  0xab   :  { %196 = vrcp.f32 %v132_v17  ;;  %v136_v35 = vmul.f32 %v112_v22, %v263_v32 }
  0xb0   :  { %v191_v19 = vpop.eup %190 }
  0xb1   :  { %v193_v24 = vpop.eup %192  ;;  %v143_v25 = vmul.f32 %v191_v19, %v135_v18 }
  0xb2   :  { %v142_v27 = vmul.f32 %v193_v24, %v134_v20 }
  0xb3   :  { %v176_v28 = vpack.c.bf16 %v143_v25, %v143_v25 }
  0xb4   :  { %v195_v30 = vpop.eup %194  ;;  %v175_v33 = vpack.c.bf16 %v142_v27, %v142_v27 }
  0xb5   :  { %164 = vst.msk [vmem:[%s310_s3 + $0x4] sm:$0xf] %vm162_vm4, %v176_v28  ;;  %v145_v21 = vmul.f32 %v195_v30, %v137_v29  ;;  %v197_v31 = vpop.eup %196 }
  0xb6   :  { %163 = vst.msk [vmem:[%s310_s3] sm:$0xf] %vm162_vm4, %v175_v33  ;;  %v144_v36 = vmul.f32 %v197_v31, %v136_v35 }
  0xb7   :  { %v178_v34 = vpack.c.bf16 %v145_v21, %v145_v21 }
  0xb8   :  { %v177_v37 = vpack.c.bf16 %v144_v36, %v144_v36 }
  0xb9   :  { %166 = vst.msk [vmem:[%s310_s3 + $0xc] sm:$0xf] %vm162_vm4, %v178_v34 }
  0xba   :  { %165 = vst.msk [vmem:[%s310_s3 + $0x8] sm:$0xf] %vm162_vm4, %v177_v37 }

// kernel: encoder_forward.17
= control target key start
LH: loop header
LB: loop body
LE: loop exit
PB: predicated region body
PF: predicated region fallthrough
CT: control target
= control target key end

     0   :  { %v507_v1 = vmov 0   ;;  %vm224_vm0 = vcmask 261120   ;;  %vm337_vm1 = vcmask 7168   ;;  %v508_v29 = vmov 0.0   ;;  %s737_s2 = inlined_call_operand.vmem [shape: bf16[288,32], index: 2, kind: input, shape index: {}]   ;;  %s738_s0 = inlined_call_operand.vmem [shape: bf16[32,288], index: 0, kind: input, shape index: {}]   ;;  %s739_s1 = inlined_call_operand.vmem [shape: f32[32,1], index: 1, kind: input, shape index: {}]   ;;  %s740_s4 = inlined_call_operand.vmem [shape: f32[32,1], index: 4, kind: output, shape index: {1}]   ;;  %s741_s3 = inlined_call_operand.vmem [shape: f32[32,32], index: 3, kind: output, shape index: {0}]   ;;  %s742_s5 = inlined_call_operand.vmem [shape: f32[32,1], index: 5, kind: output, shape index: {2}]  }
   0x1   :  { %v481_v0 = vld [vmem:[%s737_s2 + $0x40] sm:$0xff]   ;;  %479 = vset.pattern.permute.xlu0 %v507_v1  ;;  %480 = vset.pattern.permute.xlu1 %v507_v1  ;;  %v483_v3 = vld [vmem:[%s737_s2 + $0x48] sm:$0xff]   ;;  %v485_v5 = vld [vmem:[%s737_s2 + $0x50] sm:$0xff]   ;;  %338 = vst.msk [vmem:[%s740_s4] sm:$0xff] %vm337_vm1, %v508_v29 }
   0x2   :  { %v482_v2 = vld [vmem:[%s737_s2] sm:$0xff]   ;;  %437 = vmatprep.subr.bf16.mxu0 %v481_v0  ;;  %v484_v4 = vld [vmem:[%s737_s2 + $0x8] sm:$0xff]   ;;  %v486_v6 = vld [vmem:[%s737_s2 + $0x10] sm:$0xff]   ;;  %339 = vst.msk [vmem:[%s740_s4 + $0x8] sm:$0xff] %vm337_vm1, %v508_v29 }
   0x3   :  { %438 = vmatpush3.bf16.msra.mxu0 %v482_v2  ;;  %v487_v7 = vld [vmem:[%s737_s2 + $0x58] sm:$0xff]   ;;  %v489_v9 = vld [vmem:[%s737_s2 + $0x60] sm:$0xff]   ;;  %v491_v12 = vld [vmem:[%s737_s2 + $0x68] sm:$0xff]   ;;  %340 = vst.msk [vmem:[%s740_s4 + $0x10] sm:$0xff] %vm337_vm1, %v508_v29 }
   0x4   :  { %439 = vmatprep.subr.bf16.mxu0 %v483_v3  ;;  %v488_v8 = vld [vmem:[%s737_s2 + $0x18] sm:$0xff]   ;;  %v495_v10 = vld [vmem:[%s737_s2 + $0x80] sm:$0xff]   ;;  %v492_v13 = vld [vmem:[%s737_s2 + $0x28] sm:$0xff]   ;;  %341 = vst.msk [vmem:[%s740_s4 + $0x18] sm:$0xff] %vm337_vm1, %v508_v29 }
   0x5   :  { %v490_v11 = vld [vmem:[%s737_s2 + $0x20] sm:$0xff]   ;;  %469 = vmatprep.subr.bf16.mxu1 %v495_v10  ;;  %v498_v14 = vld [vmem:[%s737_s2 + $0x88] sm:$0xff]   ;;  %v493_v15 = vld [vmem:[%s737_s2 + $0x70] sm:$0xff]   ;;  %343 = vst.msk [vmem:[%s742_s5 + $0x8] sm:$0xff] %vm337_vm1, %v508_v29 }
   0x6   :  { %470 = vmatpush3.bf16.msra.mxu1 %v495_v10  ;;  %v501_v16 = vld [vmem:[%s738_s0 + $0x4] ss:$12 sps:$4 sm:$0xff]   ;;  %v502_v17 = vld [vmem:[%s738_s0 + $0x8] ss:$12 sps:$4 sm:$0xff]   ;;  %v503_v18 = vld [vmem:[%s738_s0 + $0x20] ss:$12 sps:$4 sm:$0xff]  }
   0x7   :  { %440 = vmatpush3.bf16.msra.mxu0 %v484_v4  ;;  %471 = vmatprep.subr.bf16.mxu1 %v498_v14  ;;  %v62_v19 = vld [vmem:[%s739_s1] sm:$0xff]  ;;  %v494_v20 = vld [vmem:[%s737_s2 + $0x30] sm:$0xff]   ;;  %v496_v22 = vld [vmem:[%s737_s2 + $0x78] sm:$0xff]   ;;  %342 = vst.msk [vmem:[%s742_s5] sm:$0xff] %vm337_vm1, %v508_v29 }
   0x8   :  { %441 = vmatprep.subr.bf16.mxu0 %v485_v5  ;;  %263 = vmatprep.mubr.bf16.mxu0 %v501_v16  ;;  %v64_v21 = vld [vmem:[%s739_s1 + $0x10] sm:$0xff]  ;;  %v63_v23 = vld [vmem:[%s739_s1 + $0x8] sm:$0xff]  ;;  %v65_v24 = vld [vmem:[%s739_s1 + $0x18] sm:$0xff]  ;;  %344 = vst.msk [vmem:[%s742_s5 + $0x10] sm:$0xff] %vm337_vm1, %v508_v29 }
   0x9   :  { %473 = vmatprep.mubr.msk.bf16.mxu1 %vm224_vm0, %v502_v17  ;;  %68 = vperm.xlu0 %479, %v62_v19   ;;  %v497_v25 = vld [vmem:[%s737_s2 + $0x38] sm:$0xff]   ;;  %v499_v26 = vld [vmem:[%s738_s0] ss:$12 sps:$4 sm:$0xff]   ;;  %345 = vst.msk [vmem:[%s742_s5 + $0x18] sm:$0xff] %vm337_vm1, %v508_v29 }
   0xa   :  { %472 = vmatpush3.bf16.msra.mxu1 %v498_v14  ;;  %78 = vperm.xlu1 %480, %v64_v21   ;;  %v504_v27 = vld [vmem:[%s738_s0 + $0x1c] ss:$12 sps:$4 sm:$0xff]   ;;  %v506_v28 = vld [vmem:[%s738_s0 + $0x18] ss:$12 sps:$4 sm:$0xff]   ;;  %v348_v17 = vld [vmem:[%s740_s4 + $0x10] sm:$0xff] }
   0xb   :  { %442 = vmatpush3.bf16.msra.mxu0 %v486_v6  ;;  %v346_v6 = vld [vmem:[%s740_s4] sm:$0xff] }
   0xc   :  { %443 = vmatprep.subr.bf16.mxu0 %v487_v7 }
   0xd   :  { %474 = vmatmul.mubr.msk.bf16.vlgmr.msra.gmra.mrb[0].mxu1 %vm224_vm0, %v503_v18  ;;  %73 = vperm.xlu0 %479, %v63_v23   ;;  %v349_v23 = vld [vmem:[%s740_s4 + $0x18] sm:$0xff] }
   0xe   :  { %83 = vperm.xlu1 %480, %v65_v24   ;;  %v371_v14 = vld [vmem:[%s742_s5] sm:$0xff] }
   0xf   :  { %444 = vmatpush3.bf16.msra.mxu0 %v488_v8  ;;  %v347_v8 = vld [vmem:[%s740_s4 + $0x8] sm:$0xff] }
  0x10   :  { %445 = vmatprep.subr.bf16.mxu0 %v489_v9 }
  0x13   :  { %446 = vmatpush3.bf16.msra.mxu0 %v490_v11  ;;  %v372_v11 = vld [vmem:[%s742_s5 + $0x8] sm:$0xff] }
  0x14   :  { %447 = vmatprep.subr.bf16.mxu0 %v491_v12 }
  0x17   :  { %448 = vmatpush3.bf16.msra.mxu0 %v492_v13 }
  0x18   :  { %449 = vmatprep.subr.bf16.mxu0 %v493_v15 }
  0x1b   :  { %450 = vmatpush3.bf16.msra.mxu0 %v494_v20  ;;  %v373_v20 = vld [vmem:[%s742_s5 + $0x10] sm:$0xff] }
  0x1c   :  { %451 = vmatprep.subr.bf16.mxu0 %v496_v22 }
  0x1f   :  { %452 = vmatpush3.bf16.msra.mxu0 %v497_v25 }
  0x22   :  { %264 = vmatmul.mubr.bf16.vlgmr.msra.gmra.mrb[0].mxu0 %v499_v26 }
  0x23   :  { %271 = vmatprep.mubr.bf16.mxu0 %v504_v27  ;;  %v374_v27 = vld [vmem:[%s742_s5 + $0x18] sm:$0xff] }
  0x2a   :  { %272 = vmatmul.mubr.bf16.gmra.mrb[4].mxu0 %v506_v28 }
  0x88   :  { %v69_v34 = vpop.permute.xlu0 %68 }
  0x89   :  { %v79_v45 = vpop.permute.xlu1 %78 }
  0x8c   :  { %v74_v42 = vpop.permute.xlu0 %73 }
  0x8d   :  { %v84_v59 = vpop.permute.xlu1 %83 }
  0xe0   :  { %v475_v30 = vpop.f32.mrb[0].mxu1 }
  0xe1   :  { %v314_v31 = vpop.f32.mrb[1].mxu1 }
  0xe2   :  { %v476_v32 = vpop.f32.mrb[2].mxu1 }
  0xe3   :  { %v317_v33 = vpop.f32.mrb[3].mxu1 }
  0xf5   :  { %v453_v35 = vpop.f32.mrb[0].mxu0 }
  0xf6   :  { %v454_v36 = vpop.f32.mrb[1].mxu0 }
  0xf7   :  { %v455_v37 = vadd.f32 %v454_v36, %v453_v35  ;;  %v456_v38 = vpop.f32.mrb[2].mxu0 }
  0xf8   :  { %v457_v39 = vpop.f32.mrb[3].mxu0 }
  0xf9   :  { %v266_v40 = vadd.f32 %v455_v37, %v69_v34  ;;  %v458_v41 = vadd.f32 %v457_v39, %v456_v38 }
  0xfb   :  { %v315_v43 = vadd.f32 %v314_v31, %v266_v40  ;;  %v269_v44 = vadd.f32 %v458_v41, %v74_v42 }
  0xfd   :  { %329 = vst.msk [vmem:[%s741_s3] sm:$0xff] %vm224_vm0, %v315_v43  ;;  %v318_v46 = vadd.f32 %v317_v33, %v269_v44  ;;  %v459_v47 = vpop.f32.mrb[4].mxu0  ;;  %v350_v48 = vsel %vm224_vm0, %v315_v43, 0.0  ;;  %v375_v54 = vmul.f32 %v315_v43, %v315_v43 }
  0xfe   :  { %v460_v49 = vpop.f32.mrb[5].mxu0  ;;  %351 = vadd.xlane.f32.xlu0 %v350_v48 }
  0xff   :  { %330 = vst.msk [vmem:[%s741_s3 + $0x8] sm:$0xff] %vm224_vm0, %v318_v46  ;;  %v461_v50 = vadd.f32 %v460_v49, %v459_v47  ;;  %v462_v51 = vpop.f32.mrb[6].mxu0  ;;  %v353_v52 = vsel %vm224_vm0, %v318_v46, 0.0  ;;  %v376_v53 = vmul.f32 %v318_v46, %v318_v46  ;;  %v379_v62 = vsel %vm224_vm0, %v375_v54, 0.0 }
 0x100   :  { %v463_v55 = vpop.f32.mrb[7].mxu0  ;;  %354 = vadd.xlane.f32.xlu1 %v353_v52 }
 0x101   :  { %v274_v56 = vadd.f32 %v461_v50, %v79_v45  ;;  %v464_v57 = vadd.f32 %v463_v55, %v462_v51  ;;  %v382_v58 = vsel %vm224_vm0, %v376_v53, 0.0 }
 0x102   :  { %383 = vadd.xlane.f32.xlu0 %v382_v58 }
 0x103   :  { %v323_v60 = vadd.f32 %v475_v30, %v274_v56  ;;  %v277_v61 = vadd.f32 %v464_v57, %v84_v59 }
 0x104   :  { %380 = vadd.xlane.f32.xlu1 %v379_v62 }
 0x105   :  { %331 = vst.msk [vmem:[%s741_s3 + $0x10] sm:$0xff] %vm224_vm0, %v323_v60  ;;  %v326_v63 = vadd.f32 %v476_v32, %v277_v61  ;;  %v356_v0 = vsel %vm224_vm0, %v323_v60, 0.0  ;;  %v377_v1 = vmul.f32 %v323_v60, %v323_v60 }
 0x106   :  { %357 = vadd.xlane.f32.xlu0 %v356_v0 }
 0x107   :  { %332 = vst.msk [vmem:[%s741_s3 + $0x18] sm:$0xff] %vm224_vm0, %v326_v63  ;;  %v385_v2 = vsel %vm224_vm0, %v377_v1, 0.0  ;;  %v359_v3 = vsel %vm224_vm0, %v326_v63, 0.0  ;;  %v378_v4 = vmul.f32 %v326_v63, %v326_v63 }
 0x108   :  { %386 = vadd.xlane.f32.xlu1 %v385_v2 }
 0x109   :  { %v388_v5 = vsel %vm224_vm0, %v378_v4, 0.0 }
 0x10a   :  { %360 = vadd.xlane.f32.xlu0 %v359_v3 }
 0x10e   :  { %389 = vadd.xlane.f32.xlu0 %v388_v5 }
 0x18b   :  { %v352_v7 = vpop.xlane.xlu0 %351 }
 0x18c   :  { %v362_v9 = vadd.f32 %v352_v7, %v346_v6 }
 0x18d   :  { %v355_v10 = vpop.xlane.xlu1 %354 }
 0x18e   :  { %367 = vst.msk [vmem:[%s740_s4] sm:$0xff] %vm337_vm1, %v362_v9  ;;  %v363_v12 = vadd.f32 %v355_v10, %v347_v8 }
 0x18f   :  { %v384_v13 = vpop.xlane.xlu0 %383 }
 0x190   :  { %368 = vst.msk [vmem:[%s740_s4 + $0x8] sm:$0xff] %vm337_vm1, %v363_v12  ;;  %v392_v15 = vadd.f32 %v384_v13, %v372_v11 }
 0x191   :  { %v381_v16 = vpop.xlane.xlu1 %380 }
 0x192   :  { %396 = vst.msk [vmem:[%s742_s5 + $0x8] sm:$0xff] %vm337_vm1, %v392_v15  ;;  %v391_v18 = vadd.f32 %v381_v16, %v371_v14 }
 0x193   :  { %v358_v19 = vpop.xlane.xlu0 %357 }
 0x194   :  { %395 = vst.msk [vmem:[%s742_s5] sm:$0xff] %vm337_vm1, %v391_v18  ;;  %v364_v21 = vadd.f32 %v358_v19, %v348_v17 }
 0x195   :  { %v387_v22 = vpop.xlane.xlu1 %386 }
 0x196   :  { %369 = vst.msk [vmem:[%s740_s4 + $0x10] sm:$0xff] %vm337_vm1, %v364_v21  ;;  %v393_v24 = vadd.f32 %v387_v22, %v373_v20 }
 0x197   :  { %v361_v25 = vpop.xlane.xlu0 %360 }
 0x198   :  { %397 = vst.msk [vmem:[%s742_s5 + $0x10] sm:$0xff] %vm337_vm1, %v393_v24  ;;  %v365_v26 = vadd.f32 %v361_v25, %v349_v23 }
 0x19a   :  { %370 = vst.msk [vmem:[%s740_s4 + $0x18] sm:$0xff] %vm337_vm1, %v365_v26 }
 0x19b   :  { %v390_v28 = vpop.xlane.xlu0 %389 }
 0x19c   :  { %v394_v29 = vadd.f32 %v390_v28, %v374_v27 }
 0x19e   :  { %398 = vst.msk [vmem:[%s742_s5 + $0x18] sm:$0xff] %vm337_vm1, %v394_v29 }

// kernel: encoder_forward.19
= control target key start
LH: loop header
LB: loop body
LE: loop exit
PB: predicated region body
PF: predicated region fallthrough
CT: control target
= control target key end

     0   :  { %s942_s12 = smov 0   ;;  %s944_s13 = smov 0   ;;  %s1087_s0 = inlined_call_operand.vmem [shape: bf16[4,32,288], index: 0, kind: input, shape index: {}]   ;;  %s1088_s1 = inlined_call_operand.vmem [shape: f32[4,32,1], index: 1, kind: input, shape index: {}]   ;;  %s1089_s2 = inlined_call_operand.vmem [shape: bf16[1,288,8], index: 2, kind: input, shape index: {}]   ;;  %s1090_s3 = inlined_call_operand.vmem [shape: bf16[4,32,8], index: 3, kind: output, shape index: {}]  }
   0x1   :  { %s946_s14 = smov 0  }
   0x2 LB: > { %s25_s15 = sadd.s32 1, %s915_s13  ;;  %p743_p0 = scmp.ge.s32.totalorder %s919_s14, 1  ;;  %s919_s14 = sphi %s946_s14, %s13_s14   ;;  %s915_s13 = sphi %s944_s13, %s1092_s13   ;;  %s911_s12 = sphi %s942_s12, %s1091_s12  }
   0x3   : > { %p27_p1 = scmp.ge.s32.totalorder %s25_s15, 4  ;;  %p170_p2 = scmp.lt.s32.totalorder %s919_s14, 5 }
   0x5   : > { %s1094_s15 = smov (%p27_p1, %s25_s15), 0  ;;  %p171_p3 = pnand %p743_p0, %p170_p2 }
   0x6   : > { %v855_v0 = vld [vmem:[%s1089_s2 + $0x40] sm:$0xff] (!%p171_p3)   ;;  %v857_v2 = vld [vmem:[%s1089_s2 + $0x48] sm:$0xff] (!%p171_p3)   ;;  %p206_p4 = scmp.lt.s32.totalorder (!%p171_p3), %s911_s12, 3  ;;  %v859_v4 = vld [vmem:[%s1089_s2 + $0x50] sm:$0xff] (!%p171_p3)   ;;  %v921_v5 = vmov (!%p171_p3), 0   ;;  %vm435_vm0 = vcmask (!%p171_p3), 261120  }
   0x7   : > { %174 = sbr.rel (%p171_p3) target bundleno = 310 (0x136), region = 32  ;;  %v856_v1 = vld [vmem:[%s1089_s2] sm:$0xff] (!%p171_p3)   ;;  %787 = vmatprep.subr.bf16.mxu0 (!%p171_p3), %v855_v0  ;;  %v858_v3 = vld [vmem:[%s1089_s2 + $0x8] sm:$0xff] (!%p171_p3)   ;;  %853 = vset.pattern.permute.xlu0 (!%p171_p3), %v921_v5  ;;  %v860_v6 = vld [vmem:[%s1089_s2 + $0x10] sm:$0xff] (!%p171_p3)   ;;  %vm628_vm5 = vcmask (!%p171_p3), 60416  }
   0x8   : > { %788 = vmatpush3.bf16.msra.mxu0 (!%p171_p3), %v856_v1  ;;  %854 = vset.pattern.permute.xlu1 (!%p171_p3), %v921_v5  ;;  %v861_v7 = vld [vmem:[%s1089_s2 + $0x58] sm:$0xff] (!%p171_p3)   ;;  %v863_v9 = vld [vmem:[%s1089_s2 + $0x60] sm:$0xff] (!%p171_p3)   ;;  %v865_v12 = vld [vmem:[%s1089_s2 + $0x68] sm:$0xff] (!%p171_p3)  }
   0x9   : > { %789 = vmatprep.subr.bf16.mxu0 (!%p171_p3), %v857_v2  ;;  %v862_v8 = vld [vmem:[%s1089_s2 + $0x18] sm:$0xff] (!%p171_p3)   ;;  %v864_v10 = vld [vmem:[%s1089_s2 + $0x20] sm:$0xff] (!%p171_p3)   ;;  %v866_v13 = vld [vmem:[%s1089_s2 + $0x28] sm:$0xff] (!%p171_p3)  }
   0xa   : > { %v870_v11 = vld [vmem:[%s1089_s2 + $0x80] sm:$0xff] (!%p171_p3)   ;;  %v867_v14 = vld [vmem:[%s1089_s2 + $0x70] sm:$0xff] (!%p171_p3)   ;;  %v875_v16 = vld [vmem:[%s1089_s2 + $0x88] sm:$0xff] (!%p171_p3)  }
   0xb   : > { %819 = vmatprep.subr.bf16.mxu1 (!%p171_p3), %v870_v11  ;;  %v868_v20 = vld [vmem:[%s1089_s2 + $0x30] sm:$0xff] (!%p171_p3)   ;;  %v869_v22 = vld [vmem:[%s1089_s2 + $0x78] sm:$0xff] (!%p171_p3)  }
   0xc   : > { %790 = vmatpush3.bf16.msra.mxu0 (!%p171_p3), %v858_v3  ;;  %820 = vmatpush3.bf16.msra.mxu1 (!%p171_p3), %v870_v11  ;;  %v871_v25 = vld [vmem:[%s1089_s2 + $0x38] sm:$0xff] (!%p171_p3)  }
   0xd   : > { %791 = vmatprep.subr.bf16.mxu0 (!%p171_p3), %v859_v4  ;;  %821 = vmatprep.subr.bf16.mxu1 (!%p171_p3), %v875_v16 }
   0xe   : > { %s1096_s12 = smov (!%p206_p4, %s911_s12), 3 }
   0xf   : > { %s827_s5 = smul.u32 48, %s1096_s12  ;;  %s781_s21 = sshll.u32 %s1096_s12, 5 }
  0x10   : > { %792 = vmatpush3.bf16.msra.mxu0 %v860_v6  ;;  %s215_s30 = scalar_lea.vmem %s1088_s1, %s781_s21  ;;  %822 = vmatpush3.bf16.msra.mxu1 %v875_v16  ;;  %s782_s10 = sshll.u32 %s1096_s12, 4 }
  0x11   : > { %793 = vmatprep.subr.bf16.mxu0 %v861_v7  ;;  %s999_s18 = scalar_lea.vmem %s1087_s0, %s827_s5  ;;  %v273_v19 = vld [vmem:[%s215_s30] sm:$0xff]  ;;  %v275_v21 = vld [vmem:[%s215_s30 + $0x10] sm:$0xff]  ;;  %v274_v23 = vld [vmem:[%s215_s30 + $0x8] sm:$0xff]  ;;  %s227_s17 = scalar_lea.vmem %s1090_s3, %s782_s10 }
  0x12   : > { %v874_v15 = vld [vmem:[%s999_s18 + $0x4] ss:$12 sps:$4 sm:$0xff]   ;;  %v876_v17 = vld [vmem:[%s999_s18 + $0x8] ss:$12 sps:$4 sm:$0xff]   ;;  %v877_v18 = vld [vmem:[%s999_s18 + $0x20] ss:$12 sps:$4 sm:$0xff]   ;;  %279 = vperm.xlu0 %853, %v273_v19   ;;  %289 = vperm.xlu1 %854, %v275_v21  }
  0x13   : > { %474 = vmatprep.mubr.bf16.mxu0 %v874_v15  ;;  %823 = vmatprep.mubr.msk.bf16.mxu1 %vm435_vm0, %v876_v17  ;;  %v276_v24 = vld [vmem:[%s215_s30 + $0x18] sm:$0xff]  ;;  %v872_v26 = vld [vmem:[%s999_s18] ss:$12 sps:$4 sm:$0xff]  }
  0x14   : > { %794 = vmatpush3.bf16.msra.mxu0 %v862_v8  ;;  %824 = vmatmul.mubr.msk.bf16.vlgmr.msra.gmra.mrb[0].mxu1 %vm435_vm0, %v877_v18  ;;  %v878_v27 = vld [vmem:[%s999_s18 + $0x1c] ss:$12 sps:$4 sm:$0xff]   ;;  %v880_v28 = vld [vmem:[%s999_s18 + $0x18] ss:$12 sps:$4 sm:$0xff]  }
  0x15   : > { %795 = vmatprep.subr.bf16.mxu0 %v863_v9 }
  0x16   : > { %284 = vperm.xlu0 %853, %v274_v23   ;;  %294 = vperm.xlu1 %854, %v276_v24  }
  0x18   : > { %796 = vmatpush3.bf16.msra.mxu0 %v864_v10 }
  0x19   : > { %797 = vmatprep.subr.bf16.mxu0 %v865_v12 }
  0x1c   : > { %798 = vmatpush3.bf16.msra.mxu0 %v866_v13 }
  0x1d   : > { %799 = vmatprep.subr.bf16.mxu0 %v867_v14 }
  0x20   : > { %800 = vmatpush3.bf16.msra.mxu0 %v868_v20 }
  0x21   : > { %801 = vmatprep.subr.bf16.mxu0 %v869_v22 }
  0x24   : > { %802 = vmatpush3.bf16.msra.mxu0 %v871_v25 }
  0x27   : > { %475 = vmatmul.mubr.bf16.vlgmr.msra.gmra.mrb[0].mxu0 %v872_v26 }
  0x28   : > { %482 = vmatprep.mubr.bf16.mxu0 %v878_v27 }
  0x2f   : > { %483 = vmatmul.mubr.bf16.gmra.mrb[4].mxu0 %v880_v28 }
  0x91   : > { %v280_v33 = vpop.permute.xlu0 %279  ;;  %v290_v44 = vpop.permute.xlu1 %289 }
  0x95   : > { %v285_v39 = vpop.permute.xlu0 %284  ;;  %v295_v58 = vpop.permute.xlu1 %294 }
  0xe7   : > { %v825_v29 = vpop.f32.mrb[0].mxu1 }
  0xe8   : > { %v525_v30 = vpop.f32.mrb[1].mxu1 }
  0xe9   : > { %v826_v31 = vpop.f32.mrb[2].mxu1 }
  0xea   : > { %v528_v32 = vpop.f32.mrb[3].mxu1 }
  0xfa   : > { %v803_v34 = vpop.f32.mrb[0].mxu0 }
  0xfb   : > { %v804_v35 = vpop.f32.mrb[1].mxu0 }
  0xfc   : > { %v805_v36 = vadd.f32 %v804_v35, %v803_v34  ;;  %v806_v37 = vpop.f32.mrb[2].mxu0 }
  0xfd   : > { %v807_v38 = vpop.f32.mrb[3].mxu0 }
  0xfe   : > { %v808_v40 = vadd.f32 %v807_v38, %v806_v37  ;;  %v477_v41 = vadd.f32 %v805_v36, %v280_v33 }
 0x100   : > { %v480_v42 = vadd.f32 %v808_v40, %v285_v39  ;;  %v1034_v43 = vadd.f32 %v525_v30, %v477_v41 }
 0x102   : > { %v540_v45 = vand.u32 2147483647, %v1034_v43  ;;  %v1037_v46 = vadd.f32 %v528_v32, %v480_v42  ;;  %v809_v47 = vpop.f32.mrb[4].mxu0  ;;  %vm560_vm1 = vcmp.ge.f32.partialorder %v1034_v43, 0.0 }
 0x103   : > { %v810_v48 = vpop.f32.mrb[5].mxu0 }
 0x104   : > { %v544_v49 = vsub.f32 0.0, %v540_v45  ;;  %v541_v50 = vand.u32 2147483647, %v1037_v46  ;;  %v811_v51 = vadd.f32 %v810_v48, %v809_v47  ;;  %v812_v52 = vpop.f32.mrb[6].mxu0  ;;  %vm561_vm2 = vcmp.ge.f32.partialorder %v1037_v46, 0.0 }
 0x105   : > { %v813_v53 = vpop.f32.mrb[7].mxu0 }
 0x106   : > { %v548_v54 = vmul.f32 1.442695, %v544_v49  ;;  %v545_v55 = vsub.f32 0.0, %v541_v50  ;;  %v485_v56 = vadd.f32 %v811_v51, %v290_v44  ;;  %v814_v57 = vadd.f32 %v813_v53, %v812_v52 }
 0x108   : > { %881 = vpow2.f32 %v548_v54  ;;  %v550_v59 = vmul.f32 1.442695, %v545_v55  ;;  %v1040_v60 = vadd.f32 %v825_v29, %v485_v56  ;;  %v488_v61 = vadd.f32 %v814_v57, %v295_v58 }
 0x10a   : > { %883 = vpow2.f32 %v550_v59  ;;  %v542_v62 = vand.u32 2147483647, %v1040_v60  ;;  %v1043_v63 = vadd.f32 %v826_v31, %v488_v61  ;;  %vm562_vm3 = vcmp.ge.f32.partialorder %v1040_v60, 0.0 }
 0x10c   : > { %v546_v0 = vsub.f32 0.0, %v542_v62  ;;  %v543_v1 = vand.u32 2147483647, %v1043_v63  ;;  %vm563_vm4 = vcmp.ge.f32.partialorder %v1043_v63, 0.0 }
 0x10e   : > { %v552_v2 = vmul.f32 1.442695, %v546_v0  ;;  %v547_v3 = vsub.f32 0.0, %v543_v1 }
 0x110   : > { %885 = vpow2.f32 %v552_v2  ;;  %v554_v4 = vmul.f32 1.442695, %v547_v3 }
 0x112   : > { %v882_v5 = vpop.eup %881  ;;  %887 = vpow2.f32 %v554_v4 }
 0x113   : > { %v556_v6 = vmul.f32 %v882_v5, %v882_v5  ;;  %v564_v7 = vmul.f32 2.0, %v882_v5 }
 0x114   : > { %v884_v8 = vpop.eup %883 }
 0x115   : > { %v572_v9 = vadd.f32 %v564_v7, %v556_v6  ;;  %v580_v10 = vmul.f32 2.0, %v556_v6  ;;  %v557_v11 = vmul.f32 %v884_v8, %v884_v8  ;;  %v565_v12 = vmul.f32 2.0, %v884_v8 }
 0x116   : > { %v568_v30 = vadd.f32 1.0, %v564_v7 }
 0x117   : > { %v584_v13 = vadd.f32 %v580_v10, %v564_v7  ;;  %v581_v14 = vmul.f32 2.0, %v557_v11  ;;  %v573_v15 = vadd.f32 %v565_v12, %v557_v11  ;;  %v592_v17 = vadd.f32 2.0, %v572_v9 }
 0x118   : > { %v569_v35 = vadd.f32 1.0, %v565_v12  ;;  %v576_v39 = vsel %vm560_vm1, %v568_v30, %v572_v9 }
 0x119   : > { %v588_v16 = vadd.f32 1.0, %v584_v13  ;;  %v585_v18 = vadd.f32 %v581_v14, %v565_v12  ;;  %v593_v22 = vadd.f32 2.0, %v573_v15  ;;  %v600_v45 = vmul.f32 %v576_v39, %v1034_v43 }
 0x11a   : > { %v886_v19 = vpop.eup %885  ;;  %v577_v44 = vsel %vm561_vm2, %v569_v35, %v573_v15 }
 0x11b   : > { %v596_v20 = vsel %vm560_vm1, %v588_v16, %v592_v17  ;;  %v589_v21 = vadd.f32 1.0, %v585_v18  ;;  %v558_v23 = vmul.f32 %v886_v19, %v886_v19  ;;  %v566_v25 = vmul.f32 2.0, %v886_v19 }
 0x11c   : > { %v888_v24 = vpop.eup %887  ;;  %889 = vrcp.f32 %v596_v20  ;;  %v601_v51 = vmul.f32 %v577_v44, %v1037_v46 }
 0x11d   : > { %v597_v26 = vsel %vm561_vm2, %v589_v21, %v593_v22  ;;  %v582_v27 = vmul.f32 2.0, %v558_v23  ;;  %v559_v28 = vmul.f32 %v888_v24, %v888_v24  ;;  %v567_v29 = vmul.f32 2.0, %v888_v24 }
 0x11e   : > { %891 = vrcp.f32 %v597_v26  ;;  %v574_v31 = vadd.f32 %v566_v25, %v558_v23  ;;  %v570_v49 = vadd.f32 1.0, %v566_v25 }
 0x11f   : > { %v586_v32 = vadd.f32 %v582_v27, %v566_v25  ;;  %v575_v33 = vadd.f32 %v567_v29, %v559_v28  ;;  %v583_v34 = vmul.f32 2.0, %v559_v28  ;;  %v571_v53 = vadd.f32 1.0, %v567_v29 }
 0x120   : > { %v594_v37 = vadd.f32 2.0, %v574_v31  ;;  %v578_v43 = vsel %vm562_vm3, %v570_v49, %v574_v31 }
 0x121   : > { %v590_v36 = vadd.f32 1.0, %v586_v32  ;;  %v587_v38 = vadd.f32 %v583_v34, %v567_v29  ;;  %v595_v42 = vadd.f32 2.0, %v575_v33  ;;  %v579_v57 = vsel %vm563_vm4, %v571_v53, %v575_v33 }
 0x122   : > { %v602_v46 = vmul.f32 %v578_v43, %v1040_v60  ;;  %v603_v61 = vmul.f32 %v579_v57, %v1043_v63 }
 0x123   : > { %v598_v40 = vsel %vm562_vm3, %v590_v36, %v594_v37  ;;  %v591_v41 = vadd.f32 1.0, %v587_v38 }
 0x124   : > { %893 = vrcp.f32 %v598_v40 }
 0x125   : > { %v599_v47 = vsel %vm563_vm4, %v591_v41, %v595_v42 }
 0x126   : > { %v890_v48 = vpop.eup %889  ;;  %895 = vrcp.f32 %v599_v47 }
 0x127   : > { %v608_v50 = vmul.f32 %v890_v48, %v600_v45 }
 0x128   : > { %v892_v52 = vpop.eup %891 }
 0x129   : > { %v783_v54 = vpack.c.bf16 %v608_v50, %v608_v50  ;;  %v609_v55 = vmul.f32 %v892_v52, %v601_v51 }
 0x12b   : > { %629 = vst.msk [vmem:[%s227_s17] sm:$0xf] %vm628_vm5, %v783_v54  ;;  %v784_v56 = vpack.c.bf16 %v609_v55, %v609_v55 }
 0x12d   : > { %630 = vst.msk [vmem:[%s227_s17 + $0x4] sm:$0xf] %vm628_vm5, %v784_v56 }
 0x12e   : > { %v894_v58 = vpop.eup %893 }
 0x12f   : > { %v610_v59 = vmul.f32 %v894_v58, %v602_v46 }
 0x130   : > { %v896_v62 = vpop.eup %895 }
 0x131   : > { %v785_v0 = vpack.c.bf16 %v610_v59, %v610_v59  ;;  %v611_v1 = vmul.f32 %v896_v62, %v603_v61 }
 0x133   : > { %631 = vst.msk [vmem:[%s227_s17 + $0x8] sm:$0xf] %vm628_vm5, %v785_v0  ;;  %v786_v2 = vpack.c.bf16 %v611_v1, %v611_v1 }
 0x135   : > { %632 = vst.msk [vmem:[%s227_s17 + $0xc] sm:$0xf] %vm628_vm5, %v786_v2 }
 0x136 PF: > { %s13_s14 = sadd.s32 1, %s919_s14   ;;  %s1091_s12 = smov %s915_s13 }
 0x137   : > { %p10_p5 = scmp.ge.s32.totalorder %s13_s14, 6   ;;  %s1092_s13 = smov %s1094_s15 }
 0x139   :  { %12 = sbr.rel (!%p10_p5) target bundleno = 2 (0x2), region = 68 }

// kernel: encoder_forward.20
= control target key start
LH: loop header
LB: loop body
LE: loop exit
PB: predicated region body
PF: predicated region fallthrough
CT: control target
= control target key end

     0   :  { %s959_s12 = smov 0   ;;  %s961_s13 = smov 0   ;;  %s1078_s0 = inlined_call_operand.vmem [shape: bf16[4,32,288], index: 0, kind: input, shape index: {}]   ;;  %s1079_s1 = inlined_call_operand.vmem [shape: f32[4,32,1], index: 1, kind: input, shape index: {}]   ;;  %s1080_s2 = inlined_call_operand.vmem [shape: bf16[4,288,2], index: 2, kind: input, shape index: {}]   ;;  %s1081_s3 = inlined_call_operand.vmem [shape: bf16[4,32,2], index: 3, kind: output, shape index: {}]  }
   0x1   :  { %s963_s14 = smov 0  }
   0x2 LB: > { %s25_s15 = sadd.s32 1, %s932_s13  ;;  %p758_p0 = scmp.ge.s32.totalorder %s936_s14, 1  ;;  %s936_s14 = sphi %s963_s14, %s13_s14   ;;  %s932_s13 = sphi %s961_s13, %s1083_s13   ;;  %s928_s12 = sphi %s959_s12, %s1082_s12  }
   0x3   : > { %p27_p1 = scmp.ge.s32.totalorder %s25_s15, 4  ;;  %p176_p2 = scmp.lt.s32.totalorder %s936_s14, 5 }
   0x5   : > { %s1085_s15 = smov (%p27_p1, %s25_s15), 0  ;;  %p177_p3 = pnand %p758_p0, %p176_p2 }
   0x6   : > { %p216_p4 = scmp.lt.s32.totalorder (!%p177_p3), %s928_s12, 3  ;;  %v938_v0 = vmov (!%p177_p3), 0   ;;  %vm449_vm0 = vcmask (!%p177_p3), 261120   ;;  %vm642_vm5 = vcmask (!%p177_p3), 11264  }
   0x7   : > { %180 = sbr.rel (%p177_p3) target bundleno = 322 (0x142), region = 32  ;;  %870 = vset.pattern.permute.xlu0 (!%p177_p3), %v938_v0  ;;  %871 = vset.pattern.permute.xlu1 (!%p177_p3), %v938_v0 }
   0xe   : > { %s1087_s12 = smov (!%p216_p4, %s928_s12), 3 }
   0xf   : > { %s844_s16 = smul.u32 144, %s1087_s12  ;;  %s797_s17 = sshll.u32 %s1087_s12, 5 }
  0x10   : > { %s984_s20 = scalar_lea.vmem %s1079_s1, %s797_s17  ;;  %s843_s24 = smul.u32 48, %s1087_s12 }
  0x11   : > { %s989_s23 = scalar_lea.vmem %s1080_s2, %s844_s16  ;;  %v287_v1 = vld [vmem:[%s984_s20] sm:$0xff]  ;;  %v289_v2 = vld [vmem:[%s984_s20 + $0x10] sm:$0xff]  ;;  %v288_v3 = vld [vmem:[%s984_s20 + $0x8] sm:$0xff]  ;;  %s798_s28 = sshll.u32 %s1087_s12, 4 }
  0x12   : > { %v872_v4 = vld [vmem:[%s989_s23 + $0x40] sm:$0xff]   ;;  %293 = vperm.xlu0 %870, %v287_v1   ;;  %303 = vperm.xlu1 %871, %v289_v2   ;;  %v874_v6 = vld [vmem:[%s989_s23 + $0x48] sm:$0xff]   ;;  %v876_v8 = vld [vmem:[%s989_s23 + $0x50] sm:$0xff]   ;;  %s1009_s27 = scalar_lea.vmem %s1078_s0, %s843_s24  ;;  %s241_s4 = scalar_lea.vmem %s1081_s3, %s798_s28 }
  0x13   : > { %v873_v5 = vld [vmem:[%s989_s23] sm:$0xff]   ;;  %803 = vmatprep.subr.bf16.mxu0 %v872_v4  ;;  %v875_v7 = vld [vmem:[%s989_s23 + $0x8] sm:$0xff]   ;;  %v877_v9 = vld [vmem:[%s989_s23 + $0x10] sm:$0xff]  }
  0x14   : > { %804 = vmatpush3.bf16.msra.mxu0 %v873_v5  ;;  %v878_v10 = vld [vmem:[%s989_s23 + $0x58] sm:$0xff]   ;;  %v880_v12 = vld [vmem:[%s989_s23 + $0x60] sm:$0xff]   ;;  %v882_v15 = vld [vmem:[%s989_s23 + $0x68] sm:$0xff]  }
  0x15   : > { %805 = vmatprep.subr.bf16.mxu0 %v874_v6  ;;  %v879_v11 = vld [vmem:[%s989_s23 + $0x18] sm:$0xff]   ;;  %v881_v13 = vld [vmem:[%s989_s23 + $0x20] sm:$0xff]   ;;  %v883_v16 = vld [vmem:[%s989_s23 + $0x28] sm:$0xff]  }
  0x16   : > { %298 = vperm.xlu0 %870, %v288_v3   ;;  %v887_v14 = vld [vmem:[%s989_s23 + $0x80] sm:$0xff]   ;;  %v884_v17 = vld [vmem:[%s989_s23 + $0x70] sm:$0xff]   ;;  %v892_v19 = vld [vmem:[%s989_s23 + $0x88] sm:$0xff]  }
  0x17   : > { %835 = vmatprep.subr.bf16.mxu1 %v887_v14  ;;  %v891_v18 = vld [vmem:[%s1009_s27 + $0x4] ss:$12 sps:$4 sm:$0xff]   ;;  %v893_v20 = vld [vmem:[%s1009_s27 + $0x8] ss:$12 sps:$4 sm:$0xff]   ;;  %v894_v21 = vld [vmem:[%s1009_s27 + $0x20] ss:$12 sps:$4 sm:$0xff]  }
  0x18   : > { %806 = vmatpush3.bf16.msra.mxu0 %v875_v7  ;;  %836 = vmatpush3.bf16.msra.mxu1 %v887_v14  ;;  %v290_v22 = vld [vmem:[%s984_s20 + $0x18] sm:$0xff]  ;;  %v885_v23 = vld [vmem:[%s989_s23 + $0x30] sm:$0xff]   ;;  %v889_v26 = vld [vmem:[%s1009_s27] ss:$12 sps:$4 sm:$0xff]  }
  0x19   : > { %807 = vmatprep.subr.bf16.mxu0 %v876_v8  ;;  %488 = vmatprep.mubr.bf16.mxu0 %v891_v18  ;;  %v886_v24 = vld [vmem:[%s989_s23 + $0x78] sm:$0xff]  }
  0x1a   : > { %837 = vmatprep.subr.bf16.mxu1 %v892_v19  ;;  %839 = vmatprep.mubr.msk.bf16.mxu1 %vm449_vm0, %v893_v20  ;;  %v888_v25 = vld [vmem:[%s989_s23 + $0x38] sm:$0xff]  }
  0x1b   : > { %308 = vperm.xlu1 %871, %v290_v22   ;;  %v895_v27 = vld [vmem:[%s1009_s27 + $0x1c] ss:$12 sps:$4 sm:$0xff]   ;;  %v897_v28 = vld [vmem:[%s1009_s27 + $0x18] ss:$12 sps:$4 sm:$0xff]  }
  0x1c   : > { %808 = vmatpush3.bf16.msra.mxu0 %v877_v9  ;;  %838 = vmatpush3.bf16.msra.mxu1 %v892_v19 }
  0x1d   : > { %809 = vmatprep.subr.bf16.mxu0 %v878_v10 }
  0x1f   : > { %840 = vmatmul.mubr.msk.bf16.vlgmr.msra.gmra.mrb[0].mxu1 %vm449_vm0, %v894_v21 }
  0x20   : > { %810 = vmatpush3.bf16.msra.mxu0 %v879_v11 }
  0x21   : > { %811 = vmatprep.subr.bf16.mxu0 %v880_v12 }
  0x24   : > { %812 = vmatpush3.bf16.msra.mxu0 %v881_v13 }
  0x25   : > { %813 = vmatprep.subr.bf16.mxu0 %v882_v15 }
  0x28   : > { %814 = vmatpush3.bf16.msra.mxu0 %v883_v16 }
  0x29   : > { %815 = vmatprep.subr.bf16.mxu0 %v884_v17 }
  0x2c   : > { %816 = vmatpush3.bf16.msra.mxu0 %v885_v23 }
  0x2d   : > { %817 = vmatprep.subr.bf16.mxu0 %v886_v24 }
  0x30   : > { %818 = vmatpush3.bf16.msra.mxu0 %v888_v25 }
  0x33   : > { %489 = vmatmul.mubr.bf16.vlgmr.msra.gmra.mrb[0].mxu0 %v889_v26 }
  0x34   : > { %496 = vmatprep.mubr.bf16.mxu0 %v895_v27 }
  0x3b   : > { %497 = vmatmul.mubr.bf16.gmra.mrb[4].mxu0 %v897_v28 }
  0x91   : > { %v294_v33 = vpop.permute.xlu0 %293  ;;  %v304_v44 = vpop.permute.xlu1 %303 }
  0x95   : > { %v299_v39 = vpop.permute.xlu0 %298 }
  0x9a   : > { %v309_v58 = vpop.permute.xlu1 %308 }
  0xf2   : > { %v841_v29 = vpop.f32.mrb[0].mxu1 }
  0xf3   : > { %v539_v30 = vpop.f32.mrb[1].mxu1 }
  0xf4   : > { %v842_v31 = vpop.f32.mrb[2].mxu1 }
  0xf5   : > { %v542_v32 = vpop.f32.mrb[3].mxu1 }
 0x106   : > { %v819_v34 = vpop.f32.mrb[0].mxu0 }
 0x107   : > { %v820_v35 = vpop.f32.mrb[1].mxu0 }
 0x108   : > { %v821_v36 = vadd.f32 %v820_v35, %v819_v34  ;;  %v822_v37 = vpop.f32.mrb[2].mxu0 }
 0x109   : > { %v823_v38 = vpop.f32.mrb[3].mxu0 }
 0x10a   : > { %v824_v40 = vadd.f32 %v823_v38, %v822_v37  ;;  %v491_v41 = vadd.f32 %v821_v36, %v294_v33 }
 0x10c   : > { %v494_v42 = vadd.f32 %v824_v40, %v299_v39  ;;  %v1025_v43 = vadd.f32 %v539_v30, %v491_v41 }
 0x10e   : > { %v554_v45 = vand.u32 2147483647, %v1025_v43  ;;  %v1028_v46 = vadd.f32 %v542_v32, %v494_v42  ;;  %v825_v47 = vpop.f32.mrb[4].mxu0  ;;  %vm574_vm1 = vcmp.ge.f32.partialorder %v1025_v43, 0.0 }
 0x10f   : > { %v826_v48 = vpop.f32.mrb[5].mxu0 }
 0x110   : > { %v558_v49 = vsub.f32 0.0, %v554_v45  ;;  %v555_v50 = vand.u32 2147483647, %v1028_v46  ;;  %v827_v51 = vadd.f32 %v826_v48, %v825_v47  ;;  %v828_v52 = vpop.f32.mrb[6].mxu0  ;;  %vm575_vm2 = vcmp.ge.f32.partialorder %v1028_v46, 0.0 }
 0x111   : > { %v829_v53 = vpop.f32.mrb[7].mxu0 }
 0x112   : > { %v562_v54 = vmul.f32 1.442695, %v558_v49  ;;  %v559_v55 = vsub.f32 0.0, %v555_v50  ;;  %v499_v56 = vadd.f32 %v827_v51, %v304_v44  ;;  %v830_v57 = vadd.f32 %v829_v53, %v828_v52 }
 0x114   : > { %898 = vpow2.f32 %v562_v54  ;;  %v564_v59 = vmul.f32 1.442695, %v559_v55  ;;  %v1031_v60 = vadd.f32 %v841_v29, %v499_v56  ;;  %v502_v61 = vadd.f32 %v830_v57, %v309_v58 }
 0x116   : > { %900 = vpow2.f32 %v564_v59  ;;  %v556_v62 = vand.u32 2147483647, %v1031_v60  ;;  %v1034_v63 = vadd.f32 %v842_v31, %v502_v61  ;;  %vm576_vm3 = vcmp.ge.f32.partialorder %v1031_v60, 0.0 }
 0x118   : > { %v560_v0 = vsub.f32 0.0, %v556_v62  ;;  %v557_v1 = vand.u32 2147483647, %v1034_v63  ;;  %vm577_vm4 = vcmp.ge.f32.partialorder %v1034_v63, 0.0 }
 0x11a   : > { %v566_v2 = vmul.f32 1.442695, %v560_v0  ;;  %v561_v3 = vsub.f32 0.0, %v557_v1 }
 0x11c   : > { %902 = vpow2.f32 %v566_v2  ;;  %v568_v4 = vmul.f32 1.442695, %v561_v3 }
 0x11e   : > { %v899_v5 = vpop.eup %898  ;;  %904 = vpow2.f32 %v568_v4 }
 0x11f   : > { %v570_v6 = vmul.f32 %v899_v5, %v899_v5  ;;  %v578_v7 = vmul.f32 2.0, %v899_v5 }
 0x120   : > { %v901_v8 = vpop.eup %900 }
 0x121   : > { %v586_v9 = vadd.f32 %v578_v7, %v570_v6  ;;  %v594_v10 = vmul.f32 2.0, %v570_v6  ;;  %v571_v11 = vmul.f32 %v901_v8, %v901_v8  ;;  %v579_v12 = vmul.f32 2.0, %v901_v8 }
 0x122   : > { %v582_v30 = vadd.f32 1.0, %v578_v7 }
 0x123   : > { %v598_v13 = vadd.f32 %v594_v10, %v578_v7  ;;  %v595_v14 = vmul.f32 2.0, %v571_v11  ;;  %v587_v15 = vadd.f32 %v579_v12, %v571_v11  ;;  %v606_v17 = vadd.f32 2.0, %v586_v9 }
 0x124   : > { %v583_v35 = vadd.f32 1.0, %v579_v12  ;;  %v590_v39 = vsel %vm574_vm1, %v582_v30, %v586_v9 }
 0x125   : > { %v602_v16 = vadd.f32 1.0, %v598_v13  ;;  %v599_v18 = vadd.f32 %v595_v14, %v579_v12  ;;  %v607_v22 = vadd.f32 2.0, %v587_v15  ;;  %v614_v45 = vmul.f32 %v590_v39, %v1025_v43 }
 0x126   : > { %v903_v19 = vpop.eup %902  ;;  %v591_v44 = vsel %vm575_vm2, %v583_v35, %v587_v15 }
 0x127   : > { %v610_v20 = vsel %vm574_vm1, %v602_v16, %v606_v17  ;;  %v603_v21 = vadd.f32 1.0, %v599_v18  ;;  %v572_v23 = vmul.f32 %v903_v19, %v903_v19  ;;  %v580_v25 = vmul.f32 2.0, %v903_v19 }
 0x128   : > { %v905_v24 = vpop.eup %904  ;;  %906 = vrcp.f32 %v610_v20  ;;  %v615_v51 = vmul.f32 %v591_v44, %v1028_v46 }
 0x129   : > { %v611_v26 = vsel %vm575_vm2, %v603_v21, %v607_v22  ;;  %v596_v27 = vmul.f32 2.0, %v572_v23  ;;  %v573_v28 = vmul.f32 %v905_v24, %v905_v24  ;;  %v581_v29 = vmul.f32 2.0, %v905_v24 }
 0x12a   : > { %908 = vrcp.f32 %v611_v26  ;;  %v588_v31 = vadd.f32 %v580_v25, %v572_v23  ;;  %v584_v49 = vadd.f32 1.0, %v580_v25 }
 0x12b   : > { %v600_v32 = vadd.f32 %v596_v27, %v580_v25  ;;  %v589_v33 = vadd.f32 %v581_v29, %v573_v28  ;;  %v597_v34 = vmul.f32 2.0, %v573_v28  ;;  %v585_v53 = vadd.f32 1.0, %v581_v29 }
 0x12c   : > { %v608_v37 = vadd.f32 2.0, %v588_v31  ;;  %v592_v43 = vsel %vm576_vm3, %v584_v49, %v588_v31 }
 0x12d   : > { %v604_v36 = vadd.f32 1.0, %v600_v32  ;;  %v601_v38 = vadd.f32 %v597_v34, %v581_v29  ;;  %v609_v42 = vadd.f32 2.0, %v589_v33  ;;  %v593_v57 = vsel %vm577_vm4, %v585_v53, %v589_v33 }
 0x12e   : > { %v616_v46 = vmul.f32 %v592_v43, %v1031_v60  ;;  %v617_v61 = vmul.f32 %v593_v57, %v1034_v63 }
 0x12f   : > { %v612_v40 = vsel %vm576_vm3, %v604_v36, %v608_v37  ;;  %v605_v41 = vadd.f32 1.0, %v601_v38 }
 0x130   : > { %910 = vrcp.f32 %v612_v40 }
 0x131   : > { %v613_v47 = vsel %vm577_vm4, %v605_v41, %v609_v42 }
 0x132   : > { %v907_v48 = vpop.eup %906  ;;  %912 = vrcp.f32 %v613_v47 }
 0x133   : > { %v622_v50 = vmul.f32 %v907_v48, %v614_v45 }
 0x134   : > { %v909_v52 = vpop.eup %908 }
 0x135   : > { %v799_v54 = vpack.c.bf16 %v622_v50, %v622_v50  ;;  %v623_v55 = vmul.f32 %v909_v52, %v615_v51 }
 0x137   : > { %643 = vst.msk [vmem:[%s241_s4] sm:$0xf] %vm642_vm5, %v799_v54  ;;  %v800_v56 = vpack.c.bf16 %v623_v55, %v623_v55 }
 0x139   : > { %644 = vst.msk [vmem:[%s241_s4 + $0x4] sm:$0xf] %vm642_vm5, %v800_v56 }
 0x13a   : > { %v911_v58 = vpop.eup %910 }
 0x13b   : > { %v624_v59 = vmul.f32 %v911_v58, %v616_v46 }
 0x13c   : > { %v913_v62 = vpop.eup %912 }
 0x13d   : > { %v801_v0 = vpack.c.bf16 %v624_v59, %v624_v59  ;;  %v625_v1 = vmul.f32 %v913_v62, %v617_v61 }
 0x13f   : > { %645 = vst.msk [vmem:[%s241_s4 + $0x8] sm:$0xf] %vm642_vm5, %v801_v0  ;;  %v802_v2 = vpack.c.bf16 %v625_v1, %v625_v1 }
 0x141   : > { %646 = vst.msk [vmem:[%s241_s4 + $0xc] sm:$0xf] %vm642_vm5, %v802_v2 }
 0x142 PF: > { %s13_s14 = sadd.s32 1, %s936_s14   ;;  %s1082_s12 = smov %s932_s13 }
 0x143   : > { %p10_p5 = scmp.ge.s32.totalorder %s13_s14, 6   ;;  %s1083_s13 = smov %s1085_s15 }
 0x145   :  { %12 = sbr.rel (!%p10_p5) target bundleno = 2 (0x2), region = 68 }

// kernel: encoder_forward.21
= control target key start
LH: loop header
LB: loop body
LE: loop exit
PB: predicated region body
PF: predicated region fallthrough
CT: control target
= control target key end

     0   :  { %s578_s12 = smov 0   ;;  %s580_s13 = smov 0   ;;  %s619_s0 = inlined_call_operand.vmem [shape: bf16[4,32,32], index: 0, kind: input, shape index: {}]   ;;  %s620_s1 = inlined_call_operand.vmem [shape: f32[4,32,1], index: 1, kind: input, shape index: {}]   ;;  %s621_s2 = inlined_call_operand.vmem [shape: bf16[4,32,2], index: 2, kind: input, shape index: {}]   ;;  %s622_s3 = inlined_call_operand.vmem [shape: f32[4,32,2], index: 3, kind: output, shape index: {}]  }
   0x1   :  { %s582_s14 = smov 0  }
   0x2 LB: > { %s25_s15 = sadd.s32 1, %s551_s13  ;;  %p469_p0 = scmp.ge.s32.totalorder %s555_s14, 1  ;;  %s555_s14 = sphi %s582_s14, %s13_s14   ;;  %s551_s13 = sphi %s580_s13, %s624_s13   ;;  %s547_s12 = sphi %s578_s12, %s623_s12  }
   0x3   : > { %p27_p1 = scmp.ge.s32.totalorder %s25_s15, 4  ;;  %p176_p2 = scmp.lt.s32.totalorder %s555_s14, 5 }
   0x5   : > { %s626_s15 = smov (%p27_p1, %s25_s15), 0  ;;  %p177_p3 = pnand %p469_p0, %p176_p2 }
   0x6   : > { %p216_p4 = scmp.lt.s32.totalorder (!%p177_p3), %s547_s12, 3  ;;  %v557_v0 = vmov (!%p177_p3), 0   ;;  %vm297_vm0 = vcmask (!%p177_p3), 261120   ;;  %vm353_vm1 = vcmask (!%p177_p3), 15360  }
   0x7   : > { %180 = sbr.rel (%p177_p3) target bundleno = 244 (0xf4), region = 32  ;;  %528 = vset.pattern.permute.xlu1 (!%p177_p3), %v557_v0  ;;  %527 = vset.pattern.permute.xlu0 (!%p177_p3), %v557_v0 }
   0xe   : > { %s628_s12 = smov (!%p216_p4, %s547_s12), 3 }
   0xf   : > { %s486_s16 = sshll.u32 %s628_s12, 4  ;;  %s487_s17 = sshll.u32 %s628_s12, 5 }
  0x10   : > { %s233_s20 = scalar_lea.vmem %s621_s2, %s486_s16  ;;  %s220_s23 = scalar_lea.vmem %s619_s0, %s486_s16 }
  0x11   : > { %v529_v1 = vld [vmem:[%s233_s20] sm:$0xff]   ;;  %v530_v2 = vld [vmem:[%s233_s20 + $0x8] sm:$0xff]   ;;  %s225_s26 = scalar_lea.vmem %s620_s1, %s487_s17  ;;  %s241_s29 = scalar_lea.vmem %s622_s3, %s487_s17 }
  0x12   : > { %494 = vmatprep.subr.bf16.mxu0 %v529_v1  ;;  %v531_v3 = vld [vmem:[%s220_s23] sm:$0xff]   ;;  %v253_v4 = vld [vmem:[%s225_s26 + $0x10] sm:$0xff]  ;;  %v532_v6 = vld [vmem:[%s220_s23 + $0x8] sm:$0xff]  }
  0x13   : > { %495 = vmatpush3.bf16.msra.mxu0 %v529_v1  ;;  %498 = vmatprep.mubr.msk.bf16.mxu0 %vm297_vm0, %v531_v3  ;;  %v251_v5 = vld [vmem:[%s225_s26] sm:$0xff]  ;;  %v254_v7 = vld [vmem:[%s225_s26 + $0x18] sm:$0xff]  ;;  %v252_v8 = vld [vmem:[%s225_s26 + $0x8] sm:$0xff] }
  0x14   : > { %496 = vmatprep.subr.bf16.mxu0 %v530_v2  ;;  %267 = vperm.xlu1 %528, %v253_v4  }
  0x15   : > { %257 = vperm.xlu0 %527, %v251_v5  }
  0x17   : > { %497 = vmatpush3.bf16.msra.mxu0 %v530_v2 }
  0x18   : > { %272 = vperm.xlu1 %528, %v254_v7  }
  0x19   : > { %262 = vperm.xlu0 %527, %v252_v8  }
  0x1a   : > { %499 = vmatmul.mubr.msk.bf16.vlgmr.msra.gmra.mrb[0].mxu0 %vm297_vm0, %v532_v6 }
  0x93   : > { %v268_v9 = vpop.permute.xlu1 %267 }
  0x94   : > { %v258_v10 = vpop.permute.xlu0 %257 }
  0x97   : > { %v273_v14 = vpop.permute.xlu1 %272 }
  0x98   : > { %v263_v17 = vpop.permute.xlu0 %262 }
  0xed   : > { %v500_v11 = vpop.f32.mrb[0].mxu0 }
  0xee   : > { %v347_v12 = vadd.f32 %v500_v11, %v268_v9  ;;  %v338_v13 = vpop.f32.mrb[1].mxu0 }
  0xef   : > { %v339_v15 = vadd.f32 %v338_v13, %v258_v10  ;;  %v501_v16 = vpop.f32.mrb[2].mxu0 }
  0xf0   : > { %356 = vst.msk [vmem:[%s241_s29 + $0x10] sm:$0xff] %vm353_vm1, %v347_v12  ;;  %v350_v18 = vadd.f32 %v501_v16, %v273_v14  ;;  %v341_v19 = vpop.f32.mrb[3].mxu0 }
  0xf1   : > { %354 = vst.msk [vmem:[%s241_s29] sm:$0xff] %vm353_vm1, %v339_v15  ;;  %v342_v20 = vadd.f32 %v341_v19, %v263_v17 }
  0xf2   : > { %357 = vst.msk [vmem:[%s241_s29 + $0x18] sm:$0xff] %vm353_vm1, %v350_v18 }
  0xf3   : > { %355 = vst.msk [vmem:[%s241_s29 + $0x8] sm:$0xff] %vm353_vm1, %v342_v20 }
  0xf4 PF: > { %s13_s14 = sadd.s32 1, %s555_s14   ;;  %s623_s12 = smov %s551_s13 }
  0xf5   : > { %p10_p5 = scmp.ge.s32.totalorder %s13_s14, 6   ;;  %s624_s13 = smov %s626_s15 }
  0xf7   :  { %12 = sbr.rel (!%p10_p5) target bundleno = 2 (0x2), region = 68 }

</bundles_post_ra>
